<compile_context>
chip_gen: v5e
topology: v5e:2x2
jax: 0.10.0
libtpu: 0.0.40
codegen_flags: <defaults>
</compile_context>

<pallas_src>
import functools
import math

import numpy as np
import jax
import jax.numpy as jnp
from jax.experimental import pallas as pl
from jax.experimental.pallas import tpu as pltpu


_NEG_INF = -1e9  # off-window bias for block-diagonal scores (exp -> exactly 0)


def _round_up(n, m):
    return (n + m - 1) // m * m


# ----------------------------------------------------------------------------
# Pallas kernel: W_BLK windows of local multi-head attention per grid step
# ----------------------------------------------------------------------------
def _local_attn_kernel(x_ref, bias_ref, wqkv_ref, wo_ref, bo_ref, out_ref,
                       *attn_refs, heads, dim_head, w_blk, p2, grp,
                       return_attn, approx_recip):
    attn_ref = attn_refs[0] if return_attn else None
    c = x_ref.shape[-1]
    dim_out = wo_ref.shape[-1]
    inner = heads * dim_head
    n_tok = w_blk * p2
    seq = p2 if return_attn else grp * p2      # keys per softmax row
    nb = n_tok // seq                          # batched attention blocks

    # (W_BLK, p2, C) -> (W_BLK*p2, C): leading-dim merge only (lane dim kept).
    x = x_ref[...].reshape(n_tok, c)
    bias = bias_ref[...]                       # (seq, seq) f32 rel-pos (+ block) bias

    # Fused, pre-scaled Q/K/V projection: a single MXU matmul per grid step.
    proj = jnp.dot(x, wqkv_ref[...], preferred_element_type=jnp.float32)

    out_acc = jnp.zeros((n_tok, dim_out), jnp.float32)
    for h in range(heads):                     # heads is small & static
        q = proj[:, h * dim_head:(h + 1) * dim_head]
        k = proj[:, inner + h * dim_head:inner + (h + 1) * dim_head]
        v = proj[:, 2 * inner + h * dim_head:2 * inner + (h + 1) * dim_head]
        qb = q.reshape(nb, seq, dim_head)      # leading-dim splits (free)
        kb = k.reshape(nb, seq, dim_head)
        vb = v.reshape(nb, seq, dim_head)

        # Scores (+ relative-position / block-diagonal bias) and softmax.
        dots = jnp.einsum("bid,bjd->bij", qb, kb,
                          preferred_element_type=jnp.float32) + bias
        m = jnp.max(dots, axis=-1, keepdims=True)
        e = jnp.exp(dots - m)
        denom = jnp.sum(e, axis=-1, keepdims=True)
        a = e * pl.reciprocal(denom, approx=approx_recip)  # EUP when approx

        if return_attn:
            # Lane-dense attention store: the VMEM/HBM block has minor dim
            # p2*p2, filled with p2 static sliced stores (no lane-crossing
            # vector reshape); the writeback DMA then reads a dense block.
            aw = a.astype(attn_ref.dtype)      # (w_blk, p2, p2)
            for i in range(p2):
                attn_ref[:, h, i * p2:(i + 1) * p2] = aw[:, i, :]

        o = jnp.einsum("bij,bjd->bid", a, vb,
                       preferred_element_type=jnp.float32)  # (nb, seq, dh)
        # Accumulate the output projection per head (no concat of head slabs).
        out_acc = out_acc + jnp.dot(o.reshape(n_tok, dim_head), wo_ref[h],
                                    preferred_element_type=jnp.float32)

    # Lane-dense packed output (w_blk, p2*dim_out) via static sliced stores.
    out3 = (out_acc + bo_ref[...]).reshape(w_blk, p2, dim_out)
    for t in range(p2):
        out_ref[:, t * dim_out:(t + 1) * dim_out] = out3[:, t, :]


# ----------------------------------------------------------------------------
# Helpers
# ----------------------------------------------------------------------------
def _rel_pos_bias(pos_embedding, window_size):
    p = window_size
    idx = np.array([[i, j] for i in range(p) for j in range(p)])
    rel = (idx[None, :, :] - idx[:, None, :]) + (p - 1)          # (p2, p2, 2)
    return pos_embedding[rel[:, :, 0], rel[:, :, 1]]             # (p2, p2)


def _default_w_blk(nw, p2, c, heads, dim_out, grp, return_attn, gran):
    """Windows per grid step.

    Budgeted against *padded* VMEM tiles (lanes rounded to 128, sublanes to 8,
    f32), x2 for double-buffered streamed blocks, plus the live in-kernel
    intermediates; then capped so the grid keeps >=4 (else >=2) steps so the
    'parallel' axis can feed both v7x TensorCores.  The 8 MiB streaming budget
    fits every generation's scoped-VMEM default (incl. v7x's 64 MiB physical).
    """
    lane = lambda n: _round_up(max(int(n), 1), 128)
    sub = lambda n: _round_up(max(int(n), 1), 8)
    seq = p2 if return_attn else grp * p2
    per_w = sub(p2) * lane(c) * 4                    # x window block
    per_w += lane(p2 * dim_out) * 4                  # packed output rows
    if return_attn:
        per_w += sub(heads) * lane(p2 * p2) * 4      # packed attention rows
    live = 4 * p2 * lane(seq) * 4                    # scores / exp / attn, per window
    budget = 8 * 1024 * 1024
    w = max(1, budget // (2 * per_w + live))
    for steps in (4, 2):                             # keep several grid steps
        cap = (nw // steps) // gran * gran
        if cap >= gran:
            w = min(w, cap)
            break
    w = max(gran, w // gran * gran)
    return int(min(w, _round_up(nw, gran)))


# ----------------------------------------------------------------------------
# Wrapper: window packing, pallas_call, window merge
# ----------------------------------------------------------------------------
def local_attention(x, params, *, window_size, heads, dim_head, w_blk=None,
                    return_attn=True, approx_recip=None,
                    attn_dtype=jnp.float32):
    """x: (b, c, h, w) float32 NCHW.  Returns (out NCHW, attn or None)."""
    b, c, hh, ww = x.shape
    p = window_size
    p2 = p * p
    n1, n2 = hh // p, ww // p
    nw = b * n1 * n2
    inner = heads * dim_head
    dim_out = params["wo"].shape[1]
    scale = dim_head ** -0.5
    if approx_recip is None:
        # Fast EUP reciprocal on the performance path; exact divide when the
        # attention map itself is returned (tight-tolerance consumers).
        approx_recip = not return_attn

    mask = _rel_pos_bias(params["pos_embedding"], p)             # (p2, p2)

    # Block-diagonal group size (return_attn=False path): how many windows
    # share one 128-lane score matrix.
    grp = 1 if return_attn else max(1, 128 // p2)
    # w_blk granularity: multiple of 8 (packed 2-D output block's second-minor
    # dim) and of the block-diagonal group size.
    gran = math.lcm(8, grp)

    if return_attn or grp == 1:
        bias = mask.astype(jnp.float32)                          # (p2, p2)
    else:
        gp = grp * p2
        onblk = np.kron(np.eye(grp), np.ones((p2, p2))) > 0.5
        bias = jnp.where(jnp.asarray(onblk),
                         jnp.tile(mask, (grp, grp)).astype(jnp.float32),
                         jnp.float32(_NEG_INF))                  # (gp, gp)

    # Fused projection weights, columns [q | k | v]; scale folded into q.
    wq = params["wq"] * scale
    wk = params["wkv"][:, :inner]
    wv = params["wkv"][:, inner:]
    wqkv = jnp.concatenate([wq, wk, wv], axis=1).astype(jnp.float32)  # (C, 3*inner)
    wo_ph = params["wo"].reshape(heads, dim_head, dim_out)            # (heads, dh, do)
    bo = params["bo"]                                                  # (1, dim_out)

    # NCHW -> (nw, p2, C) token windows (one fused XLA transpose pass).
    # Note: the input is left in this layout; lane-dense packing of the input
    # would need an in-kernel lane-split relayout and is skipped on purpose.
    xw = x.reshape(b, c, n1, p, n2, p).transpose(0, 2, 4, 3, 5, 1)   # (b,n1,n2,p,p,c)
    x_tok = xw.reshape(nw, p2, c)

    if w_blk is None:
        w_blk = _default_w_blk(nw, p2, c, heads, dim_out, grp, return_attn, gran)
    w_blk = int(_round_up(max(int(w_blk), 1), gran))
    n_blk = int(pl.cdiv(nw, w_blk))
    nw_pad = n_blk * w_blk
    if nw_pad != nw:                                             # ragged tail
        x_tok = jnp.pad(x_tok, ((0, nw_pad - nw), (0, 0), (0, 0)))

    kernel = functools.partial(
        _local_attn_kernel, heads=heads, dim_head=dim_head, w_blk=w_blk,
        p2=p2, grp=grp, return_attn=return_attn, approx_recip=approx_recip)

    out_shapes = [jax.ShapeDtypeStruct((nw_pad, p2 * dim_out), jnp.float32)]
    out_specs = [pl.BlockSpec((w_blk, p2 * dim_out), lambda g: (g, 0))]
    if return_attn:
        out_shapes.append(
            jax.ShapeDtypeStruct((nw_pad, heads, p2 * p2), attn_dtype))
        out_specs.append(
            pl.BlockSpec((w_blk, heads, p2 * p2), lambda g: (g, 0, 0)))

    in_specs = [
        pl.BlockSpec((w_blk, p2, c), lambda g: (g, 0, 0)),           # x windows
        pl.BlockSpec(bias.shape, lambda g: (0,) * bias.ndim),        # bias
        pl.BlockSpec((c, 3 * inner), lambda g: (0, 0)),              # fused wqkv
        pl.BlockSpec((heads, dim_head, dim_out), lambda g: (0, 0, 0)),
        pl.BlockSpec((1, dim_out), lambda g: (0, 0)),                # out bias
    ]

    results = pl.pallas_call(
        kernel,
        out_shape=tuple(out_shapes),
        grid_spec=pltpu.PrefetchScalarGridSpec(
            num_scalar_prefetch=0,
            grid=(n_blk,),
            in_specs=in_specs,
            out_specs=tuple(out_specs)),
        compiler_params=pltpu.CompilerParams(
            dimension_semantics=("parallel",),
            vmem_limit_bytes=48 * 1024 * 1024),
    )(x_tok, bias, wqkv, wo_ph, bo)

    if return_attn:
        out_pk, attn_pk = results
        attn = attn_pk[:nw].reshape(nw, heads, p2, p2)   # byte-identical unpack
    else:
        out_pk = results[0] if isinstance(results, (tuple, list)) else results
        attn = None

    out_tok = out_pk[:nw].reshape(nw, p2, dim_out)       # byte-identical unpack
    ow = out_tok.reshape(b, n1, n2, p, p, dim_out).transpose(0, 5, 1, 3, 2, 4)
    out = ow.reshape(b, dim_out, hh, ww)
    return out, attn


# ----------------------------------------------------------------------------
# Pure-JAX reference (same math) for a correctness check
# ----------------------------------------------------------------------------
def local_attention_ref(x, params, *, window_size, heads, dim_head):
    b, c, hh, ww = x.shape
    p = window_size
    p2 = p * p
    n1, n2 = hh // p, ww // p
    nw = b * n1 * n2
    inner = heads * dim_head
    dim_out = params["wo"].shape[1]
    scale = dim_head ** -0.5

    mask = _rel_pos_bias(params["pos_embedding"], p)

    xw = x.reshape(b, c, n1, p, n2, p).transpose(0, 2, 4, 1, 3, 5).reshape(nw, c, p, p)
    xt = xw.transpose(0, 2, 3, 1).reshape(nw, p2, c)

    q = xt @ params["wq"]
    kv = xt @ params["wkv"]
    k, v = kv[..., :inner], kv[..., inner:]
    qh = q.reshape(nw, p2, heads, dim_head).transpose(0, 2, 1, 3)
    kh = k.reshape(nw, p2, heads, dim_head).transpose(0, 2, 1, 3)
    vh = v.reshape(nw, p2, heads, dim_head).transpose(0, 2, 1, 3)
    dots = jnp.einsum("whid,whjd->whij", qh, kh) * scale + mask
    attn = jax.nn.softmax(dots, axis=-1)
    o = jnp.einsum("whij,whjd->whid", attn, vh)
    o = o.transpose(0, 2, 1, 3).reshape(nw, p2, inner)
    o = o @ params["wo"] + params["bo"]
    ow = o.reshape(nw, p, p, dim_out).transpose(0, 3, 1, 2)
    ow = ow.reshape(b, n1, n2, dim_out, p, p).transpose(0, 3, 1, 4, 2, 5)
    return ow.reshape(b, dim_out, hh, ww), attn


# ----------------------------------------------------------------------------
if __name__ == "__main__":
    # Config consistent with the module: dim_in=4, window_size=4, heads=2,
    # dim_head=8, k=1 (1x1 kv conv), dropout=0 (identity).
    # TODO(synk): k > 1 (strided kxk kv conv / spatial downsampling of keys)
    # is not implemented; the default k=1 is a 1x1 conv and is handled.
    B, C, H, W = 2, 4, 16, 16
    P = 4
    HEADS, DIM_HEAD = 2, 8
    INNER = HEADS * DIM_HEAD
    DIM_OUT = C

    key = jax.random.PRNGKey(0)
    kx, kq, kkv, kwo, kbo, kpe = jax.random.split(key, 6)

    x = jax.random.normal(kx, (B, C, H, W), dtype=jnp.float32)

    params = {
        # conv1x1 weights stored as (in_channels, out_channels) matmul matrices
        "wq": jax.random.normal(kq, (C, INNER), dtype=jnp.float32) * 0.1,
        "wkv": jax.random.normal(kkv, (C, 2 * INNER), dtype=jnp.float32) * 0.1,
        "wo": jax.random.normal(kwo, (INNER, DIM_OUT), dtype=jnp.float32) * 0.1,
        "bo": jax.random.normal(kbo, (1, DIM_OUT), dtype=jnp.float32) * 0.1,
        "pos_embedding": jax.random.normal(kpe, (2 * P - 1, 2 * P - 1),
                                           dtype=jnp.float32) * 0.02,
    }

    out_ref_, attn_ref_ = local_attention_ref(x, params, window_size=P,
                                              heads=HEADS, dim_head=DIM_HEAD)

    # 1) Default config with attention map: nw=32 -> w_blk=8, grid=(4,).
    out1, attn1 = local_attention(x, params, window_size=P, heads=HEADS,
                                  dim_head=DIM_HEAD)
    jax.block_until_ready((out1, attn1))
    assert out1.shape == (B, DIM_OUT, H, W)
    assert attn1.shape == (B * (H // P) * (W // P), HEADS, P * P, P * P)
    np.testing.assert_allclose(np.asarray(out1), np.asarray(out_ref_),
                               rtol=1e-4, atol=1e-4)
    np.testing.assert_allclose(np.asarray(attn1), np.asarray(attn_ref_),
                               rtol=1e-4, atol=1e-4)

    # 2) Ragged tail: w_blk=24 does not divide nw=32 (zero-pad + slice path).
    out2, attn2 = local_attention(x, params, window_size=P, heads=HEADS,
                                  dim_head=DIM_HEAD, w_blk=24)
    jax.block_until_ready((out2, attn2))
    np.testing.assert_allclose(np.asarray(out2), np.asarray(out_ref_),
                               rtol=1e-4, atol=1e-4)
    np.testing.assert_allclose(np.asarray(attn2), np.asarray(attn_ref_),
                               rtol=1e-4, atol=1e-4)

    # 3) Performance path: no attention map, block-diagonal batching of 8
    #    windows (128-lane softmax), exact reciprocal -> strict check.
    out3, attn3 = local_attention(x, params, window_size=P, heads=HEADS,
                                  dim_head=DIM_HEAD, return_attn=False,
                                  approx_recip=False)
    jax.block_until_ready(out3)
    assert attn3 is None
    np.testing.assert_allclose(np.asarray(out3), np.asarray(out_ref_),
                               rtol=1e-4, atol=1e-4)

    # 4) Performance path with the approximate (EUP) reciprocal.
    out4, _ = local_attention(x, params, window_size=P, heads=HEADS,
                              dim_head=DIM_HEAD, return_attn=False)
    jax.block_until_ready(out4)
    np.testing.assert_allclose(np.asarray(out4), np.asarray(out_ref_),
                               rtol=1e-2, atol=1e-2)

    print("KERNEL_OK")
</pallas_src>

<mosaic_0001>
module attributes {stable_mosaic.version = 11 : i64} {
  func.func @_local_attn_kernel(%arg0: i32, %arg1: memref<8x16x4xf32, #tpu.memory_space<vmem>>, %arg2: memref<16x16xf32, #tpu.memory_space<vmem>>, %arg3: memref<4x48xf32, #tpu.memory_space<vmem>>, %arg4: memref<2x8x4xf32, #tpu.memory_space<vmem>>, %arg5: memref<1x4xf32, #tpu.memory_space<vmem>>, %arg6: memref<8x64xf32, #tpu.memory_space<vmem>>, %arg7: memref<8x2x256xf32, #tpu.memory_space<vmem>>) attributes {dimension_semantics = [#tpu.dimension_semantics<parallel>], iteration_bounds = array<i64: 4>, scalar_prefetch = 0 : i64, scratch_operands = 0 : i64, tpu.core_type = #tpu.core_type<tc>, window_params = [{transform_indices = @transform_0, window_bounds = array<i64: 8, 16, 4>}, {pipeline_mode = #tpu.pipeline_mode<synchronous>, transform_indices = @transform_1, window_bounds = array<i64: 16, 16>}, {pipeline_mode = #tpu.pipeline_mode<synchronous>, transform_indices = @transform_2, window_bounds = array<i64: 4, 48>}, {pipeline_mode = #tpu.pipeline_mode<synchronous>, transform_indices = @transform_3, window_bounds = array<i64: 2, 8, 4>}, {pipeline_mode = #tpu.pipeline_mode<synchronous>, transform_indices = @transform_4, window_bounds = array<i64: 1, 4>}, {transform_indices = @transform_5, window_bounds = array<i64: 8, 64>}, {transform_indices = @transform_6, window_bounds = array<i64: 8, 2, 256>}]} {
    %c0 = arith.constant 0 : index
    %c0_0 = arith.constant 0 : index
    %c0_1 = arith.constant 0 : index
    %0 = vector.load %arg1[%c0, %c0_0, %c0_1] : memref<8x16x4xf32, #tpu.memory_space<vmem>>, vector<8x16x4xf32>
    %1 = vector.shape_cast %0 : vector<8x16x4xf32> to vector<128x4xf32>
    %c0_2 = arith.constant 0 : index
    %c0_3 = arith.constant 0 : index
    %2 = vector.load %arg2[%c0_2, %c0_3] : memref<16x16xf32, #tpu.memory_space<vmem>>, vector<16x16xf32>
    %c0_4 = arith.constant 0 : index
    %c0_5 = arith.constant 0 : index
    %3 = vector.load %arg3[%c0_4, %c0_5] : memref<4x48xf32, #tpu.memory_space<vmem>>, vector<4x48xf32>
    %cst = arith.constant dense<0.000000e+00> : vector<128x48xf32>
    %4 = tpu.matmul %1, %3, %cst {dimension_numbers = #tpu.dot_dimension_numbers<[1], [0], [0], [1], [0, 0, 1, 1], [], []>} : vector<128x4xf32>, vector<4x48xf32>, vector<128x48xf32> -> vector<128x48xf32>
    %cst_6 = arith.constant 0.000000e+00 : f32
    %5 = vector.broadcast %cst_6 : f32 to vector<128x4xf32>
    %6 = vector.extract_strided_slice %4 {offsets = [0, 0], sizes = [128, 8], strides = [1, 1]} : vector<128x48xf32> to vector<128x8xf32>
    %7 = vector.extract_strided_slice %4 {offsets = [0, 16], sizes = [128, 8], strides = [1, 1]} : vector<128x48xf32> to vector<128x8xf32>
    %8 = vector.extract_strided_slice %4 {offsets = [0, 32], sizes = [128, 8], strides = [1, 1]} : vector<128x48xf32> to vector<128x8xf32>
    %9 = vector.shape_cast %6 : vector<128x8xf32> to vector<8x16x8xf32>
    %10 = vector.shape_cast %7 : vector<128x8xf32> to vector<8x16x8xf32>
    %11 = vector.shape_cast %8 : vector<128x8xf32> to vector<8x16x8xf32>
    "tpu.trace_start"() <{level = 10 : i32, message = "bid,bjd->bij"}> : () -> ()
    %cst_7 = arith.constant dense<0.000000e+00> : vector<8x16x16xf32>
    %12 = tpu.matmul %9, %10, %cst_7 {dimension_numbers = #tpu.dot_dimension_numbers<[2], [2], [1], [1], [0, 0, 0, 1, 1, 1], [0], [0]>} : vector<8x16x8xf32>, vector<8x16x8xf32>, vector<8x16x16xf32> -> vector<8x16x16xf32>
    "tpu.trace_stop"() : () -> ()
    %13 = vector.shape_cast %2 : vector<16x16xf32> to vector<1x16x16xf32>
    %14 = vector.broadcast %13 : vector<1x16x16xf32> to vector<8x16x16xf32>
    %15 = arith.addf %12, %14 : vector<8x16x16xf32>
    %cst_8 = arith.constant dense<0xFF800000> : vector<8x16xf32>
    %16 = vector.multi_reduction <maximumf>, %15, %cst_8 [2] : vector<8x16x16xf32> to vector<8x16xf32>
    %17 = vector.shape_cast %16 : vector<8x16xf32> to vector<8x16x1xf32>
    %18 = vector.broadcast %17 : vector<8x16x1xf32> to vector<8x16x16xf32>
    %19 = arith.subf %15, %18 : vector<8x16x16xf32>
    %20 = math.exp %19 : vector<8x16x16xf32>
    %cst_9 = arith.constant dense<0.000000e+00> : vector<8x16xf32>
    %21 = vector.multi_reduction <add>, %20, %cst_9 [2] : vector<8x16x16xf32> to vector<8x16xf32>
    %22 = vector.shape_cast %21 : vector<8x16xf32> to vector<8x16x1xf32>
    %23 = tpu.reciprocal %22 : vector<8x16x1xf32> -> vector<8x16x1xf32>
    %24 = vector.broadcast %23 : vector<8x16x1xf32> to vector<8x16x16xf32>
    %25 = arith.mulf %20, %24 : vector<8x16x16xf32>
    %26 = vector.extract_strided_slice %25 {offsets = [0, 0, 0], sizes = [8, 1, 16], strides = [1, 1, 1]} : vector<8x16x16xf32> to vector<8x1x16xf32>
    %27 = vector.shape_cast %26 : vector<8x1x16xf32> to vector<8x16xf32>
    %c0_10 = arith.constant 0 : index
    %c0_11 = arith.constant 0 : index
    %c0_12 = arith.constant 0 : index
    %28 = vector.load %arg7[%c0_10, %c0_11, %c0_12] : memref<8x2x256xf32, #tpu.memory_space<vmem>>, vector<8x1x16xf32>
    %29 = vector.shape_cast %28 : vector<8x1x16xf32> to vector<8x16xf32>
    %30 = vector.shape_cast %27 : vector<8x16xf32> to vector<8x1x16xf32>
    tpu.vector_store %arg7[%c0_10, %c0_11, %c0_12], %30 {strides = array<i32>} : memref<8x2x256xf32, #tpu.memory_space<vmem>>, vector<8x1x16xf32>,
    %31 = vector.extract_strided_slice %25 {offsets = [0, 1, 0], sizes = [8, 1, 16], strides = [1, 1, 1]} : vector<8x16x16xf32> to vector<8x1x16xf32>
    %32 = vector.shape_cast %31 : vector<8x1x16xf32> to vector<8x16xf32>
    %c0_13 = arith.constant 0 : index
    %c0_14 = arith.constant 0 : index
    %c16 = arith.constant 16 : index
    %33 = vector.load %arg7[%c0_13, %c0_14, %c16] : memref<8x2x256xf32, #tpu.memory_space<vmem>>, vector<8x1x16xf32>
    %34 = vector.shape_cast %33 : vector<8x1x16xf32> to vector<8x16xf32>
    %35 = vector.shape_cast %32 : vector<8x16xf32> to vector<8x1x16xf32>
    tpu.vector_store %arg7[%c0_13, %c0_14, %c16], %35 {strides = array<i32>} : memref<8x2x256xf32, #tpu.memory_space<vmem>>, vector<8x1x16xf32>,
    %36 = vector.extract_strided_slice %25 {offsets = [0, 2, 0], sizes = [8, 1, 16], strides = [1, 1, 1]} : vector<8x16x16xf32> to vector<8x1x16xf32>
    %37 = vector.shape_cast %36 : vector<8x1x16xf32> to vector<8x16xf32>
    %c0_15 = arith.constant 0 : index
    %c0_16 = arith.constant 0 : index
    %c32 = arith.constant 32 : index
    %38 = vector.load %arg7[%c0_15, %c0_16, %c32] : memref<8x2x256xf32, #tpu.memory_space<vmem>>, vector<8x1x16xf32>
    %39 = vector.shape_cast %38 : vector<8x1x16xf32> to vector<8x16xf32>
    %40 = vector.shape_cast %37 : vector<8x16xf32> to vector<8x1x16xf32>
    tpu.vector_store %arg7[%c0_15, %c0_16, %c32], %40 {strides = array<i32>} : memref<8x2x256xf32, #tpu.memory_space<vmem>>, vector<8x1x16xf32>,
    %41 = vector.extract_strided_slice %25 {offsets = [0, 3, 0], sizes = [8, 1, 16], strides = [1, 1, 1]} : vector<8x16x16xf32> to vector<8x1x16xf32>
    %42 = vector.shape_cast %41 : vector<8x1x16xf32> to vector<8x16xf32>
    %c0_17 = arith.constant 0 : index
    %c0_18 = arith.constant 0 : index
    %c48 = arith.constant 48 : index
    %43 = vector.load %arg7[%c0_17, %c0_18, %c48] : memref<8x2x256xf32, #tpu.memory_space<vmem>>, vector<8x1x16xf32>
    %44 = vector.shape_cast %43 : vector<8x1x16xf32> to vector<8x16xf32>
    %45 = vector.shape_cast %42 : vector<8x16xf32> to vector<8x1x16xf32>
    tpu.vector_store %arg7[%c0_17, %c0_18, %c48], %45 {strides = array<i32>} : memref<8x2x256xf32, #tpu.memory_space<vmem>>, vector<8x1x16xf32>,
    %46 = vector.extract_strided_slice %25 {offsets = [0, 4, 0], sizes = [8, 1, 16], strides = [1, 1, 1]} : vector<8x16x16xf32> to vector<8x1x16xf32>
    %47 = vector.shape_cast %46 : vector<8x1x16xf32> to vector<8x16xf32>
    %c0_19 = arith.constant 0 : index
    %c0_20 = arith.constant 0 : index
    %c64 = arith.constant 64 : index
    %48 = vector.load %arg7[%c0_19, %c0_20, %c64] : memref<8x2x256xf32, #tpu.memory_space<vmem>>, vector<8x1x16xf32>
    %49 = vector.shape_cast %48 : vector<8x1x16xf32> to vector<8x16xf32>
    %50 = vector.shape_cast %47 : vector<8x16xf32> to vector<8x1x16xf32>
    tpu.vector_store %arg7[%c0_19, %c0_20, %c64], %50 {strides = array<i32>} : memref<8x2x256xf32, #tpu.memory_space<vmem>>, vector<8x1x16xf32>,
    %51 = vector.extract_strided_slice %25 {offsets = [0, 5, 0], sizes = [8, 1, 16], strides = [1, 1, 1]} : vector<8x16x16xf32> to vector<8x1x16xf32>
    %52 = vector.shape_cast %51 : vector<8x1x16xf32> to vector<8x16xf32>
    %c0_21 = arith.constant 0 : index
    %c0_22 = arith.constant 0 : index
    %c80 = arith.constant 80 : index
    %53 = vector.load %arg7[%c0_21, %c0_22, %c80] : memref<8x2x256xf32, #tpu.memory_space<vmem>>, vector<8x1x16xf32>
    %54 = vector.shape_cast %53 : vector<8x1x16xf32> to vector<8x16xf32>
    %55 = vector.shape_cast %52 : vector<8x16xf32> to vector<8x1x16xf32>
    tpu.vector_store %arg7[%c0_21, %c0_22, %c80], %55 {strides = array<i32>} : memref<8x2x256xf32, #tpu.memory_space<vmem>>, vector<8x1x16xf32>,
    %56 = vector.extract_strided_slice %25 {offsets = [0, 6, 0], sizes = [8, 1, 16], strides = [1, 1, 1]} : vector<8x16x16xf32> to vector<8x1x16xf32>
    %57 = vector.shape_cast %56 : vector<8x1x16xf32> to vector<8x16xf32>
    %c0_23 = arith.constant 0 : index
    %c0_24 = arith.constant 0 : index
    %c96 = arith.constant 96 : index
    %58 = vector.load %arg7[%c0_23, %c0_24, %c96] : memref<8x2x256xf32, #tpu.memory_space<vmem>>, vector<8x1x16xf32>
    %59 = vector.shape_cast %58 : vector<8x1x16xf32> to vector<8x16xf32>
    %60 = vector.shape_cast %57 : vector<8x16xf32> to vector<8x1x16xf32>
    tpu.vector_store %arg7[%c0_23, %c0_24, %c96], %60 {strides = array<i32>} : memref<8x2x256xf32, #tpu.memory_space<vmem>>, vector<8x1x16xf32>,
    %61 = vector.extract_strided_slice %25 {offsets = [0, 7, 0], sizes = [8, 1, 16], strides = [1, 1, 1]} : vector<8x16x16xf32> to vector<8x1x16xf32>
    %62 = vector.shape_cast %61 : vector<8x1x16xf32> to vector<8x16xf32>
    %c0_25 = arith.constant 0 : index
    %c0_26 = arith.constant 0 : index
    %c112 = arith.constant 112 : index
    %63 = vector.load %arg7[%c0_25, %c0_26, %c112] : memref<8x2x256xf32, #tpu.memory_space<vmem>>, vector<8x1x16xf32>
    %64 = vector.shape_cast %63 : vector<8x1x16xf32> to vector<8x16xf32>
    %65 = vector.shape_cast %62 : vector<8x16xf32> to vector<8x1x16xf32>
    tpu.vector_store %arg7[%c0_25, %c0_26, %c112], %65 {strides = array<i32>} : memref<8x2x256xf32, #tpu.memory_space<vmem>>, vector<8x1x16xf32>,
    %66 = vector.extract_strided_slice %25 {offsets = [0, 8, 0], sizes = [8, 1, 16], strides = [1, 1, 1]} : vector<8x16x16xf32> to vector<8x1x16xf32>
    %67 = vector.shape_cast %66 : vector<8x1x16xf32> to vector<8x16xf32>
    %c0_27 = arith.constant 0 : index
    %c0_28 = arith.constant 0 : index
    %c128 = arith.constant 128 : index
    %68 = vector.load %arg7[%c0_27, %c0_28, %c128] : memref<8x2x256xf32, #tpu.memory_space<vmem>>, vector<8x1x16xf32>
    %69 = vector.shape_cast %68 : vector<8x1x16xf32> to vector<8x16xf32>
    %70 = vector.shape_cast %67 : vector<8x16xf32> to vector<8x1x16xf32>
    tpu.vector_store %arg7[%c0_27, %c0_28, %c128], %70 {strides = array<i32>} : memref<8x2x256xf32, #tpu.memory_space<vmem>>, vector<8x1x16xf32>,
    %71 = vector.extract_strided_slice %25 {offsets = [0, 9, 0], sizes = [8, 1, 16], strides = [1, 1, 1]} : vector<8x16x16xf32> to vector<8x1x16xf32>
    %72 = vector.shape_cast %71 : vector<8x1x16xf32> to vector<8x16xf32>
    %c0_29 = arith.constant 0 : index
    %c0_30 = arith.constant 0 : index
    %c144 = arith.constant 144 : index
    %73 = vector.load %arg7[%c0_29, %c0_30, %c144] : memref<8x2x256xf32, #tpu.memory_space<vmem>>, vector<8x1x16xf32>
    %74 = vector.shape_cast %73 : vector<8x1x16xf32> to vector<8x16xf32>
    %75 = vector.shape_cast %72 : vector<8x16xf32> to vector<8x1x16xf32>
    tpu.vector_store %arg7[%c0_29, %c0_30, %c144], %75 {strides = array<i32>} : memref<8x2x256xf32, #tpu.memory_space<vmem>>, vector<8x1x16xf32>,
    %76 = vector.extract_strided_slice %25 {offsets = [0, 10, 0], sizes = [8, 1, 16], strides = [1, 1, 1]} : vector<8x16x16xf32> to vector<8x1x16xf32>
    %77 = vector.shape_cast %76 : vector<8x1x16xf32> to vector<8x16xf32>
    %c0_31 = arith.constant 0 : index
    %c0_32 = arith.constant 0 : index
    %c160 = arith.constant 160 : index
    %78 = vector.load %arg7[%c0_31, %c0_32, %c160] : memref<8x2x256xf32, #tpu.memory_space<vmem>>, vector<8x1x16xf32>
    %79 = vector.shape_cast %78 : vector<8x1x16xf32> to vector<8x16xf32>
    %80 = vector.shape_cast %77 : vector<8x16xf32> to vector<8x1x16xf32>
    tpu.vector_store %arg7[%c0_31, %c0_32, %c160], %80 {strides = array<i32>} : memref<8x2x256xf32, #tpu.memory_space<vmem>>, vector<8x1x16xf32>,
    %81 = vector.extract_strided_slice %25 {offsets = [0, 11, 0], sizes = [8, 1, 16], strides = [1, 1, 1]} : vector<8x16x16xf32> to vector<8x1x16xf32>
    %82 = vector.shape_cast %81 : vector<8x1x16xf32> to vector<8x16xf32>
    %c0_33 = arith.constant 0 : index
    %c0_34 = arith.constant 0 : index
    %c176 = arith.constant 176 : index
    %83 = vector.load %arg7[%c0_33, %c0_34, %c176] : memref<8x2x256xf32, #tpu.memory_space<vmem>>, vector<8x1x16xf32>
    %84 = vector.shape_cast %83 : vector<8x1x16xf32> to vector<8x16xf32>
    %85 = vector.shape_cast %82 : vector<8x16xf32> to vector<8x1x16xf32>
    tpu.vector_store %arg7[%c0_33, %c0_34, %c176], %85 {strides = array<i32>} : memref<8x2x256xf32, #tpu.memory_space<vmem>>, vector<8x1x16xf32>,
    %86 = vector.extract_strided_slice %25 {offsets = [0, 12, 0], sizes = [8, 1, 16], strides = [1, 1, 1]} : vector<8x16x16xf32> to vector<8x1x16xf32>
    %87 = vector.shape_cast %86 : vector<8x1x16xf32> to vector<8x16xf32>
    %c0_35 = arith.constant 0 : index
    %c0_36 = arith.constant 0 : index
    %c192 = arith.constant 192 : index
    %88 = vector.load %arg7[%c0_35, %c0_36, %c192] : memref<8x2x256xf32, #tpu.memory_space<vmem>>, vector<8x1x16xf32>
    %89 = vector.shape_cast %88 : vector<8x1x16xf32> to vector<8x16xf32>
    %90 = vector.shape_cast %87 : vector<8x16xf32> to vector<8x1x16xf32>
    tpu.vector_store %arg7[%c0_35, %c0_36, %c192], %90 {strides = array<i32>} : memref<8x2x256xf32, #tpu.memory_space<vmem>>, vector<8x1x16xf32>,
    %91 = vector.extract_strided_slice %25 {offsets = [0, 13, 0], sizes = [8, 1, 16], strides = [1, 1, 1]} : vector<8x16x16xf32> to vector<8x1x16xf32>
    %92 = vector.shape_cast %91 : vector<8x1x16xf32> to vector<8x16xf32>
    %c0_37 = arith.constant 0 : index
    %c0_38 = arith.constant 0 : index
    %c208 = arith.constant 208 : index
    %93 = vector.load %arg7[%c0_37, %c0_38, %c208] : memref<8x2x256xf32, #tpu.memory_space<vmem>>, vector<8x1x16xf32>
    %94 = vector.shape_cast %93 : vector<8x1x16xf32> to vector<8x16xf32>
    %95 = vector.shape_cast %92 : vector<8x16xf32> to vector<8x1x16xf32>
    tpu.vector_store %arg7[%c0_37, %c0_38, %c208], %95 {strides = array<i32>} : memref<8x2x256xf32, #tpu.memory_space<vmem>>, vector<8x1x16xf32>,
    %96 = vector.extract_strided_slice %25 {offsets = [0, 14, 0], sizes = [8, 1, 16], strides = [1, 1, 1]} : vector<8x16x16xf32> to vector<8x1x16xf32>
    %97 = vector.shape_cast %96 : vector<8x1x16xf32> to vector<8x16xf32>
    %c0_39 = arith.constant 0 : index
    %c0_40 = arith.constant 0 : index
    %c224 = arith.constant 224 : index
    %98 = vector.load %arg7[%c0_39, %c0_40, %c224] : memref<8x2x256xf32, #tpu.memory_space<vmem>>, vector<8x1x16xf32>
    %99 = vector.shape_cast %98 : vector<8x1x16xf32> to vector<8x16xf32>
    %100 = vector.shape_cast %97 : vector<8x16xf32> to vector<8x1x16xf32>
    tpu.vector_store %arg7[%c0_39, %c0_40, %c224], %100 {strides = array<i32>} : memref<8x2x256xf32, #tpu.memory_space<vmem>>, vector<8x1x16xf32>,
    %101 = vector.extract_strided_slice %25 {offsets = [0, 15, 0], sizes = [8, 1, 16], strides = [1, 1, 1]} : vector<8x16x16xf32> to vector<8x1x16xf32>
    %102 = vector.shape_cast %101 : vector<8x1x16xf32> to vector<8x16xf32>
    %c0_41 = arith.constant 0 : index
    %c0_42 = arith.constant 0 : index
    %c240 = arith.constant 240 : index
    %103 = vector.load %arg7[%c0_41, %c0_42, %c240] : memref<8x2x256xf32, #tpu.memory_space<vmem>>, vector<8x1x16xf32>
    %104 = vector.shape_cast %103 : vector<8x1x16xf32> to vector<8x16xf32>
    %105 = vector.shape_cast %102 : vector<8x16xf32> to vector<8x1x16xf32>
    tpu.vector_store %arg7[%c0_41, %c0_42, %c240], %105 {strides = array<i32>} : memref<8x2x256xf32, #tpu.memory_space<vmem>>, vector<8x1x16xf32>,
    "tpu.trace_start"() <{level = 10 : i32, message = "bij,bjd->bid"}> : () -> ()
    %cst_43 = arith.constant dense<0.000000e+00> : vector<8x16x8xf32>
    %106 = tpu.matmul %25, %11, %cst_43 {dimension_numbers = #tpu.dot_dimension_numbers<[2], [1], [1], [2], [0, 0, 0, 1, 1, 2], [0], [0]>} : vector<8x16x16xf32>, vector<8x16x8xf32>, vector<8x16x8xf32> -> vector<8x16x8xf32>
    "tpu.trace_stop"() : () -> ()
    %107 = vector.shape_cast %106 : vector<8x16x8xf32> to vector<128x8xf32>
    %c0_44 = arith.constant 0 : index
    %c0_45 = arith.constant 0 : index
    %c0_46 = arith.constant 0 : index
    %108 = vector.load %arg4[%c0_44, %c0_45, %c0_46] : memref<2x8x4xf32, #tpu.memory_space<vmem>>, vector<1x8x4xf32>
    %109 = vector.shape_cast %108 : vector<1x8x4xf32> to vector<8x4xf32>
    %cst_47 = arith.constant dense<0.000000e+00> : vector<128x4xf32>
    %110 = tpu.matmul %107, %109, %cst_47 {dimension_numbers = #tpu.dot_dimension_numbers<[1], [0], [0], [1], [0, 0, 1, 1], [], []>} : vector<128x8xf32>, vector<8x4xf32>, vector<128x4xf32> -> vector<128x4xf32>
    %111 = arith.addf %5, %110 : vector<128x4xf32>
    %112 = vector.extract_strided_slice %4 {offsets = [0, 8], sizes = [128, 8], strides = [1, 1]} : vector<128x48xf32> to vector<128x8xf32>
    %113 = vector.extract_strided_slice %4 {offsets = [0, 24], sizes = [128, 8], strides = [1, 1]} : vector<128x48xf32> to vector<128x8xf32>
    %114 = vector.extract_strided_slice %4 {offsets = [0, 40], sizes = [128, 8], strides = [1, 1]} : vector<128x48xf32> to vector<128x8xf32>
    %115 = vector.shape_cast %112 : vector<128x8xf32> to vector<8x16x8xf32>
    %116 = vector.shape_cast %113 : vector<128x8xf32> to vector<8x16x8xf32>
    %117 = vector.shape_cast %114 : vector<128x8xf32> to vector<8x16x8xf32>
    "tpu.trace_start"() <{level = 10 : i32, message = "bid,bjd->bij"}> : () -> ()
    %cst_48 = arith.constant dense<0.000000e+00> : vector<8x16x16xf32>
    %118 = tpu.matmul %115, %116, %cst_48 {dimension_numbers = #tpu.dot_dimension_numbers<[2], [2], [1], [1], [0, 0, 0, 1, 1, 1], [0], [0]>} : vector<8x16x8xf32>, vector<8x16x8xf32>, vector<8x16x16xf32> -> vector<8x16x16xf32>
    "tpu.trace_stop"() : () -> ()
    %119 = vector.shape_cast %2 : vector<16x16xf32> to vector<1x16x16xf32>
    %120 = vector.broadcast %119 : vector<1x16x16xf32> to vector<8x16x16xf32>
    %121 = arith.addf %118, %120 : vector<8x16x16xf32>
    %cst_49 = arith.constant dense<0xFF800000> : vector<8x16xf32>
    %122 = vector.multi_reduction <maximumf>, %121, %cst_49 [2] : vector<8x16x16xf32> to vector<8x16xf32>
    %123 = vector.shape_cast %122 : vector<8x16xf32> to vector<8x16x1xf32>
    %124 = vector.broadcast %123 : vector<8x16x1xf32> to vector<8x16x16xf32>
    %125 = arith.subf %121, %124 : vector<8x16x16xf32>
    %126 = math.exp %125 : vector<8x16x16xf32>
    %cst_50 = arith.constant dense<0.000000e+00> : vector<8x16xf32>
    %127 = vector.multi_reduction <add>, %126, %cst_50 [2] : vector<8x16x16xf32> to vector<8x16xf32>
    %128 = vector.shape_cast %127 : vector<8x16xf32> to vector<8x16x1xf32>
    %129 = tpu.reciprocal %128 : vector<8x16x1xf32> -> vector<8x16x1xf32>
    %130 = vector.broadcast %129 : vector<8x16x1xf32> to vector<8x16x16xf32>
    %131 = arith.mulf %126, %130 : vector<8x16x16xf32>
    %132 = vector.extract_strided_slice %131 {offsets = [0, 0, 0], sizes = [8, 1, 16], strides = [1, 1, 1]} : vector<8x16x16xf32> to vector<8x1x16xf32>
    %133 = vector.shape_cast %132 : vector<8x1x16xf32> to vector<8x16xf32>
    %c0_51 = arith.constant 0 : index
    %c1 = arith.constant 1 : index
    %c0_52 = arith.constant 0 : index
    %134 = vector.load %arg7[%c0_51, %c1, %c0_52] : memref<8x2x256xf32, #tpu.memory_space<vmem>>, vector<8x1x16xf32>
    %135 = vector.shape_cast %134 : vector<8x1x16xf32> to vector<8x16xf32>
    %136 = vector.shape_cast %133 : vector<8x16xf32> to vector<8x1x16xf32>
    tpu.vector_store %arg7[%c0_51, %c1, %c0_52], %136 {strides = array<i32>} : memref<8x2x256xf32, #tpu.memory_space<vmem>>, vector<8x1x16xf32>,
    %137 = vector.extract_strided_slice %131 {offsets = [0, 1, 0], sizes = [8, 1, 16], strides = [1, 1, 1]} : vector<8x16x16xf32> to vector<8x1x16xf32>
    %138 = vector.shape_cast %137 : vector<8x1x16xf32> to vector<8x16xf32>
    %c0_53 = arith.constant 0 : index
    %c1_54 = arith.constant 1 : index
    %c16_55 = arith.constant 16 : index
    %139 = vector.load %arg7[%c0_53, %c1_54, %c16_55] : memref<8x2x256xf32, #tpu.memory_space<vmem>>, vector<8x1x16xf32>
    %140 = vector.shape_cast %139 : vector<8x1x16xf32> to vector<8x16xf32>
    %141 = vector.shape_cast %138 : vector<8x16xf32> to vector<8x1x16xf32>
    tpu.vector_store %arg7[%c0_53, %c1_54, %c16_55], %141 {strides = array<i32>} : memref<8x2x256xf32, #tpu.memory_space<vmem>>, vector<8x1x16xf32>,
    %142 = vector.extract_strided_slice %131 {offsets = [0, 2, 0], sizes = [8, 1, 16], strides = [1, 1, 1]} : vector<8x16x16xf32> to vector<8x1x16xf32>
    %143 = vector.shape_cast %142 : vector<8x1x16xf32> to vector<8x16xf32>
    %c0_56 = arith.constant 0 : index
    %c1_57 = arith.constant 1 : index
    %c32_58 = arith.constant 32 : index
    %144 = vector.load %arg7[%c0_56, %c1_57, %c32_58] : memref<8x2x256xf32, #tpu.memory_space<vmem>>, vector<8x1x16xf32>
    %145 = vector.shape_cast %144 : vector<8x1x16xf32> to vector<8x16xf32>
    %146 = vector.shape_cast %143 : vector<8x16xf32> to vector<8x1x16xf32>
    tpu.vector_store %arg7[%c0_56, %c1_57, %c32_58], %146 {strides = array<i32>} : memref<8x2x256xf32, #tpu.memory_space<vmem>>, vector<8x1x16xf32>,
    %147 = vector.extract_strided_slice %131 {offsets = [0, 3, 0], sizes = [8, 1, 16], strides = [1, 1, 1]} : vector<8x16x16xf32> to vector<8x1x16xf32>
    %148 = vector.shape_cast %147 : vector<8x1x16xf32> to vector<8x16xf32>
    %c0_59 = arith.constant 0 : index
    %c1_60 = arith.constant 1 : index
    %c48_61 = arith.constant 48 : index
    %149 = vector.load %arg7[%c0_59, %c1_60, %c48_61] : memref<8x2x256xf32, #tpu.memory_space<vmem>>, vector<8x1x16xf32>
    %150 = vector.shape_cast %149 : vector<8x1x16xf32> to vector<8x16xf32>
    %151 = vector.shape_cast %148 : vector<8x16xf32> to vector<8x1x16xf32>
    tpu.vector_store %arg7[%c0_59, %c1_60, %c48_61], %151 {strides = array<i32>} : memref<8x2x256xf32, #tpu.memory_space<vmem>>, vector<8x1x16xf32>,
    %152 = vector.extract_strided_slice %131 {offsets = [0, 4, 0], sizes = [8, 1, 16], strides = [1, 1, 1]} : vector<8x16x16xf32> to vector<8x1x16xf32>
    %153 = vector.shape_cast %152 : vector<8x1x16xf32> to vector<8x16xf32>
    %c0_62 = arith.constant 0 : index
    %c1_63 = arith.constant 1 : index
    %c64_64 = arith.constant 64 : index
    %154 = vector.load %arg7[%c0_62, %c1_63, %c64_64] : memref<8x2x256xf32, #tpu.memory_space<vmem>>, vector<8x1x16xf32>
    %155 = vector.shape_cast %154 : vector<8x1x16xf32> to vector<8x16xf32>
    %156 = vector.shape_cast %153 : vector<8x16xf32> to vector<8x1x16xf32>
    tpu.vector_store %arg7[%c0_62, %c1_63, %c64_64], %156 {strides = array<i32>} : memref<8x2x256xf32, #tpu.memory_space<vmem>>, vector<8x1x16xf32>,
    %157 = vector.extract_strided_slice %131 {offsets = [0, 5, 0], sizes = [8, 1, 16], strides = [1, 1, 1]} : vector<8x16x16xf32> to vector<8x1x16xf32>
    %158 = vector.shape_cast %157 : vector<8x1x16xf32> to vector<8x16xf32>
    %c0_65 = arith.constant 0 : index
    %c1_66 = arith.constant 1 : index
    %c80_67 = arith.constant 80 : index
    %159 = vector.load %arg7[%c0_65, %c1_66, %c80_67] : memref<8x2x256xf32, #tpu.memory_space<vmem>>, vector<8x1x16xf32>
    %160 = vector.shape_cast %159 : vector<8x1x16xf32> to vector<8x16xf32>
    %161 = vector.shape_cast %158 : vector<8x16xf32> to vector<8x1x16xf32>
    tpu.vector_store %arg7[%c0_65, %c1_66, %c80_67], %161 {strides = array<i32>} : memref<8x2x256xf32, #tpu.memory_space<vmem>>, vector<8x1x16xf32>,
    %162 = vector.extract_strided_slice %131 {offsets = [0, 6, 0], sizes = [8, 1, 16], strides = [1, 1, 1]} : vector<8x16x16xf32> to vector<8x1x16xf32>
    %163 = vector.shape_cast %162 : vector<8x1x16xf32> to vector<8x16xf32>
    %c0_68 = arith.constant 0 : index
    %c1_69 = arith.constant 1 : index
    %c96_70 = arith.constant 96 : index
    %164 = vector.load %arg7[%c0_68, %c1_69, %c96_70] : memref<8x2x256xf32, #tpu.memory_space<vmem>>, vector<8x1x16xf32>
    %165 = vector.shape_cast %164 : vector<8x1x16xf32> to vector<8x16xf32>
    %166 = vector.shape_cast %163 : vector<8x16xf32> to vector<8x1x16xf32>
    tpu.vector_store %arg7[%c0_68, %c1_69, %c96_70], %166 {strides = array<i32>} : memref<8x2x256xf32, #tpu.memory_space<vmem>>, vector<8x1x16xf32>,
    %167 = vector.extract_strided_slice %131 {offsets = [0, 7, 0], sizes = [8, 1, 16], strides = [1, 1, 1]} : vector<8x16x16xf32> to vector<8x1x16xf32>
    %168 = vector.shape_cast %167 : vector<8x1x16xf32> to vector<8x16xf32>
    %c0_71 = arith.constant 0 : index
    %c1_72 = arith.constant 1 : index
    %c112_73 = arith.constant 112 : index
    %169 = vector.load %arg7[%c0_71, %c1_72, %c112_73] : memref<8x2x256xf32, #tpu.memory_space<vmem>>, vector<8x1x16xf32>
    %170 = vector.shape_cast %169 : vector<8x1x16xf32> to vector<8x16xf32>
    %171 = vector.shape_cast %168 : vector<8x16xf32> to vector<8x1x16xf32>
    tpu.vector_store %arg7[%c0_71, %c1_72, %c112_73], %171 {strides = array<i32>} : memref<8x2x256xf32, #tpu.memory_space<vmem>>, vector<8x1x16xf32>,
    %172 = vector.extract_strided_slice %131 {offsets = [0, 8, 0], sizes = [8, 1, 16], strides = [1, 1, 1]} : vector<8x16x16xf32> to vector<8x1x16xf32>
    %173 = vector.shape_cast %172 : vector<8x1x16xf32> to vector<8x16xf32>
    %c0_74 = arith.constant 0 : index
    %c1_75 = arith.constant 1 : index
    %c128_76 = arith.constant 128 : index
    %174 = vector.load %arg7[%c0_74, %c1_75, %c128_76] : memref<8x2x256xf32, #tpu.memory_space<vmem>>, vector<8x1x16xf32>
    %175 = vector.shape_cast %174 : vector<8x1x16xf32> to vector<8x16xf32>
    %176 = vector.shape_cast %173 : vector<8x16xf32> to vector<8x1x16xf32>
    tpu.vector_store %arg7[%c0_74, %c1_75, %c128_76], %176 {strides = array<i32>} : memref<8x2x256xf32, #tpu.memory_space<vmem>>, vector<8x1x16xf32>,
    %177 = vector.extract_strided_slice %131 {offsets = [0, 9, 0], sizes = [8, 1, 16], strides = [1, 1, 1]} : vector<8x16x16xf32> to vector<8x1x16xf32>
    %178 = vector.shape_cast %177 : vector<8x1x16xf32> to vector<8x16xf32>
    %c0_77 = arith.constant 0 : index
    %c1_78 = arith.constant 1 : index
    %c144_79 = arith.constant 144 : index
    %179 = vector.load %arg7[%c0_77, %c1_78, %c144_79] : memref<8x2x256xf32, #tpu.memory_space<vmem>>, vector<8x1x16xf32>
    %180 = vector.shape_cast %179 : vector<8x1x16xf32> to vector<8x16xf32>
    %181 = vector.shape_cast %178 : vector<8x16xf32> to vector<8x1x16xf32>
    tpu.vector_store %arg7[%c0_77, %c1_78, %c144_79], %181 {strides = array<i32>} : memref<8x2x256xf32, #tpu.memory_space<vmem>>, vector<8x1x16xf32>,
    %182 = vector.extract_strided_slice %131 {offsets = [0, 10, 0], sizes = [8, 1, 16], strides = [1, 1, 1]} : vector<8x16x16xf32> to vector<8x1x16xf32>
    %183 = vector.shape_cast %182 : vector<8x1x16xf32> to vector<8x16xf32>
    %c0_80 = arith.constant 0 : index
    %c1_81 = arith.constant 1 : index
    %c160_82 = arith.constant 160 : index
    %184 = vector.load %arg7[%c0_80, %c1_81, %c160_82] : memref<8x2x256xf32, #tpu.memory_space<vmem>>, vector<8x1x16xf32>
    %185 = vector.shape_cast %184 : vector<8x1x16xf32> to vector<8x16xf32>
    %186 = vector.shape_cast %183 : vector<8x16xf32> to vector<8x1x16xf32>
    tpu.vector_store %arg7[%c0_80, %c1_81, %c160_82], %186 {strides = array<i32>} : memref<8x2x256xf32, #tpu.memory_space<vmem>>, vector<8x1x16xf32>,
    %187 = vector.extract_strided_slice %131 {offsets = [0, 11, 0], sizes = [8, 1, 16], strides = [1, 1, 1]} : vector<8x16x16xf32> to vector<8x1x16xf32>
    %188 = vector.shape_cast %187 : vector<8x1x16xf32> to vector<8x16xf32>
    %c0_83 = arith.constant 0 : index
    %c1_84 = arith.constant 1 : index
    %c176_85 = arith.constant 176 : index
    %189 = vector.load %arg7[%c0_83, %c1_84, %c176_85] : memref<8x2x256xf32, #tpu.memory_space<vmem>>, vector<8x1x16xf32>
    %190 = vector.shape_cast %189 : vector<8x1x16xf32> to vector<8x16xf32>
    %191 = vector.shape_cast %188 : vector<8x16xf32> to vector<8x1x16xf32>
    tpu.vector_store %arg7[%c0_83, %c1_84, %c176_85], %191 {strides = array<i32>} : memref<8x2x256xf32, #tpu.memory_space<vmem>>, vector<8x1x16xf32>,
    %192 = vector.extract_strided_slice %131 {offsets = [0, 12, 0], sizes = [8, 1, 16], strides = [1, 1, 1]} : vector<8x16x16xf32> to vector<8x1x16xf32>
    %193 = vector.shape_cast %192 : vector<8x1x16xf32> to vector<8x16xf32>
    %c0_86 = arith.constant 0 : index
    %c1_87 = arith.constant 1 : index
    %c192_88 = arith.constant 192 : index
    %194 = vector.load %arg7[%c0_86, %c1_87, %c192_88] : memref<8x2x256xf32, #tpu.memory_space<vmem>>, vector<8x1x16xf32>
    %195 = vector.shape_cast %194 : vector<8x1x16xf32> to vector<8x16xf32>
    %196 = vector.shape_cast %193 : vector<8x16xf32> to vector<8x1x16xf32>
    tpu.vector_store %arg7[%c0_86, %c1_87, %c192_88], %196 {strides = array<i32>} : memref<8x2x256xf32, #tpu.memory_space<vmem>>, vector<8x1x16xf32>,
    %197 = vector.extract_strided_slice %131 {offsets = [0, 13, 0], sizes = [8, 1, 16], strides = [1, 1, 1]} : vector<8x16x16xf32> to vector<8x1x16xf32>
    %198 = vector.shape_cast %197 : vector<8x1x16xf32> to vector<8x16xf32>
    %c0_89 = arith.constant 0 : index
    %c1_90 = arith.constant 1 : index
    %c208_91 = arith.constant 208 : index
    %199 = vector.load %arg7[%c0_89, %c1_90, %c208_91] : memref<8x2x256xf32, #tpu.memory_space<vmem>>, vector<8x1x16xf32>
    %200 = vector.shape_cast %199 : vector<8x1x16xf32> to vector<8x16xf32>
    %201 = vector.shape_cast %198 : vector<8x16xf32> to vector<8x1x16xf32>
    tpu.vector_store %arg7[%c0_89, %c1_90, %c208_91], %201 {strides = array<i32>} : memref<8x2x256xf32, #tpu.memory_space<vmem>>, vector<8x1x16xf32>,
    %202 = vector.extract_strided_slice %131 {offsets = [0, 14, 0], sizes = [8, 1, 16], strides = [1, 1, 1]} : vector<8x16x16xf32> to vector<8x1x16xf32>
    %203 = vector.shape_cast %202 : vector<8x1x16xf32> to vector<8x16xf32>
    %c0_92 = arith.constant 0 : index
    %c1_93 = arith.constant 1 : index
    %c224_94 = arith.constant 224 : index
    %204 = vector.load %arg7[%c0_92, %c1_93, %c224_94] : memref<8x2x256xf32, #tpu.memory_space<vmem>>, vector<8x1x16xf32>
    %205 = vector.shape_cast %204 : vector<8x1x16xf32> to vector<8x16xf32>
    %206 = vector.shape_cast %203 : vector<8x16xf32> to vector<8x1x16xf32>
    tpu.vector_store %arg7[%c0_92, %c1_93, %c224_94], %206 {strides = array<i32>} : memref<8x2x256xf32, #tpu.memory_space<vmem>>, vector<8x1x16xf32>,
    %207 = vector.extract_strided_slice %131 {offsets = [0, 15, 0], sizes = [8, 1, 16], strides = [1, 1, 1]} : vector<8x16x16xf32> to vector<8x1x16xf32>
    %208 = vector.shape_cast %207 : vector<8x1x16xf32> to vector<8x16xf32>
    %c0_95 = arith.constant 0 : index
    %c1_96 = arith.constant 1 : index
    %c240_97 = arith.constant 240 : index
    %209 = vector.load %arg7[%c0_95, %c1_96, %c240_97] : memref<8x2x256xf32, #tpu.memory_space<vmem>>, vector<8x1x16xf32>
    %210 = vector.shape_cast %209 : vector<8x1x16xf32> to vector<8x16xf32>
    %211 = vector.shape_cast %208 : vector<8x16xf32> to vector<8x1x16xf32>
    tpu.vector_store %arg7[%c0_95, %c1_96, %c240_97], %211 {strides = array<i32>} : memref<8x2x256xf32, #tpu.memory_space<vmem>>, vector<8x1x16xf32>,
    "tpu.trace_start"() <{level = 10 : i32, message = "bij,bjd->bid"}> : () -> ()
    %cst_98 = arith.constant dense<0.000000e+00> : vector<8x16x8xf32>
    %212 = tpu.matmul %131, %117, %cst_98 {dimension_numbers = #tpu.dot_dimension_numbers<[2], [1], [1], [2], [0, 0, 0, 1, 1, 2], [0], [0]>} : vector<8x16x16xf32>, vector<8x16x8xf32>, vector<8x16x8xf32> -> vector<8x16x8xf32>
    "tpu.trace_stop"() : () -> ()
    %213 = vector.shape_cast %212 : vector<8x16x8xf32> to vector<128x8xf32>
    %c1_99 = arith.constant 1 : index
    %c0_100 = arith.constant 0 : index
    %c0_101 = arith.constant 0 : index
    %214 = vector.load %arg4[%c1_99, %c0_100, %c0_101] : memref<2x8x4xf32, #tpu.memory_space<vmem>>, vector<1x8x4xf32>
    %215 = vector.shape_cast %214 : vector<1x8x4xf32> to vector<8x4xf32>
    %cst_102 = arith.constant dense<0.000000e+00> : vector<128x4xf32>
    %216 = tpu.matmul %213, %215, %cst_102 {dimension_numbers = #tpu.dot_dimension_numbers<[1], [0], [0], [1], [0, 0, 1, 1], [], []>} : vector<128x8xf32>, vector<8x4xf32>, vector<128x4xf32> -> vector<128x4xf32>
    %217 = arith.addf %111, %216 : vector<128x4xf32>
    %c0_103 = arith.constant 0 : index
    %c0_104 = arith.constant 0 : index
    %218 = vector.load %arg5[%c0_103, %c0_104] : memref<1x4xf32, #tpu.memory_space<vmem>>, vector<1x4xf32>
    %219 = vector.broadcast %218 : vector<1x4xf32> to vector<128x4xf32>
    %220 = arith.addf %217, %219 : vector<128x4xf32>
    %221 = vector.shape_cast %220 : vector<128x4xf32> to vector<8x16x4xf32>
    %222 = vector.extract_strided_slice %221 {offsets = [0, 0, 0], sizes = [8, 1, 4], strides = [1, 1, 1]} : vector<8x16x4xf32> to vector<8x1x4xf32>
    %223 = vector.shape_cast %222 : vector<8x1x4xf32> to vector<8x4xf32>
    %c0_105 = arith.constant 0 : index
    %c0_106 = arith.constant 0 : index
    %224 = vector.load %arg6[%c0_105, %c0_106] : memref<8x64xf32, #tpu.memory_space<vmem>>, vector<8x4xf32>
    tpu.vector_store %arg6[%c0_105, %c0_106], %223 {strides = array<i32>} : memref<8x64xf32, #tpu.memory_space<vmem>>, vector<8x4xf32>,
    %225 = vector.extract_strided_slice %221 {offsets = [0, 1, 0], sizes = [8, 1, 4], strides = [1, 1, 1]} : vector<8x16x4xf32> to vector<8x1x4xf32>
    %226 = vector.shape_cast %225 : vector<8x1x4xf32> to vector<8x4xf32>
    %c0_107 = arith.constant 0 : index
    %c4 = arith.constant 4 : index
    %227 = vector.load %arg6[%c0_107, %c4] : memref<8x64xf32, #tpu.memory_space<vmem>>, vector<8x4xf32>
    tpu.vector_store %arg6[%c0_107, %c4], %226 {strides = array<i32>} : memref<8x64xf32, #tpu.memory_space<vmem>>, vector<8x4xf32>,
    %228 = vector.extract_strided_slice %221 {offsets = [0, 2, 0], sizes = [8, 1, 4], strides = [1, 1, 1]} : vector<8x16x4xf32> to vector<8x1x4xf32>
    %229 = vector.shape_cast %228 : vector<8x1x4xf32> to vector<8x4xf32>
    %c0_108 = arith.constant 0 : index
    %c8 = arith.constant 8 : index
    %230 = vector.load %arg6[%c0_108, %c8] : memref<8x64xf32, #tpu.memory_space<vmem>>, vector<8x4xf32>
    tpu.vector_store %arg6[%c0_108, %c8], %229 {strides = array<i32>} : memref<8x64xf32, #tpu.memory_space<vmem>>, vector<8x4xf32>,
    %231 = vector.extract_strided_slice %221 {offsets = [0, 3, 0], sizes = [8, 1, 4], strides = [1, 1, 1]} : vector<8x16x4xf32> to vector<8x1x4xf32>
    %232 = vector.shape_cast %231 : vector<8x1x4xf32> to vector<8x4xf32>
    %c0_109 = arith.constant 0 : index
    %c12 = arith.constant 12 : index
    %233 = vector.load %arg6[%c0_109, %c12] : memref<8x64xf32, #tpu.memory_space<vmem>>, vector<8x4xf32>
    tpu.vector_store %arg6[%c0_109, %c12], %232 {strides = array<i32>} : memref<8x64xf32, #tpu.memory_space<vmem>>, vector<8x4xf32>,
    %234 = vector.extract_strided_slice %221 {offsets = [0, 4, 0], sizes = [8, 1, 4], strides = [1, 1, 1]} : vector<8x16x4xf32> to vector<8x1x4xf32>
    %235 = vector.shape_cast %234 : vector<8x1x4xf32> to vector<8x4xf32>
    %c0_110 = arith.constant 0 : index
    %c16_111 = arith.constant 16 : index
    %236 = vector.load %arg6[%c0_110, %c16_111] : memref<8x64xf32, #tpu.memory_space<vmem>>, vector<8x4xf32>
    tpu.vector_store %arg6[%c0_110, %c16_111], %235 {strides = array<i32>} : memref<8x64xf32, #tpu.memory_space<vmem>>, vector<8x4xf32>,
    %237 = vector.extract_strided_slice %221 {offsets = [0, 5, 0], sizes = [8, 1, 4], strides = [1, 1, 1]} : vector<8x16x4xf32> to vector<8x1x4xf32>
    %238 = vector.shape_cast %237 : vector<8x1x4xf32> to vector<8x4xf32>
    %c0_112 = arith.constant 0 : index
    %c20 = arith.constant 20 : index
    %239 = vector.load %arg6[%c0_112, %c20] : memref<8x64xf32, #tpu.memory_space<vmem>>, vector<8x4xf32>
    tpu.vector_store %arg6[%c0_112, %c20], %238 {strides = array<i32>} : memref<8x64xf32, #tpu.memory_space<vmem>>, vector<8x4xf32>,
    %240 = vector.extract_strided_slice %221 {offsets = [0, 6, 0], sizes = [8, 1, 4], strides = [1, 1, 1]} : vector<8x16x4xf32> to vector<8x1x4xf32>
    %241 = vector.shape_cast %240 : vector<8x1x4xf32> to vector<8x4xf32>
    %c0_113 = arith.constant 0 : index
    %c24 = arith.constant 24 : index
    %242 = vector.load %arg6[%c0_113, %c24] : memref<8x64xf32, #tpu.memory_space<vmem>>, vector<8x4xf32>
    tpu.vector_store %arg6[%c0_113, %c24], %241 {strides = array<i32>} : memref<8x64xf32, #tpu.memory_space<vmem>>, vector<8x4xf32>,
    %243 = vector.extract_strided_slice %221 {offsets = [0, 7, 0], sizes = [8, 1, 4], strides = [1, 1, 1]} : vector<8x16x4xf32> to vector<8x1x4xf32>
    %244 = vector.shape_cast %243 : vector<8x1x4xf32> to vector<8x4xf32>
    %c0_114 = arith.constant 0 : index
    %c28 = arith.constant 28 : index
    %245 = vector.load %arg6[%c0_114, %c28] : memref<8x64xf32, #tpu.memory_space<vmem>>, vector<8x4xf32>
    tpu.vector_store %arg6[%c0_114, %c28], %244 {strides = array<i32>} : memref<8x64xf32, #tpu.memory_space<vmem>>, vector<8x4xf32>,
    %246 = vector.extract_strided_slice %221 {offsets = [0, 8, 0], sizes = [8, 1, 4], strides = [1, 1, 1]} : vector<8x16x4xf32> to vector<8x1x4xf32>
    %247 = vector.shape_cast %246 : vector<8x1x4xf32> to vector<8x4xf32>
    %c0_115 = arith.constant 0 : index
    %c32_116 = arith.constant 32 : index
    %248 = vector.load %arg6[%c0_115, %c32_116] : memref<8x64xf32, #tpu.memory_space<vmem>>, vector<8x4xf32>
    tpu.vector_store %arg6[%c0_115, %c32_116], %247 {strides = array<i32>} : memref<8x64xf32, #tpu.memory_space<vmem>>, vector<8x4xf32>,
    %249 = vector.extract_strided_slice %221 {offsets = [0, 9, 0], sizes = [8, 1, 4], strides = [1, 1, 1]} : vector<8x16x4xf32> to vector<8x1x4xf32>
    %250 = vector.shape_cast %249 : vector<8x1x4xf32> to vector<8x4xf32>
    %c0_117 = arith.constant 0 : index
    %c36 = arith.constant 36 : index
    %251 = vector.load %arg6[%c0_117, %c36] : memref<8x64xf32, #tpu.memory_space<vmem>>, vector<8x4xf32>
    tpu.vector_store %arg6[%c0_117, %c36], %250 {strides = array<i32>} : memref<8x64xf32, #tpu.memory_space<vmem>>, vector<8x4xf32>,
    %252 = vector.extract_strided_slice %221 {offsets = [0, 10, 0], sizes = [8, 1, 4], strides = [1, 1, 1]} : vector<8x16x4xf32> to vector<8x1x4xf32>
    %253 = vector.shape_cast %252 : vector<8x1x4xf32> to vector<8x4xf32>
    %c0_118 = arith.constant 0 : index
    %c40 = arith.constant 40 : index
    %254 = vector.load %arg6[%c0_118, %c40] : memref<8x64xf32, #tpu.memory_space<vmem>>, vector<8x4xf32>
    tpu.vector_store %arg6[%c0_118, %c40], %253 {strides = array<i32>} : memref<8x64xf32, #tpu.memory_space<vmem>>, vector<8x4xf32>,
    %255 = vector.extract_strided_slice %221 {offsets = [0, 11, 0], sizes = [8, 1, 4], strides = [1, 1, 1]} : vector<8x16x4xf32> to vector<8x1x4xf32>
    %256 = vector.shape_cast %255 : vector<8x1x4xf32> to vector<8x4xf32>
    %c0_119 = arith.constant 0 : index
    %c44 = arith.constant 44 : index
    %257 = vector.load %arg6[%c0_119, %c44] : memref<8x64xf32, #tpu.memory_space<vmem>>, vector<8x4xf32>
    tpu.vector_store %arg6[%c0_119, %c44], %256 {strides = array<i32>} : memref<8x64xf32, #tpu.memory_space<vmem>>, vector<8x4xf32>,
    %258 = vector.extract_strided_slice %221 {offsets = [0, 12, 0], sizes = [8, 1, 4], strides = [1, 1, 1]} : vector<8x16x4xf32> to vector<8x1x4xf32>
    %259 = vector.shape_cast %258 : vector<8x1x4xf32> to vector<8x4xf32>
    %c0_120 = arith.constant 0 : index
    %c48_121 = arith.constant 48 : index
    %260 = vector.load %arg6[%c0_120, %c48_121] : memref<8x64xf32, #tpu.memory_space<vmem>>, vector<8x4xf32>
    tpu.vector_store %arg6[%c0_120, %c48_121], %259 {strides = array<i32>} : memref<8x64xf32, #tpu.memory_space<vmem>>, vector<8x4xf32>,
    %261 = vector.extract_strided_slice %221 {offsets = [0, 13, 0], sizes = [8, 1, 4], strides = [1, 1, 1]} : vector<8x16x4xf32> to vector<8x1x4xf32>
    %262 = vector.shape_cast %261 : vector<8x1x4xf32> to vector<8x4xf32>
    %c0_122 = arith.constant 0 : index
    %c52 = arith.constant 52 : index
    %263 = vector.load %arg6[%c0_122, %c52] : memref<8x64xf32, #tpu.memory_space<vmem>>, vector<8x4xf32>
    tpu.vector_store %arg6[%c0_122, %c52], %262 {strides = array<i32>} : memref<8x64xf32, #tpu.memory_space<vmem>>, vector<8x4xf32>,
    %264 = vector.extract_strided_slice %221 {offsets = [0, 14, 0], sizes = [8, 1, 4], strides = [1, 1, 1]} : vector<8x16x4xf32> to vector<8x1x4xf32>
    %265 = vector.shape_cast %264 : vector<8x1x4xf32> to vector<8x4xf32>
    %c0_123 = arith.constant 0 : index
    %c56 = arith.constant 56 : index
    %266 = vector.load %arg6[%c0_123, %c56] : memref<8x64xf32, #tpu.memory_space<vmem>>, vector<8x4xf32>
    tpu.vector_store %arg6[%c0_123, %c56], %265 {strides = array<i32>} : memref<8x64xf32, #tpu.memory_space<vmem>>, vector<8x4xf32>,
    %267 = vector.extract_strided_slice %221 {offsets = [0, 15, 0], sizes = [8, 1, 4], strides = [1, 1, 1]} : vector<8x16x4xf32> to vector<8x1x4xf32>
    %268 = vector.shape_cast %267 : vector<8x1x4xf32> to vector<8x4xf32>
    %c0_124 = arith.constant 0 : index
    %c60 = arith.constant 60 : index
    %269 = vector.load %arg6[%c0_124, %c60] : memref<8x64xf32, #tpu.memory_space<vmem>>, vector<8x4xf32>
    tpu.vector_store %arg6[%c0_124, %c60], %268 {strides = array<i32>} : memref<8x64xf32, #tpu.memory_space<vmem>>, vector<8x4xf32>,
    return
  }
  func.func @transform_0(%arg0: i32) -> (i32, i32, i32) {
    %c0_i32 = arith.constant 0 : i32
    %c0_i32_0 = arith.constant 0 : i32
    %c0_i32_1 = arith.constant 0 : i32
    return %arg0, %c0_i32, %c0_i32_0 : i32, i32, i32
  }
  func.func @transform_1(%arg0: i32) -> (i32, i32) {
    %c0_i32 = arith.constant 0 : i32
    %c0_i32_0 = arith.constant 0 : i32
    %c0_i32_1 = arith.constant 0 : i32
    return %c0_i32, %c0_i32_0 : i32, i32
  }
  func.func @transform_2(%arg0: i32) -> (i32, i32) {
    %c0_i32 = arith.constant 0 : i32
    %c0_i32_0 = arith.constant 0 : i32
    %c0_i32_1 = arith.constant 0 : i32
    return %c0_i32, %c0_i32_0 : i32, i32
  }
  func.func @transform_3(%arg0: i32) -> (i32, i32, i32) {
    %c0_i32 = arith.constant 0 : i32
    %c0_i32_0 = arith.constant 0 : i32
    %c0_i32_1 = arith.constant 0 : i32
    %c0_i32_2 = arith.constant 0 : i32
    return %c0_i32, %c0_i32_0, %c0_i32_1 : i32, i32, i32
  }
  func.func @transform_4(%arg0: i32) -> (i32, i32) {
    %c0_i32 = arith.constant 0 : i32
    %c0_i32_0 = arith.constant 0 : i32
    %c0_i32_1 = arith.constant 0 : i32
    return %c0_i32, %c0_i32_0 : i32, i32
  }
  func.func @transform_5(%arg0: i32) -> (i32, i32) {
    %c0_i32 = arith.constant 0 : i32
    %c0_i32_0 = arith.constant 0 : i32
    return %arg0, %c0_i32 : i32, i32
  }
  func.func @transform_6(%arg0: i32) -> (i32, i32, i32) {
    %c0_i32 = arith.constant 0 : i32
    %c0_i32_0 = arith.constant 0 : i32
    %c0_i32_1 = arith.constant 0 : i32
    return %arg0, %c0_i32, %c0_i32_0 : i32, i32, i32
  }
}

</mosaic_0001>

<bundles_post_ra>
// kernel: tpu_custom_call.1
= control target key start
LH: loop header
LB: loop body
LE: loop exit
PB: predicated region body
PF: predicated region fallthrough
CT: control target
= control target key end

     0   :  { %s8316_s0 = inlined_call_operand.vmem [shape: f32[32,16,4], index: 0, kind: input, shape index: {}]   ;;  %s8317_s1 = inlined_call_operand.vmem [shape: f32[16,16], index: 1, kind: input, shape index: {}]   ;;  %s8318_s2 = inlined_call_operand.vmem [shape: f32[4,48], index: 2, kind: input, shape index: {}]   ;;  %s8319_s3 = inlined_call_operand.vmem [shape: f32[2,8,4], index: 3, kind: input, shape index: {}]   ;;  %s8320_s4 = inlined_call_operand.vmem [shape: f32[1,4], index: 4, kind: input, shape index: {}]   ;;  %s8321_s5 = inlined_call_operand.hbm [shape: f32[32,64], index: 5, kind: output, shape index: {0}]   ;;  %s8322_s6 = inlined_call_operand.hbm [shape: f32[32,2,256], index: 6, kind: output, shape index: {1}]  }
   0x1   :  { %8342 = sst [smem:[#allocation34_spill]] %s8316_s0 }
   0x2   :  { %12 = vsyncpa [#allocation3], 0 }
   0x3   :  { %14 = vsyncpa [#allocation3 + $0x1], 0 }
   0x4   :  { %15 = vsyncpa [#allocation5], 0 }
   0x5   :  { %17 = vsyncpa [#allocation5 + $0x1], 0  ;;  %s5356_s21 = smov 0   ;;  %s5358_s22 = smov 0  }
   0x6   :  { %s5360_s23 = smov 0   ;;  %s5362_s24 = smov 0  }
   0x7 LB: > { %s5377_s25 = sadd.s32 4294967295, %s5297_s24   ;;  %s4628_s26 = sadd.s32 4294967294, %s5297_s24   ;;  %s5297_s24 = sphi %s5362_s24, %s8458_s24   ;;  %s5293_s23 = sphi %s5360_s23, %s8457_s23   ;;  %s5289_s22 = sphi %s5358_s22, %s8456_s22   ;;  %s5285_s21 = sphi %s5356_s21, %s8455_s21  }
   0x8   : > { %s5381_s27 = sadd.s32 1, %s5297_s24   ;;  %s140_s28 = sadd.s32 1, %s5293_s23 }
   0x9   : > { %s137_s29 = ssub.s32 %s5297_s24, %s5381_s27  ;;  %p150_p0 = scmp.ne.s32.totalorder %s5293_s23, %s5289_s22 }
   0xa   : > { %p138_p1 = scmp.eq.s32.totalorder %s137_s29, 0  ;;  %p151_p2 = scmp.eq.s32.totalorder %s5377_s25, 3 }
   0xb   : > { %p156_p3 = scmp.ne.s32.totalorder %s5289_s22, %s5285_s21  ;;  %p157_p4 = scmp.eq.s32.totalorder %s4628_s26, 3 }
   0xc   : > { %s5392_s30 = scalar_select %p138_p1, %s5293_s23, %s140_s28  }
   0xd   : > { %p5394_p5 = por %p151_p2, %p150_p0  ;;  %p5398_p6 = por %p157_p4, %p156_p3 }
   0xe   : > { %p4631_p7 = scmp.ge.s32.totalorder %s5297_s24, 1  ;;  %p223_p8 = scmp.lt.s32.totalorder %s5297_s24, 5 }
  0x10   : > { %p224_p9 = pnand %p4631_p7, %p223_p8 }
  0x12   : > { %227 = sbr.rel (%p224_p9) target bundleno = 2214 (0x8a6), region = 40 }
  0x17   : > { %v285_v0 = vld [vmem:[%s8318_s2] sm:$0xf]  ;;  %vm335_vm0 = vcmask 1043456   ;;  %s5408_s11 = sshll.u32 %s5377_s25, 3  ;;  %vm8332_vm1 = vcmask 31744   ;;  %s8345_s0 = sld [smem:[#allocation34_spill]] }
  0x18   : > { %4637 = vmatpush.msk.msra.mxu0 %vm335_vm0, %v285_v0  ;;  %p260_p10 = scmp.lt.s32.totalorder %s5408_s11, 31  ;;  %4922 = vmatpush.msk.msra.mxu3 %vm335_vm0, %v285_v0  ;;  %s5299_s17 = smov 120   ;;  %vm410_vm2 = vcmask 64512   ;;  %vm701_vm3 = vcmask 130048   ;;  %vm1086_vm8 = vcmask 122880  }
  0x19   : > { %s5300_s18 = smov 104   ;;  %s5301_s19 = smov 112  }
  0x1a   : > { %s261_s12 = scalar_select %p260_p10, %s5408_s11, 31 }
  0x1b   : > { %s5302_s20 = smov 96   ;;  %s5303_s26 = smov 88  }
  0x1c   : > { %s4919_s13 = sshll.u32 %s261_s12, 4  ;;  %s5902_s12 = sand.u32 1, %s5289_s22  }
  0x1d   : > { %s5415_s16 = scalar_lea.vmem %s8345_s0, %s4919_s13  ;;  %s4633_s13 = sshll.u32 %s5902_s12, 5 }
  0x1e   : > { %v267_v1 = vld [vmem:[%s5415_s16] sm:$0xff]  ;;  %v276_v2 = vld [vmem:[%s5415_s16 + $0x48] sm:$0xff]  ;;  %v277_v4 = vld [vmem:[%s5415_s16 + $0x50] sm:$0xff]  ;;  %s5913_s14 = scalar_lea.vmem [#allocation4], %s4633_s13  ;;  %s5304_s15 = smov 16  }
  0x1f   : > { %4638 = vmatmul.msk.f32.vlgmr.msra.gmra.mxu0 %vm8332_vm1, %v267_v1  ;;  %4647 = vmatmul.msk.f32.vlgmr.msra.gmra.mxu3 %vm8332_vm1, %v276_v2  ;;  %v268_v3 = vld [vmem:[%s5415_s16 + $0x8] sm:$0xff]  ;;  %v269_v5 = vld [vmem:[%s5415_s16 + $0x10] sm:$0xff]  ;;  %v278_v6 = vld [vmem:[%s5415_s16 + $0x58] sm:$0xff]  ;;  %s5309_s28 = smov 28   ;;  %s5310_s29 = smov 24  }
  0x20   : > { %v270_v7 = vld [vmem:[%s5415_s16 + $0x18] sm:$0xff]  ;;  %v279_v8 = vld [vmem:[%s5415_s16 + $0x60] sm:$0xff]  ;;  %v280_v10 = vld [vmem:[%s5415_s16 + $0x68] sm:$0xff]  ;;  %s8335_s9 = smov 56   ;;  %s5312_s10 = smov 20  }
  0x21   : > { %v271_v9 = vld [vmem:[%s5415_s16 + $0x20] sm:$0xff]  ;;  %v272_v11 = vld [vmem:[%s5415_s16 + $0x28] sm:$0xff]  ;;  %v281_v12 = vld [vmem:[%s5415_s16 + $0x70] sm:$0xff]  ;;  %s4632_s13 = sshll.u32 %s5902_s12, 3 }
  0x22   : > { %v273_v13 = vld [vmem:[%s5415_s16 + $0x30] sm:$0xff]  ;;  %v282_v14 = vld [vmem:[%s5415_s16 + $0x78] sm:$0xff]  ;;  %v275_v16 = vld [vmem:[%s5415_s16 + $0x40] sm:$0xff] }
  0x23   : > { %v274_v15 = vld [vmem:[%s5415_s16 + $0x38] sm:$0xff]  ;;  %s8336_s16 = smov 32  }
  0x27   : > { %4639 = vmatmul.msk.f32.gmra.mxu0 %vm8332_vm1, %v268_v3  ;;  %4648 = vmatmul.msk.f32.gmra.mxu3 %vm8332_vm1, %v277_v4 }
  0x2f   : > { %4640 = vmatmul.msk.f32.gmra.mxu0 %vm8332_vm1, %v269_v5  ;;  %4649 = vmatmul.msk.f32.gmra.mxu3 %vm8332_vm1, %v278_v6 }
  0x37   : > { %4641 = vmatmul.msk.f32.gmra.mxu0 %vm8332_vm1, %v270_v7  ;;  %4650 = vmatmul.msk.f32.gmra.mxu3 %vm8332_vm1, %v279_v8 }
  0x3f   : > { %4642 = vmatmul.msk.f32.gmra.mxu0 %vm8332_vm1, %v271_v9  ;;  %4651 = vmatmul.msk.f32.gmra.mxu3 %vm8332_vm1, %v280_v10 }
  0x47   : > { %4643 = vmatmul.msk.f32.gmra.mxu0 %vm8332_vm1, %v272_v11  ;;  %4652 = vmatmul.msk.f32.gmra.mxu3 %vm8332_vm1, %v281_v12 }
  0x4f   : > { %4644 = vmatmul.msk.f32.gmra.mxu0 %vm8332_vm1, %v273_v13  ;;  %4653 = vmatmul.msk.f32.gmra.mxu3 %vm8332_vm1, %v282_v14 }
  0x57   : > { %4645 = vmatmul.msk.f32.gmra.mxu0 %vm8332_vm1, %v274_v15 }
  0x5f   : > { %4646 = vmatmul.msk.f32.gmra.mxu0 %vm8332_vm1, %v275_v16 }
  0x9c   : > { %v5449_v17 = vpop.f32.mrf.mxu0 }
  0x9d   : > { %2183 = vrot.lane.b32.xlu2 %v5449_v17, %s5299_s17  ;;  %2187 = vrot.lane.b32.xlu1 %v5449_v17, %s5300_s18 }
  0x9e   : > { %406 = vrot.lane.b32.xlu0 %v5449_v17, %s5301_s19 }
  0xa2   : > { %v5457_v18 = vpop.f32.mrf.mxu3 }
  0xa4   : > { %v5459_v19 = vpop.f32.mrf.mxu0 }
  0xa5   : > { %2345 = vrot.lane.b32.xlu2 %v5457_v18, %s5300_s18  ;;  %2341 = vrot.lane.b32.xlu1 %v5457_v18, %s5299_s17  ;;  %v4992_v21 = vpack.i.bf16 %v5449_v17, %v5459_v19 }
  0xa6   : > { %557 = vrot.lane.b32.xlu0 %v5457_v18, %s5301_s19 }
  0xaa   : > { %v5467_v20 = vpop.f32.mrf.mxu3 }
  0xac   : > { %v5474_v22 = vpop.f32.mrf.mxu0 }
  0xad   : > { %2185 = vrot.lane.b32.xlu2 %v5459_v19, %s5299_s17  ;;  %4993 = vrot.lane.b32.xlu1 %v4992_v21, %s5302_s20 }
  0xae   : > { %408 = vrot.lane.b32.xlu0 %v5459_v19, %s5301_s19 }
  0xb2   : > { %v5478_v23 = vpop.f32.mrf.mxu3 }
  0xb3   : > { %v5002_v32 = vpack.i.bf16 %v5467_v20, %v5478_v23 }
  0xb4   : > { %v5486_v24 = vpop.f32.mrf.mxu0 }
  0xb5   : > { %594 = vrot.lane.b32.xlu2 %v5478_v23, %s5301_s19  ;;  %2189 = vrot.lane.b32.xlu1 %v5459_v19, %s5300_s18  ;;  %v5012_v25 = vpack.i.bf16 %v5474_v22, %v5486_v24 }
  0xb6   : > { %2226 = vrot.lane.b32.xlu0 %v5474_v22, %s5300_s18 }
  0xba   : > { %v5494_v26 = vpop.f32.mrf.mxu3 }
  0xbb   : > { %v5017_v27 = vpack.i.bf16 %v5494_v26, %v5467_v20 }
  0xbc   : > { %v5503_v28 = vpop.f32.mrf.mxu0 }
  0xbd   : > { %4998 = vrot.lane.b32.xlu1 %v4992_v21, %s5303_s26  ;;  %5013 = vrot.lane.b32.xlu2 %v5012_v25, %s5303_s26 }
  0xbe   : > { %2384 = vrot.lane.b32.xlu0 %v5478_v23, %s5300_s18 }
  0xc2   : > { %v5511_v29 = vpop.f32.mrf.mxu3 }
  0xc3   : > { %v5022_v33 = vpack.i.bf16 %v5511_v29, %v5478_v23  ;;  %v5027_v37 = vpack.i.bf16 %v5494_v26, %v5511_v29 }
  0xc4   : > { %v5519_v30 = vpop.f32.mrf.mxu0 }
  0xc5   : > { %592 = vrot.lane.b32.xlu1 %v5467_v20, %s5301_s19  ;;  %5018 = vrot.lane.b32.xlu2 %v5017_v27, %s5302_s20  ;;  %v5032_v56 = vpack.i.bf16 %v5503_v28, %v5519_v30 }
  0xc6   : > { %2380 = vrot.lane.b32.xlu0 %v5478_v23, %s5299_s17 }
  0xca   : > { %v5527_v31 = vpop.f32.mrf.mxu3 }
  0xcc   : > { %v5551_v35 = vpop.f32.mrf.mxu0 }
  0xcd   : > { %2382 = vrot.lane.b32.xlu1 %v5467_v20, %s5300_s18  ;;  %481 = vrot.lane.b32.xlu2 %v5503_v28, %s5301_s19  ;;  %v5037_v36 = vpack.i.bf16 %v5551_v35, %v5503_v28 }
  0xce   : > { %2228 = vrot.lane.b32.xlu0 %v5486_v24, %s5300_s18 }
  0xd2   : > { %v5560_v38 = vpop.f32.mrf.mxu3 }
  0xd3   : > { %v5042_v40 = vpack.i.bf16 %v5527_v31, %v5560_v38 }
  0xd4   : > { %v5592_v48 = vpop.f32.mrf.mxu0 }
  0xd5   : > { %2378 = vrot.lane.b32.xlu1 %v5467_v20, %s5299_s17  ;;  %2419 = vrot.lane.b32.xlu2 %v5511_v29, %s5299_s17  ;;  %v5057_v52 = vpack.i.bf16 %v5551_v35, %v5592_v48  ;;  %v5052_v63 = vpack.i.bf16 %v5592_v48, %v5519_v30 }
  0xd6   : > { %629 = vrot.lane.b32.xlu0 %v5494_v26, %s5301_s19 }
  0xdc   : > { %v5619_v57 = vpop.f32.mrf.mxu0 }
  0xdd   : > { %444 = vrot.lane.b32.xlu1 %v5474_v22, %s5301_s19  ;;  %483 = vrot.lane.b32.xlu2 %v5519_v30, %s5301_s19  ;;  %v5062_v3 = vpack.i.bf16 %v5619_v57, %v5457_v18 }
  0xde   : > { %2421 = vrot.lane.b32.xlu0 %v5494_v26, %s5300_s18 }
  0xe5   : > { %2222 = vrot.lane.b32.xlu1 %v5474_v22, %s5299_s17  ;;  %666 = vrot.lane.b32.xlu2 %v5527_v31, %s5301_s19 }
  0xe6   : > { %2417 = vrot.lane.b32.xlu0 %v5494_v26, %s5299_s17 }
  0xed   : > { %5003 = vrot.lane.b32.xlu1 %v5002_v32, %s5303_s26  ;;  %2460 = vrot.lane.b32.xlu2 %v5527_v31, %s5300_s18 }
  0xee   : > { %5023 = vrot.lane.b32.xlu0 %v5022_v33, %s5302_s20 }
  0xf5   : > { %446 = vrot.lane.b32.xlu1 %v5486_v24, %s5301_s19  ;;  %2456 = vrot.lane.b32.xlu2 %v5527_v31, %s5299_s17 }
  0xf6   : > { %2423 = vrot.lane.b32.xlu0 %v5511_v29, %s5300_s18 }
  0xf7   : > { %v5549_v34 = vpop.permute.xlu2 %2183 }
  0xfd   : > { %5008 = vrot.lane.b32.xlu1 %v5012_v25, %s5302_s20  ;;  %5038 = vrot.lane.b32.xlu2 %v5037_v36, %s5302_s20 }
  0xfe   : > { %5028 = vrot.lane.b32.xlu0 %v5027_v37, %s5303_s26 }
  0xff   : > { %v5562_v39 = vpop.permute.xlu2 %2345 }
 0x105   : > { %2224 = vrot.lane.b32.xlu1 %v5486_v24, %s5299_s17  ;;  %5043 = vrot.lane.b32.xlu2 %v5042_v40, %s5302_s20 }
 0x106   : > { %2267 = vrot.lane.b32.xlu0 %v5519_v30, %s5300_s18 }
 0x107   : > { %v5571_v41 = vpop.permute.xlu2 %2185 }
 0x10d   : > { %2265 = vrot.lane.b32.xlu1 %v5503_v28, %s5300_s18  ;;  %2462 = vrot.lane.b32.xlu2 %v5560_v38, %s5300_s18 }
 0x10e   : > { %518 = vrot.lane.b32.xlu0 %v5551_v35, %s5301_s19 }
 0x10f   : > { %v5579_v42 = vpop.permute.xlu1 %2187  ;;  %v595_v43 = vpop.permute.xlu2 %594 }
 0x110   : > { %v407_v44 = vpop.permute.xlu0 %406 }
 0x115   : > { %2261 = vrot.lane.b32.xlu1 %v5503_v28, %s5299_s17  ;;  %5048 = vrot.lane.b32.xlu2 %v5042_v40, %s5303_s26 }
 0x116   : > { %2304 = vrot.lane.b32.xlu0 %v5551_v35, %s5300_s18 }
 0x117   : > { %v5586_v45 = vpop.permute.xlu1 %2341  ;;  %v5588_v46 = vpop.permute.xlu2 %5013 }
 0x118   : > { %8346 = vst [vmem:[#allocation8_spill] sm:$0xff] %v5586_v45  ;;  %v5590_v47 = vpop.permute.xlu0 %557 }
 0x11d   : > { %631 = vrot.lane.b32.xlu1 %v5511_v29, %s5301_s19  ;;  %2302 = vrot.lane.b32.xlu2 %v5592_v48, %s5299_s17 }
 0x11e   : > { %2300 = vrot.lane.b32.xlu0 %v5551_v35, %s5299_s17 }
 0x11f   : > { %v4994_v49 = vpop.permute.xlu1 %4993  ;;  %v5600_v50 = vpop.permute.xlu2 %5018 }
 0x120   : > { %v409_v51 = vpop.permute.xlu0 %408  ;;  %v4995_v6 = vunpack.i.l.bf16 %v4994_v49  ;;  %v4996_v8 = vunpack.i.h.bf16 %v4994_v49 }
 0x121   : > { %4654 = vmatpush.xpose.msk.msra.mxu1 %vm410_vm2, %v409_v51 }
 0x125   : > { %4655 = vmatpush.xpose.msk.msra.mxu1 %vm410_vm2, %v407_v44  ;;  %2263 = vrot.lane.b32.xlu1 %v5519_v30, %s5299_s17 }
 0x126   : > { %668 = vrot.lane.b32.xlu0 %v5560_v38, %s5301_s19  ;;  %5058 = vrot.lane.b32.xlu2 %v5057_v52, %s5303_s26 }
 0x127   : > { %v5611_v53 = vpop.permute.xlu1 %2189  ;;  %v482_v54 = vpop.permute.xlu2 %481 }
 0x128   : > { %4656 = vmatmul.msk.f32.vlgmr.msra.gmra.mxu1 %vm410_vm2, %v5449_v17  ;;  %v5615_v55 = vpop.permute.xlu0 %2226 }
 0x12d   : > { %5033 = vrot.lane.b32.xlu1 %v5032_v56, %s5303_s26 }
 0x12e   : > { %2458 = vrot.lane.b32.xlu0 %v5560_v38, %s5299_s17  ;;  %555 = vrot.lane.b32.xlu2 %v5619_v57, %s5301_s19 }
 0x12f   : > { %v5626_v58 = vpop.permute.xlu1 %4998  ;;  %v5628_v59 = vpop.permute.xlu2 %2419 }
 0x130   : > { %8347 = vst [vmem:[#allocation9_spill] sm:$0xff] %v5626_v58  ;;  %4657 = vmatmul.msk.f32.gmra.mxu1 %vm410_vm2, %v5459_v19  ;;  %v5632_v60 = vpop.permute.xlu0 %2384  ;;  %v8324_v61 = vunpack.i.l.bf16 %v5626_v58  ;;  %v8323_v62 = vunpack.i.h.bf16 %v5626_v58 }
 0x132   : > { %3727 = vmatpush.msrb.mxu0 %v8324_v61 }
 0x134   : > { %3728 = vmatpush.msrb.mxu0 %v8323_v62 }
 0x135   : > { %520 = vrot.lane.b32.xlu1 %v5592_v48, %s5301_s19 }
 0x136   : > { %5053 = vrot.lane.b32.xlu0 %v5052_v63, %s5302_s20  ;;  %2343 = vrot.lane.b32.xlu2 %v5619_v57, %s5300_s18 }
 0x137   : > { %v593_v0 = vpop.permute.xlu1 %592  ;;  %v484_v1 = vpop.permute.xlu2 %483 }
 0x138   : > { %v5647_v2 = vpop.permute.xlu0 %2380  ;;  %4662 = vmatpush.xpose.msk.msrb.mxu3 %vm410_vm2, %v484_v1 }
 0x139   : > { %8348 = vst [vmem:[#allocation10_spill] sm:$0xff] %v5647_v2 }
 0x13c   : > { %4663 = vmatpush.xpose.msk.msrb.mxu3 %vm410_vm2, %v482_v54 }
 0x13d   : > { %5063 = vrot.lane.b32.xlu1 %v5062_v3, %s5302_s20 }
 0x13e   : > { %2306 = vrot.lane.b32.xlu0 %v5592_v48, %s5300_s18  ;;  %2339 = vrot.lane.b32.xlu2 %v5619_v57, %s5299_s17  ;;  %s8339_s17 = smov 48   ;;  %s8337_s18 = smov 64  }
 0x13f   : > { %v5659_v4 = vpop.permute.xlu1 %2382  ;;  %4664 = vmatmul.msk.f32.vlgmr.msrb.gmra.mxu3 %vm410_vm2, %v5503_v28  ;;  %v667_v5 = vpop.permute.xlu2 %666 }
 0x140   : > { %4674 = vmatpush.xpose.msk.msra.mxu3 %vm410_vm2, %v595_v43  ;;  %v5663_v7 = vpop.permute.xlu0 %2228 }
 0x144   : > { %4675 = vmatpush.xpose.msk.msra.mxu3 %vm410_vm2, %v593_v0 }
 0x146   : > { %5068 = vrot.lane.b32.xlu0 %v5062_v3, %s5303_s26  ;;  %s5308_s26 = smov 80  }
 0x147   : > { %v5667_v9 = vpop.permute.xlu1 %2378  ;;  %4665 = vmatmul.msk.f32.gmra.mxu3 %vm410_vm2, %v5519_v30  ;;  %v5671_v10 = vpop.permute.xlu2 %2460 }
 0x148   : > { %1942 = vmatpush.msrb.mxu3 %v4995_v6  ;;  %8349 = vst [vmem:[#allocation11_spill] sm:$0xff] %v5667_v9  ;;  %v5673_v11 = vpop.permute.xlu0 %629 }
 0x14a   : > { %1943 = vmatpush.msrb.mxu3 %v4996_v8 }
 0x14f   : > { %v445_v12 = vpop.permute.xlu1 %444  ;;  %4676 = vmatmul.msk.f32.vlgmr.msra.gmra.mxu3 %vm410_vm2, %v5467_v20  ;;  %v5677_v13 = vpop.permute.xlu2 %2456 }
 0x150   : > { %8350 = vst [vmem:[#allocation12_spill] sm:$0xff] %v5677_v13  ;;  %v5679_v14 = vpop.permute.xlu0 %2421 }
 0x157   : > { %v5681_v15 = vpop.permute.xlu1 %2222  ;;  %4677 = vmatmul.msk.f32.gmra.mxu3 %vm410_vm2, %v5478_v23  ;;  %v5039_v16 = vpop.permute.xlu2 %5038 }
 0x158   : > { %v5685_v17 = vpop.permute.xlu0 %2417  ;;  %v5041_v8 = vunpack.i.h.bf16 %v5039_v16 }
 0x15f   : > { %v5687_v19 = vpop.permute.xlu1 %5003  ;;  %v5689_v21 = vpop.permute.xlu2 %5043 }
 0x160   : > { %8351 = vst [vmem:[#allocation13_spill] sm:$0xff] %v5687_v19  ;;  %v5691_v25 = vpop.permute.xlu0 %5023 }
 0x167   : > { %v447_v27 = vpop.permute.xlu1 %446  ;;  %v5693_v20 = vpop.permute.xlu2 %2462 }
 0x168   : > { %v5695_v28 = vpop.permute.xlu0 %2423  ;;  %4658 = vmatpush.xpose.msk.msra.mxu2 %vm410_vm2, %v447_v27  ;;  %v5756_v27 = vld [vmem:[%s8317_s1 + $0x8] sm:$0xff] }
 0x16c   : > { %4659 = vmatpush.xpose.msk.msra.mxu2 %vm410_vm2, %v445_v12  ;;  %v5040_v12 = vunpack.i.l.bf16 %v5039_v16 }
 0x16f   : > { %4660 = vmatmul.msk.f32.vlgmr.msra.gmra.mxu2 %vm410_vm2, %v5474_v22  ;;  %v5009_v23 = vpop.permute.xlu1 %5008  ;;  %v5703_v30 = vpop.permute.xlu2 %5048 }
 0x170   : > { %4670 = vmatpush.xpose.msk.msrb.mxu2 %vm410_vm2, %v5590_v47  ;;  %8352 = vst [vmem:[#allocation14_spill] sm:$0xff] %v5703_v30  ;;  %v5705_v32 = vpop.permute.xlu0 %5028 }
 0x177   : > { %4661 = vmatmul.msk.f32.gmra.mxu2 %vm410_vm2, %v5486_v24  ;;  %v5709_v33 = vpop.permute.xlu1 %2224  ;;  %v5711_v36 = vpop.permute.xlu2 %2302 }
 0x178   : > { %v5713_v37 = vpop.permute.xlu0 %2267 }
 0x17f   : > { %v5715_v40 = vpop.permute.xlu1 %2265 }
 0x180   : > { %v519_v43 = vpop.permute.xlu0 %518  ;;  %v5717_v44 = vpop.permute.xlu2 %5058 }
 0x181   : > { %8353 = vst [vmem:[#allocation15_spill] sm:$0xff] %v5717_v44 }
 0x187   : > { %v5719_v22 = vpop.permute.xlu1 %2261 }
 0x188   : > { %v5721_v47 = vpop.permute.xlu0 %2304  ;;  %v556_v49 = vpop.permute.xlu2 %555 }
 0x189   : > { %4671 = vmatpush.xpose.msk.msrb.mxu2 %vm410_vm2, %v556_v49  ;;  %v5025_v49 = vunpack.i.l.bf16 %v5691_v25 }
 0x18c   : > { %4672 = vmatmul.msk.f32.vlgmr.msrb.gmra.mxu2 %vm410_vm2, %v5619_v57  ;;  %v5743_v57 = vld [vmem:[%s8317_s1] sm:$0xff] }
 0x18f   : > { %v632_v24 = vpop.permute.xlu1 %631 }
 0x190   : > { %v5726_v51 = vpop.permute.xlu0 %2300 }
 0x194   : > { %4673 = vmatmul.msk.f32.gmra.mxu2 %vm410_vm2, %v5457_v18 }
 0x197   : > { %v5730_v52 = vpop.permute.xlu1 %2263 }
 0x198   : > { %8354 = vst [vmem:[#allocation16_spill] sm:$0xff] %v5730_v52  ;;  %v669_v54 = vpop.permute.xlu0 %668 }
 0x199   : > { %4682 = vmatpush.xpose.msk.msra.mxu2 %vm410_vm2, %v669_v54  ;;  %v5020_v54 = vunpack.i.l.bf16 %v5600_v50 }
 0x19d   : > { %4683 = vmatpush.xpose.msk.msra.mxu2 %vm410_vm2, %v667_v5 }
 0x19f   : > { %v5734_v56 = vpop.permute.xlu1 %5033 }
 0x1a0   : > { %v5736_v63 = vpop.permute.xlu0 %2458  ;;  %4684 = vmatmul.msk.f32.vlgmr.msra.gmra.mxu2 %vm410_vm2, %v5527_v31 }
 0x1a1   : > { %8355 = vst [vmem:[#allocation17_spill] sm:$0xff] %v5736_v63 }
 0x1a5   : > { %v436_v18 = vpop.f32.mrf.mxu1 }
 0x1a6   : > { %v5746_v0 = vadd.f32 %v436_v18, %v5743_v57 }
 0x1a7   : > { %v521_v1 = vpop.permute.xlu1 %520 }
 0x1a8   : > { %v5054_v3 = vpop.permute.xlu0 %5053  ;;  %4685 = vmatmul.msk.f32.gmra.mxu2 %vm410_vm2, %v5560_v38  ;;  %4666 = vmatpush.xpose.msk.msrb.mxu1 %vm410_vm2, %v521_v1  ;;  %v702_v31 = vsel %vm701_vm3, %v5746_v0, -inf }
 0x1a9   : > { %v5056_v5 = vunpack.i.h.bf16 %v5054_v3  ;;  %v5055_v6 = vunpack.i.l.bf16 %v5054_v3  ;;  %703 = vmax.xlane.f32.xlu1 %v702_v31  ;;  %v5010_v3 = vunpack.i.l.bf16 %v5009_v23 }
 0x1ab   : > { %2008 = vmatpush.msrb.mxu2 %v5055_v6  ;;  %2041 = vmatpush.msra.mxu3 %v5056_v5 }
 0x1ac   : > { %4667 = vmatpush.xpose.msk.msrb.mxu1 %vm410_vm2, %v519_v43  ;;  %v5011_v43 = vunpack.i.h.bf16 %v5009_v23 }
 0x1ad   : > { %v439_v38 = vpop.f32.mrf.mxu1  ;;  %2009 = vmatpush.msrb.mxu2 %v5040_v12  ;;  %2042 = vmatpush.msra.mxu3 %v5041_v8 }
 0x1ae   : > { %v440_v18 = vadd.f32 %v439_v38, %v5756_v27 }
 0x1af   : > { %2107 = vmatpush.msra.mxu2 %v5025_v49  ;;  %4668 = vmatmul.msk.f32.vlgmr.msrb.gmra.mxu1 %vm410_vm2, %v5551_v35  ;;  %v5064_v5 = vpop.permute.xlu1 %5063 }
 0x1b0   : > { %4678 = vmatpush.xpose.msk.msra.mxu1 %vm410_vm2, %v632_v24  ;;  %v5765_v16 = vpop.permute.xlu0 %2306  ;;  %v705_v1 = vsel %vm701_vm3, %v440_v18, -inf  ;;  %v5065_v6 = vunpack.i.l.bf16 %v5064_v5  ;;  %v5066_v8 = vunpack.i.h.bf16 %v5064_v5 }
 0x1b1   : > { %2108 = vmatpush.msra.mxu2 %v5020_v54  ;;  %706 = vmax.xlane.f32.xlu2 %v705_v1 }
 0x1b4   : > { %4679 = vmatpush.xpose.msk.msra.mxu1 %vm410_vm2, %v5673_v11 }
 0x1b7   : > { %4669 = vmatmul.msk.f32.gmra.mxu1 %vm410_vm2, %v5592_v48 }
 0x1b8   : > { %1975 = vmatpush.msrb.mxu1 %v5010_v3  ;;  %v5069_v24 = vpop.permute.xlu0 %5068 }
 0x1b9   : > { %v5070_v31 = vunpack.i.l.bf16 %v5069_v24  ;;  %v5071_v35 = vunpack.i.h.bf16 %v5069_v24 }
 0x1ba   : > { %1976 = vmatpush.msrb.mxu1 %v5011_v43 }
 0x1bb   : > { %3859 = vmatpush.msra.mxu0 %v5070_v31 }
 0x1bd   : > { %3860 = vmatpush.msra.mxu0 %v5071_v35 }
 0x1bf   : > { %4680 = vmatmul.msk.f32.vlgmr.msra.gmra.mxu1 %vm410_vm2, %v5494_v26 }
 0x1c0   : > { %2074 = vmatpush.msra.mxu1 %v5065_v6 }
 0x1c2   : > { %2075 = vmatpush.msra.mxu1 %v5066_v8  ;;  %v510_v11 = vpop.f32.mrf.mxu3  ;;  %v5801_v8 = vpop.permute.xlu2 %2343 }
 0x1c3   : > { %v511_v23 = vadd.f32 %v510_v11, %v5743_v57 }
 0x1c5   : > { %v714_v12 = vsel %vm701_vm3, %v511_v23, -inf }
 0x1c6   : > { %715 = vmax.xlane.f32.xlu1 %v714_v12 }
 0x1c7   : > { %4681 = vmatmul.msk.f32.gmra.mxu1 %vm410_vm2, %v5511_v29 }
 0x1ca   : > { %v513_v48 = vpop.f32.mrf.mxu3 }
 0x1cb   : > { %v5794_v31 = vadd.f32 %v513_v48, %v5756_v27 }
 0x1cd   : > { %v717_v5 = vsel %vm701_vm3, %v5794_v31, -inf }
 0x1d2   : > { %v621_v49 = vpop.f32.mrf.mxu3 }
 0x1d3   : > { %v5779_v38 = vadd.f32 %v621_v49, %v5743_v57 }
 0x1d5   : > { %v732_v26 = vsel %vm701_vm3, %v5779_v38, -inf }
 0x1d6   : > { %733 = vmax.xlane.f32.xlu1 %v732_v26 }
 0x1da   : > { %v624_v12 = vpop.f32.mrf.mxu3 }
 0x1db   : > { %v5806_v49 = vadd.f32 %v624_v12, %v5756_v27 }
 0x1dd   : > { %v735_v48 = vsel %vm701_vm3, %v5806_v49, -inf }
 0x1f2   : > { %v473_v54 = vpop.f32.mrf.mxu2 }
 0x1f3   : > { %v5784_v1 = vadd.f32 %v473_v54, %v5743_v57  ;;  %v5810_v54 = vpop.permute.xlu2 %2339 }
 0x1f5   : > { %v708_v3 = vsel %vm701_vm3, %v5784_v1, -inf }
 0x1f6   : > { %709 = vmax.xlane.f32.xlu0 %v708_v3 }
 0x1fa   : > { %v476_v43 = vpop.f32.mrf.mxu2 }
 0x1fb   : > { %v5789_v29 = vadd.f32 %v476_v43, %v5756_v27 }
 0x1fd   : > { %v711_v24 = vsel %vm701_vm3, %v5789_v29, -inf }
 0x1fe   : > { %712 = vmax.xlane.f32.xlu2 %v711_v24 }
 0x206   : > { %718 = vmax.xlane.f32.xlu2 %v717_v5 }
 0x20f   : > { %v584_v35 = vpop.f32.mrf.mxu2 }
 0x210   : > { %v5799_v6 = vadd.f32 %v584_v35, %v5743_v57 }
 0x212   : > { %v726_v11 = vsel %vm701_vm3, %v5799_v6, -inf }
 0x213   : > { %727 = vmax.xlane.f32.xlu2 %v726_v11 }
 0x217   : > { %v587_v26 = vpop.f32.mrf.mxu2 }
 0x218   : > { %v5838_v9 = vadd.f32 %v587_v26, %v5756_v27 }
 0x21b   : > { %736 = vmax.xlane.f32.xlu2 %v735_v48 }
 0x223   : > { %v695_v3 = vpop.f32.mrf.mxu2 }
 0x224   : > { %v5813_v43 = vadd.f32 %v695_v3, %v5743_v57  ;;  %v707_v24 = vpop.xlane.xlu2 %706 }
 0x225   : > { %v751_v5 = vsub.f32 %v440_v18, %v707_v24  ;;  %v704_v18 = vpop.xlane.xlu1 %703 }
 0x226   : > { %v744_v35 = vsel %vm701_vm3, %v5813_v43, -inf }
 0x227   : > { %v768_v11 = vmul.f32 1.442695, %v751_v5  ;;  %745 = vmax.xlane.f32.xlu2 %v744_v35 }
 0x229   : > { %5073 = vpow2.f32 %v768_v11 }
 0x22c   : > { %v547_v12 = vpop.f32.mrf.mxu1 }
 0x22d   : > { %v5818_v62 = vadd.f32 %v547_v12, %v5743_v57 }
 0x22f   : > { %v5820_v61 = vpop.eup %5073  ;;  %v720_v48 = vsel %vm701_vm3, %v5818_v62, -inf }
 0x230   : > { %721 = vmax.xlane.f32.xlu0 %v720_v48  ;;  %v801_v3 = vsel %vm701_vm3, %v5820_v61, 0.0  ;;  %v750_v48 = vsub.f32 %v5746_v0, %v704_v18  ;;  %v698_v0 = vpop.f32.mrf.mxu2 }
 0x231   : > { %802 = vadd.xlane.f32.xlu2 %v801_v3 }
 0x234   : > { %v550_v24 = vpop.f32.mrf.mxu1 }
 0x235   : > { %v5827_v5 = vadd.f32 %v550_v24, %v5756_v27  ;;  %v766_v24 = vmul.f32 1.442695, %v750_v48 }
 0x237   : > { %v723_v35 = vsel %vm701_vm3, %v5827_v5, -inf }
 0x238   : > { %724 = vmax.xlane.f32.xlu1 %v723_v35 }
 0x239   : > { %v716_v11 = vpop.xlane.xlu1 %715 }
 0x23a   : > { %v754_v12 = vsub.f32 %v511_v23, %v716_v11  ;;  %v5853_v11 = vadd.f32 %v698_v0, %v5756_v27 }
 0x23c   : > { %v774_v30 = vmul.f32 1.442695, %v754_v12  ;;  %v658_v2 = vpop.f32.mrf.mxu1 }
 0x23d   : > { %v5832_v63 = vadd.f32 %v658_v2, %v5743_v57  ;;  %v729_v57 = vsel %vm701_vm3, %v5838_v9, -inf }
 0x23e   : > { %5075 = vpow2.f32 %v774_v30 }
 0x23f   : > { %v738_v3 = vsel %vm701_vm3, %v5832_v63, -inf  ;;  %5077 = vpow2.f32 %v766_v24  ;;  %v747_v24 = vsel %vm701_vm3, %v5853_v11, -inf }
 0x240   : > { %739 = vmax.xlane.f32.xlu0 %v738_v3 }
 0x244   : > { %v5840_v13 = vpop.eup %5075  ;;  %v661_v35 = vpop.f32.mrf.mxu1 }
 0x245   : > { %v5843_v23 = vadd.f32 %v661_v35, %v5756_v27  ;;  %v810_v2 = vsel %vm701_vm3, %v5840_v13, 0.0  ;;  %v5855_v12 = vpop.eup %5077 }
 0x246   : > { %811 = vadd.xlane.f32.xlu2 %v810_v2  ;;  %v798_v3 = vsel %vm701_vm3, %v5855_v12, 0.0 }
 0x247   : > { %v741_v30 = vsel %vm701_vm3, %v5843_v23, -inf }
 0x248   : > { %742 = vmax.xlane.f32.xlu1 %v741_v30  ;;  %730 = vmax.xlane.f32.xlu0 %v729_v57 }
 0x249   : > { %v734_v26 = vpop.xlane.xlu1 %733 }
 0x24a   : > { %v760_v18 = vsub.f32 %v5779_v38, %v734_v26 }
 0x24c   : > { %v786_v48 = vmul.f32 1.442695, %v760_v18 }
 0x24e   : > { %5079 = vpow2.f32 %v786_v48 }
 0x250   : > { %799 = vadd.xlane.f32.xlu1 %v798_v3  ;;  %748 = vmax.xlane.f32.xlu0 %v747_v24 }
 0x254   : > { %v5861_v35 = vpop.eup %5079 }
 0x255   : > { %v828_v38 = vsel %vm701_vm3, %v5861_v35, 0.0 }
 0x256   : > { %829 = vadd.xlane.f32.xlu2 %v828_v38 }
 0x269   : > { %v710_v27 = vpop.xlane.xlu0 %709 }
 0x26a   : > { %v752_v2 = vsub.f32 %v5784_v1, %v710_v27 }
 0x26c   : > { %v770_v30 = vmul.f32 1.442695, %v752_v2 }
 0x26e   : > { %5081 = vpow2.f32 %v770_v30 }
 0x271   : > { %v713_v57 = vpop.xlane.xlu2 %712 }
 0x272   : > { %v753_v0 = vsub.f32 %v5789_v29, %v713_v57 }
 0x274   : > { %v5867_v26 = vpop.eup %5081  ;;  %v772_v18 = vmul.f32 1.442695, %v753_v0 }
 0x275   : > { %v804_v48 = vsel %vm701_vm3, %v5867_v26, 0.0 }
 0x276   : > { %5083 = vpow2.f32 %v772_v18  ;;  %805 = vadd.xlane.f32.xlu0 %v804_v48 }
 0x279   : > { %v719_v3 = vpop.xlane.xlu2 %718 }
 0x27a   : > { %v755_v24 = vsub.f32 %v5794_v31, %v719_v3 }
 0x27c   : > { %v5872_v38 = vpop.eup %5083  ;;  %v776_v19 = vmul.f32 1.442695, %v755_v24 }
 0x27d   : > { %v807_v1 = vsel %vm701_vm3, %v5872_v38, 0.0 }
 0x27e   : > { %5085 = vpow2.f32 %v776_v19  ;;  %808 = vadd.xlane.f32.xlu1 %v807_v1 }
 0x284   : > { %v5876_v29 = vpop.eup %5085 }
 0x285   : > { %v813_v27 = vsel %vm701_vm3, %v5876_v29, 0.0 }
 0x286   : > { %v728_v2 = vpop.xlane.xlu2 %727  ;;  %814 = vadd.xlane.f32.xlu0 %v813_v27 }
 0x287   : > { %v758_v30 = vsub.f32 %v5799_v6, %v728_v2 }
 0x289   : > { %v782_v57 = vmul.f32 1.442695, %v758_v30 }
 0x28b   : > { %5087 = vpow2.f32 %v782_v57 }
 0x28e   : > { %v737_v31 = vpop.xlane.xlu2 %736 }
 0x28f   : > { %v761_v0 = vsub.f32 %v5806_v49, %v737_v31 }
 0x291   : > { %v5882_v18 = vpop.eup %5087  ;;  %v788_v48 = vmul.f32 1.442695, %v761_v0 }
 0x292   : > { %v822_v19 = vsel %vm701_vm3, %v5882_v18, 0.0 }
 0x293   : > { %5089 = vpow2.f32 %v788_v48  ;;  %823 = vadd.xlane.f32.xlu0 %v822_v19 }
 0x299   : > { %v5886_v3 = vpop.eup %5089 }
 0x29a   : > { %v746_v24 = vpop.xlane.xlu2 %745  ;;  %v831_v1 = vsel %vm701_vm3, %v5886_v3, 0.0 }
 0x29b   : > { %v764_v6 = vsub.f32 %v5813_v43, %v746_v24  ;;  %832 = vadd.xlane.f32.xlu0 %v831_v1 }
 0x29d   : > { %v794_v27 = vmul.f32 1.442695, %v764_v6 }
 0x29f   : > { %5091 = vpow2.f32 %v794_v27 }
 0x2a3   : > { %v722_v49 = vpop.xlane.xlu0 %721 }
 0x2a4   : > { %v756_v2 = vsub.f32 %v5818_v62, %v722_v49  ;;  %v803_v30 = vpop.xlane.xlu2 %802 }
 0x2a5   : > { %v5892_v57 = vpop.eup %5091  ;;  %5093 = vrcp.f32 %v803_v30  ;;  %v871_v27 = vand.u32 2147483648, %v803_v30  ;;  %vm865_vm5 = vweird.f32 %v803_v30 }
 0x2a6   : > { %v778_v31 = vmul.f32 1.442695, %v756_v2  ;;  %v840_v0 = vsel %vm701_vm3, %v5892_v57, 0.0 }
 0x2a7   : > { %841 = vadd.xlane.f32.xlu0 %v840_v0  ;;  %v869_v0 = vand.u32 2147483647, %v803_v30 }
 0x2a8   : > { %5095 = vpow2.f32 %v778_v31 }
 0x2a9   : > { %vm870_vm7 = vcmp.eq.f32.partialorder %v869_v0, 8.507059e+37 }
 0x2ab   : > { %v5094_v48 = vpop.eup %5093  ;;  %v725_v19 = vpop.xlane.xlu1 %724 }
 0x2ac   : > { %v861_v43 = vmul.f32 %v5094_v48, %v803_v30  ;;  %v757_v24 = vsub.f32 %v5827_v5, %v725_v19  ;;  %vm866_vm4 = vweird.f32 %v5094_v48  ;;  %v872_v5 = vor.u32 1.1754944e-38, %v871_v27 }
 0x2ad   : > { %vm867_vm6 = vmor %vm865_vm5, %vm866_vm4 }
 0x2ae   : > { %v5897_v1 = vpop.eup %5095  ;;  %v862_v6 = vsub.f32 1.0, %v861_v43  ;;  %v780_v62 = vmul.f32 1.442695, %v757_v24 }
 0x2af   : > { %v816_v49 = vsel %vm701_vm3, %v5897_v1, 0.0 }
 0x2b0   : > { %v863_v2 = vmul.f32 %v5094_v48, %v862_v6  ;;  %5097 = vpow2.f32 %v780_v62  ;;  %817 = vadd.xlane.f32.xlu1 %v816_v49 }
 0x2b2   : > { %v864_v31 = vadd.f32 %v5094_v48, %v863_v2 }
 0x2b3   : > { %v740_v19 = vpop.xlane.xlu0 %739 }
 0x2b4   : > { %v868_v43 = vsel %vm867_vm6, %v5094_v48, %v864_v31  ;;  %v762_v24 = vsub.f32 %v5832_v63, %v740_v19 }
 0x2b5   : > { %v873_v44 = vsel %vm870_vm7, %v872_v5, %v868_v43 }
 0x2b6   : > { %v5906_v52 = vpop.eup %5097  ;;  %v5909_v6 = vmul.f32 %v5820_v61, %v873_v44  ;;  %v790_v45 = vmul.f32 1.442695, %v762_v24 }
 0x2b7   : > { %v819_v62 = vsel %vm701_vm3, %v5906_v52, 0.0 }
 0x2b8   : > { %5099 = vpow2.f32 %v790_v45  ;;  %820 = vadd.xlane.f32.xlu2 %v819_v62  ;;  %1506 = vst.msk [vmem:[%s5913_s14 + $0x2] sm:$0x1] %vm1086_vm8, %v5909_v6 }
 0x2b9   : > { %v812_v63 = vpop.xlane.xlu2 %811 }
 0x2ba   : > { %5101 = vrcp.f32 %v812_v63  ;;  %v913_v24 = vand.u32 2147483648, %v812_v63  ;;  %vm907_vm10 = vweird.f32 %v812_v63 }
 0x2bb   : > { %v743_v30 = vpop.xlane.xlu1 %742  ;;  %v731_v48 = vpop.xlane.xlu0 %730 }
 0x2bc   : > { %v763_v27 = vsub.f32 %v5843_v23, %v743_v30  ;;  %v759_v61 = vsub.f32 %v5838_v9, %v731_v48  ;;  %v911_v9 = vand.u32 2147483647, %v812_v63 }
 0x2be   : > { %v5920_v44 = vpop.eup %5099  ;;  %v792_v49 = vmul.f32 1.442695, %v763_v27  ;;  %v784_v2 = vmul.f32 1.442695, %v759_v61  ;;  %vm912_vm12 = vcmp.eq.f32.partialorder %v911_v9, 8.507059e+37 }
 0x2bf   : > { %v834_v45 = vsel %vm701_vm3, %v5920_v44, 0.0 }
 0x2c0   : > { %v5102_v0 = vpop.eup %5101  ;;  %5103 = vpow2.f32 %v792_v49  ;;  %835 = vadd.xlane.f32.xlu1 %v834_v45 }
 0x2c1   : > { %v903_v31 = vmul.f32 %v5102_v0, %v812_v63  ;;  %5105 = vpow2.f32 %v784_v2  ;;  %vm908_vm9 = vweird.f32 %v5102_v0  ;;  %v914_v2 = vor.u32 1.1754944e-38, %v913_v24 }
 0x2c2   : > { %vm909_vm11 = vmor %vm907_vm10, %vm908_vm9 }
 0x2c3   : > { %v904_v5 = vsub.f32 1.0, %v903_v31  ;;  %v800_v19 = vpop.xlane.xlu1 %799  ;;  %v749_v43 = vpop.xlane.xlu0 %748 }
 0x2c4   : > { %5107 = vrcp.f32 %v800_v19  ;;  %v765_v62 = vsub.f32 %v5853_v11, %v749_v43  ;;  %v857_v24 = vand.u32 2147483648, %v800_v19  ;;  %vm851_vm14 = vweird.f32 %v800_v19 }
 0x2c5   : > { %v905_v23 = vmul.f32 %v5102_v0, %v904_v5 }
 0x2c6   : > { %v5925_v30 = vpop.eup %5103  ;;  %v796_v61 = vmul.f32 1.442695, %v765_v62 }
 0x2c7   : > { %v5927_v48 = vpop.eup %5105  ;;  %v906_v27 = vadd.f32 %v5102_v0, %v905_v23  ;;  %v837_v49 = vsel %vm701_vm3, %v5925_v30, 0.0 }
 0x2c8   : > { %838 = vadd.xlane.f32.xlu2 %v837_v49  ;;  %v825_v45 = vsel %vm701_vm3, %v5927_v48, 0.0  ;;  %5109 = vpow2.f32 %v796_v61 }
 0x2c9   : > { %v910_v31 = vsel %vm909_vm11, %v5102_v0, %v906_v27  ;;  %826 = vadd.xlane.f32.xlu1 %v825_v45  ;;  %v830_v11 = vpop.xlane.xlu2 %829  ;;  %v855_v27 = vand.u32 2147483647, %v800_v19  ;;  %v858_v45 = vor.u32 1.1754944e-38, %v857_v24 }
 0x2ca   : > { %v5108_v5 = vpop.eup %5107  ;;  %v915_v43 = vsel %vm912_vm12, %v914_v2, %v910_v31  ;;  %5111 = vrcp.f32 %v830_v11  ;;  %vm991_vm5 = vweird.f32 %v830_v11 }
 0x2cb   : > { %v5934_v63 = vmul.f32 %v5840_v13, %v915_v43  ;;  %v847_v23 = vmul.f32 %v5108_v5, %v800_v19  ;;  %vm852_vm13 = vweird.f32 %v5108_v5  ;;  %vm856_vm0 = vcmp.eq.f32.partialorder %v855_v27, 8.507059e+37 }
 0x2cc   : > { %vm853_vm15 = vmor %vm851_vm14, %vm852_vm13  ;;  %v5026_v19 = vunpack.i.h.bf16 %v5691_v25 }
 0x2cd   : > { %v848_v62 = vsub.f32 1.0, %v847_v23  ;;  %4754 = vmatmul.msk.f32.vlgmr.msrb.gmra.mxu2 %vm701_vm3, %v5934_v63  ;;  %1089 = vst.msk [vmem:[%s5913_s14 + $0x8] sm:$0x1] %vm1086_vm8, %v5934_v63  ;;  %v997_v23 = vand.u32 2147483648, %v830_v11 }
 0x2ce   : > { %4766 = vmatpush.xpose.msk.msrb.mxu2 %vm410_vm2, %v5611_v53  ;;  %v5943_v0 = vpop.eup %5109 }
 0x2cf   : > { %v849_v9 = vmul.f32 %v5108_v5, %v848_v62  ;;  %v843_v13 = vsel %vm701_vm3, %v5943_v0, 0.0 }
 0x2d0   : > { %v5112_v61 = vpop.eup %5111 }
 0x2d1   : > { %v850_v49 = vadd.f32 %v5108_v5, %v849_v9  ;;  %v987_v2 = vmul.f32 %v5112_v61, %v830_v11  ;;  %844 = vadd.xlane.f32.xlu1 %v843_v13  ;;  %vm992_vm4 = vweird.f32 %v5112_v61  ;;  %v995_v9 = vand.u32 2147483647, %v830_v11 }
 0x2d2   : > { %4767 = vmatpush.xpose.msk.msrb.mxu2 %vm410_vm2, %v5579_v42  ;;  %v5021_v42 = vunpack.i.h.bf16 %v5600_v50  ;;  %vm993_vm6 = vmor %vm991_vm5, %vm992_vm4  ;;  %v4718_v13 = vrot.slane %v5909_v6, 9 }
 0x2d3   : > { %v854_v31 = vsel %vm853_vm15, %v5108_v5, %v850_v49  ;;  %v988_v53 = vsub.f32 1.0, %v987_v2  ;;  %v998_v5 = vor.u32 1.1754944e-38, %v997_v23  ;;  %vm996_vm7 = vcmp.eq.f32.partialorder %v995_v9, 8.507059e+37 }
 0x2d4   : > { %v859_v43 = vsel %vm856_vm0, %v858_v45, %v854_v31 }
 0x2d5   : > { %v5950_v62 = vmul.f32 %v5855_v12, %v859_v43  ;;  %v989_v58 = vmul.f32 %v5112_v61, %v988_v53 }
 0x2d7   : > { %1152 = vst.sshfl [vmem:[#allocation1] sm:$0xff pattern:$0x73625140] %v5950_v62  ;;  %v990_v24 = vadd.f32 %v5112_v61, %v989_v58  ;;  %4750 = vmatmul.msk.f32.vlgmr.msrb.gmra.mxu3 %vm701_vm3, %v5950_v62  ;;  %v4686_v11 = vrot.slane %v5950_v62, 9 }
 0x2d8   : > { %2140 = vmatpush.msrb.mxu3 %v5026_v19  ;;  %1087 = vst.msk [vmem:[%s5913_s14] sm:$0x1] %vm1086_vm8, %v5950_v62 }
 0x2d9   : > { %v994_v12 = vsel %vm993_vm6, %v5112_v61, %v990_v24  ;;  %v4688_v24 = vrot.slane %v5934_v63, 9 }
 0x2da   : > { %v999_v27 = vsel %vm996_vm7, %v998_v5, %v994_v12  ;;  %2141 = vmatpush.msrb.mxu3 %v5021_v42 }
 0x2db   : > { %v5961_v25 = vmul.f32 %v5861_v35, %v999_v27 }
 0x2dd   : > { %1092 = vst.msk [vmem:[%s5913_s14 + $0x14] sm:$0x1] %vm1086_vm8, %v5961_v25 }
 0x2de   : > { %v1154_v58 = vld [vmem:[#allocation1 + $0x1] ss:$4 sm:$0xff] }
 0x2df   : > { %1158 = vst.sshfl [vmem:[#allocation1] sm:$0xff pattern:$0x73625140] %v5934_v63  ;;  %4751 = vmatmul.msk.f32.gmra.mxu3 %vm701_vm3, %v5909_v6 }
 0x2e0   : > { %1119 = vrot.lane.b32.xlu2 %v4686_v11, %s5304_s15 }
 0x2e6   : > { %v1159_v50 = vld [vmem:[#allocation1 + $0x1] ss:$4 sm:$0xff] }
 0x2e8   : > { %1174 = vrot.lane.b32.xlu2 %v1159_v50, %s8336_s16  ;;  %v5045_v50 = vunpack.i.l.bf16 %v5689_v21 }
 0x2e9   : > { %v806_v35 = vpop.xlane.xlu0 %805 }
 0x2ea   : > { %5113 = vrcp.f32 %v806_v35  ;;  %1170 = vrot.lane.b32.xlu1 %v1154_v58, %s8336_s16  ;;  %v885_v31 = vand.u32 2147483648, %v806_v35  ;;  %v883_v43 = vand.u32 2147483647, %v806_v35  ;;  %vm879_vm10 = vweird.f32 %v806_v35 }
 0x2ec   : > { %v886_v19 = vor.u32 1.1754944e-38, %v885_v31  ;;  %vm884_vm12 = vcmp.eq.f32.partialorder %v883_v43, 8.507059e+37  ;;  %v4691_v43 = vrot.slane %v5961_v25, 9 }
 0x2f0   : > { %v5114_v61 = vpop.eup %5113 }
 0x2f1   : > { %v875_v49 = vmul.f32 %v5114_v61, %v806_v35  ;;  %v809_v2 = vpop.xlane.xlu1 %808  ;;  %vm880_vm9 = vweird.f32 %v5114_v61 }
 0x2f2   : > { %5115 = vrcp.f32 %v809_v2  ;;  %1538 = vrot.lane.b32.xlu1 %v4718_v13, %s5304_s15  ;;  %vm881_vm11 = vmor %vm879_vm10, %vm880_vm9  ;;  %v899_v35 = vand.u32 2147483648, %v809_v2  ;;  %vm893_vm14 = vweird.f32 %v809_v2 }
 0x2f3   : > { %v876_v45 = vsub.f32 1.0, %v875_v49 }
 0x2f5   : > { %v877_v53 = vmul.f32 %v5114_v61, %v876_v45  ;;  %v5046_v45 = vunpack.i.h.bf16 %v5689_v21 }
 0x2f7   : > { %v878_v23 = vadd.f32 %v5114_v61, %v877_v53  ;;  %v900_v53 = vor.u32 1.1754944e-38, %v899_v35 }
 0x2f8   : > { %v5116_v9 = vpop.eup %5115 }
 0x2f9   : > { %v882_v42 = vsel %vm881_vm11, %v5114_v61, %v878_v23  ;;  %v889_v5 = vmul.f32 %v5116_v9, %v809_v2  ;;  %v815_v12 = vpop.xlane.xlu0 %814  ;;  %vm894_vm13 = vweird.f32 %v5116_v9  ;;  %v897_v61 = vand.u32 2147483647, %v809_v2 }
 0x2fa   : > { %v887_v27 = vsel %vm884_vm12, %v886_v19, %v882_v42  ;;  %5117 = vrcp.f32 %v815_v12  ;;  %1123 = vrot.lane.b32.xlu1 %v4688_v24, %s5304_s15  ;;  %vm895_vm15 = vmor %vm893_vm14, %vm894_vm13  ;;  %v927_v2 = vand.u32 2147483648, %v815_v12  ;;  %vm921_vm5 = vweird.f32 %v815_v12 }
 0x2fb   : > { %v5978_v58 = vmul.f32 %v5867_v26, %v887_v27  ;;  %v890_v11 = vsub.f32 1.0, %v889_v5  ;;  %vm898_vm0 = vcmp.eq.f32.partialorder %v897_v61, 8.507059e+37  ;;  %v925_v27 = vand.u32 2147483647, %v815_v12 }
 0x2fd   : > { %1155 = vst.sshfl [vmem:[#allocation1 + $0x20] sm:$0xff pattern:$0x73625140] %v5978_v58  ;;  %v891_v13 = vmul.f32 %v5116_v9, %v890_v11  ;;  %4752 = vmatmul.msk.f32.vlgmr.msrb.gmra.mxu1 %vm701_vm3, %v5978_v58  ;;  %v4687_v49 = vrot.slane %v5978_v58, 9  ;;  %vm926_vm7 = vcmp.eq.f32.partialorder %v925_v27, 8.507059e+37 }
 0x2fe   : > { %2173 = vmatpush.msrb.mxu1 %v5045_v50  ;;  %1088 = vst.msk [vmem:[%s5913_s14 + $0x4] sm:$0x1] %vm1086_vm8, %v5978_v58 }
 0x2ff   : > { %v892_v26 = vadd.f32 %v5116_v9, %v891_v13  ;;  %1121 = vrot.lane.b32.xlu0 %v4687_v49, %s5304_s15 }
 0x300   : > { %v5118_v31 = vpop.eup %5117  ;;  %2174 = vmatpush.msrb.mxu1 %v5046_v45 }
 0x301   : > { %v896_v23 = vsel %vm895_vm15, %v5116_v9, %v892_v26  ;;  %v917_v19 = vmul.f32 %v5118_v31, %v815_v12  ;;  %vm922_vm4 = vweird.f32 %v5118_v31 }
 0x302   : > { %v901_v24 = vsel %vm898_vm0, %v900_v53, %v896_v23  ;;  %1129 = vrot.lane.b32.xlu1 %v4691_v43, %s5304_s15  ;;  %vm923_vm6 = vmor %vm921_vm5, %vm922_vm4 }
 0x303   : > { %v5993_v21 = vmul.f32 %v5872_v38, %v901_v24  ;;  %v918_v42 = vsub.f32 1.0, %v917_v19  ;;  %v928_v38 = vor.u32 1.1754944e-38, %v927_v2 }
 0x304   : > { %v1157_v9 = vld [vmem:[#allocation1 + $0x21] ss:$4 sm:$0xff] }
 0x305   : > { %v919_v5 = vmul.f32 %v5118_v31, %v918_v42  ;;  %4753 = vmatmul.msk.f32.gmra.mxu1 %vm701_vm3, %v5993_v21  ;;  %1507 = vst.msk [vmem:[%s5913_s14 + $0x6] sm:$0x1] %vm1086_vm8, %v5993_v21  ;;  %v4719_v45 = vrot.slane %v5993_v21, 9 }
 0x306   : > { %v824_v11 = vpop.xlane.xlu0 %823 }
 0x307   : > { %v920_v50 = vadd.f32 %v5118_v31, %v919_v5  ;;  %5119 = vrcp.f32 %v824_v11  ;;  %1172 = vrot.lane.b32.xlu0 %v1157_v9, %s8336_s16  ;;  %v967_v23 = vand.u32 2147483647, %v824_v11  ;;  %vm963_vm10 = vweird.f32 %v824_v11 }
 0x309   : > { %v924_v35 = vsel %vm923_vm6, %v5118_v31, %v920_v50  ;;  %v969_v31 = vand.u32 2147483648, %v824_v11  ;;  %vm968_vm12 = vcmp.eq.f32.partialorder %v967_v23, 8.507059e+37 }
 0x30a   : > { %v929_v13 = vsel %vm926_vm7, %v928_v38, %v924_v35 }
 0x30b   : > { %v6002_v61 = vmul.f32 %v5876_v29, %v929_v13  ;;  %v970_v42 = vor.u32 1.1754944e-38, %v969_v31 }
 0x30d   : > { %v5120_v49 = vpop.eup %5119  ;;  %4755 = vmatmul.msk.f32.gmra.mxu2 %vm701_vm3, %v6002_v61  ;;  %v4720_v26 = vrot.slane %v6002_v61, 9  ;;  %1508 = vst.msk [vmem:[%s5913_s14 + $0xa] sm:$0x1] %vm1086_vm8, %v6002_v61 }
 0x30e   : > { %v959_v12 = vmul.f32 %v5120_v49, %v824_v11  ;;  %v833_v53 = vpop.xlane.xlu0 %832  ;;  %vm964_vm9 = vweird.f32 %v5120_v49 }
 0x30f   : > { %5121 = vrcp.f32 %v833_v53  ;;  %1540 = vrot.lane.b32.xlu0 %v4719_v45, %s5304_s15  ;;  %1542 = vrot.lane.b32.xlu2 %v4720_v26, %s5304_s15  ;;  %vm965_vm11 = vmor %vm963_vm10, %vm964_vm9  ;;  %v1011_v38 = vand.u32 2147483648, %v833_v53  ;;  %v1009_v35 = vand.u32 2147483647, %v833_v53  ;;  %vm1005_vm14 = vweird.f32 %v833_v53 }
 0x310   : > { %v960_v29 = vsub.f32 1.0, %v959_v12 }
 0x311   : > { %vm1010_vm0 = vcmp.eq.f32.partialorder %v1009_v35, 8.507059e+37 }
 0x312   : > { %v961_v43 = vmul.f32 %v5120_v49, %v960_v29 }
 0x314   : > { %v962_v19 = vadd.f32 %v5120_v49, %v961_v43 }
 0x315   : > { %v5122_v24 = vpop.eup %5121  ;;  %4760 = vmatmul.msk.f32.vlgmr.msra.gmra.mxu2 %vm701_vm3, %v5961_v25 }
 0x316   : > { %v966_v2 = vsel %vm965_vm11, %v5120_v49, %v962_v19  ;;  %v1001_v5 = vmul.f32 %v5122_v24, %v833_v53  ;;  %4778 = vmatpush.xpose.msk.msra.mxu2 %vm410_vm2, %v5765_v16  ;;  %vm1006_vm13 = vweird.f32 %v5122_v24  ;;  %v1012_v49 = vor.u32 1.1754944e-38, %v1011_v38 }
 0x317   : > { %v971_v27 = vsel %vm968_vm12, %v970_v42, %v966_v2  ;;  %vm1007_vm15 = vmor %vm1005_vm14, %vm1006_vm13 }
 0x318   : > { %v6018_v9 = vmul.f32 %v5882_v18, %v971_v27  ;;  %v1002_v50 = vsub.f32 1.0, %v1001_v5 }
 0x31a   : > { %1162 = vst.sshfl [vmem:[#allocation1] sm:$0xff pattern:$0x73625140] %v6018_v9  ;;  %v1003_v11 = vmul.f32 %v5122_v24, %v1002_v50  ;;  %4758 = vmatmul.msk.f32.vlgmr.msra.gmra.mxu1 %vm701_vm3, %v6018_v9  ;;  %v842_v13 = vpop.xlane.xlu0 %841  ;;  %4779 = vmatpush.xpose.msk.msra.mxu2 %vm410_vm2, %v5721_v47  ;;  %v4690_v16 = vrot.slane %v6018_v9, 9 }
 0x31b   : > { %4774 = vmatpush.xpose.msk.msra.mxu1 %vm410_vm2, %v5713_v37  ;;  %5123 = vrcp.f32 %v842_v13  ;;  %1091 = vst.msk [vmem:[%s5913_s14 + $0x10] sm:$0x1] %vm1086_vm8, %v6018_v9  ;;  %v1053_v31 = vand.u32 2147483648, %v842_v13  ;;  %v1051_v23 = vand.u32 2147483647, %v842_v13  ;;  %vm1047_vm5 = vweird.f32 %v842_v13 }
 0x31c   : > { %v1004_v18 = vadd.f32 %v5122_v24, %v1003_v11  ;;  %1127 = vrot.lane.b32.xlu2 %v4690_v16, %s5304_s15 }
 0x31d   : > { %vm1052_vm7 = vcmp.eq.f32.partialorder %v1051_v23, 8.507059e+37 }
 0x31e   : > { %v1008_v45 = vsel %vm1007_vm15, %v5122_v24, %v1004_v18 }
 0x31f   : > { %v1013_v26 = vsel %vm1010_vm0, %v1012_v49, %v1008_v45  ;;  %4775 = vmatpush.xpose.msk.msra.mxu1 %vm410_vm2, %v5715_v40  ;;  %v1054_v40 = vor.u32 1.1754944e-38, %v1053_v31 }
 0x320   : > { %v6035_v47 = vmul.f32 %v5886_v3, %v1013_v26 }
 0x321   : > { %v5124_v37 = vpop.eup %5123 }
 0x322   : > { %v1043_v12 = vmul.f32 %v5124_v37, %v842_v13  ;;  %4761 = vmatmul.msk.f32.gmra.mxu2 %vm701_vm3, %v6035_v47  ;;  %1511 = vst.msk [vmem:[%s5913_s14 + $0x16] sm:$0x1] %vm1086_vm8, %v6035_v47  ;;  %vm1048_vm4 = vweird.f32 %v5124_v37 }
 0x323   : > { %v818_v53 = vpop.xlane.xlu1 %817  ;;  %vm1049_vm6 = vmor %vm1047_vm5, %vm1048_vm4 }
 0x324   : > { %v1044_v29 = vsub.f32 1.0, %v1043_v12  ;;  %5125 = vrcp.f32 %v818_v53  ;;  %v941_v38 = vand.u32 2147483648, %v818_v53  ;;  %v939_v35 = vand.u32 2147483647, %v818_v53 }
 0x325   : > { %vm935_vm10 = vweird.f32 %v818_v53 }
 0x326   : > { %v1045_v43 = vmul.f32 %v5124_v37, %v1044_v29  ;;  %vm940_vm12 = vcmp.eq.f32.partialorder %v939_v35, 8.507059e+37 }
 0x328   : > { %v1046_v19 = vadd.f32 %v5124_v37, %v1045_v43  ;;  %v5036_v43 = vunpack.i.h.bf16 %v5734_v56 }
 0x32a   : > { %v5126_v3 = vpop.eup %5125  ;;  %v1050_v24 = vsel %vm1049_vm6, %v5124_v37, %v1046_v19  ;;  %4768 = vmatmul.msk.f32.vlgmr.msrb.gmra.mxu2 %vm410_vm2, %v5549_v34  ;;  %vm1143_vm6 = vcmask 254080  }
 0x32b   : > { %v1055_v42 = vsel %vm1052_vm7, %v1054_v40, %v1050_v24  ;;  %v931_v2 = vmul.f32 %v5126_v3, %v818_v53  ;;  %4790 = vmatpush.xpose.msk.msrb.mxu2 %vm410_vm2, %v5695_v28  ;;  %v821_v5 = vpop.xlane.xlu2 %820  ;;  %vm936_vm9 = vweird.f32 %v5126_v3  ;;  %v942_v28 = vor.u32 1.1754944e-38, %v941_v38 }
 0x32c   : > { %v6047_v27 = vmul.f32 %v5892_v57, %v1055_v42  ;;  %5127 = vrcp.f32 %v821_v5  ;;  %vm937_vm11 = vmor %vm935_vm10, %vm936_vm9  ;;  %v953_v12 = vand.u32 2147483647, %v821_v5  ;;  %vm949_vm14 = vweird.f32 %v821_v5 }
 0x32d   : > { %v932_v50 = vsub.f32 1.0, %v931_v2 }
 0x32e   : > { %1094 = vst.msk [vmem:[%s5913_s14 + $0x1c] sm:$0x1] %vm1086_vm8, %v6047_v27  ;;  %vm954_vm0 = vcmp.eq.f32.partialorder %v953_v12, 8.507059e+37 }
 0x32f   : > { %v933_v11 = vmul.f32 %v5126_v3, %v932_v50  ;;  %4791 = vmatpush.xpose.msk.msrb.mxu2 %vm410_vm2, %v5679_v14  ;;  %v955_v14 = vand.u32 2147483648, %v821_v5 }
 0x331   : > { %v934_v34 = vadd.f32 %v5126_v3, %v933_v11  ;;  %v956_v31 = vor.u32 1.1754944e-38, %v955_v14 }
 0x332   : > { %v5128_v13 = vpop.eup %5127  ;;  %4769 = vmatmul.msk.f32.gmra.mxu2 %vm410_vm2, %v5571_v41 }
 0x333   : > { %v938_v57 = vsel %vm937_vm11, %v5126_v3, %v934_v34  ;;  %v945_v16 = vmul.f32 %v5128_v13, %v821_v5  ;;  %v836_v18 = vpop.xlane.xlu1 %835  ;;  %vm950_vm13 = vweird.f32 %v5128_v13 }
 0x334   : > { %v943_v49 = vsel %vm940_vm12, %v942_v28, %v938_v57  ;;  %5129 = vrcp.f32 %v836_v18  ;;  %vm951_vm15 = vmor %vm949_vm14, %vm950_vm13  ;;  %v1025_v42 = vand.u32 2147483648, %v836_v18  ;;  %v1023_v5 = vand.u32 2147483647, %v836_v18 }
 0x335   : > { %v6057_v45 = vmul.f32 %v5897_v1, %v943_v49  ;;  %v946_v26 = vsub.f32 1.0, %v945_v16  ;;  %v5035_v1 = vunpack.i.l.bf16 %v5734_v56  ;;  %vm1019_vm5 = vweird.f32 %v836_v18  ;;  %v6099_v16 = vld [vmem:[#allocation1 + $0x1] ss:$4 sm:$0xff] }
 0x336   : > { %v1026_v50 = vor.u32 1.1754944e-38, %v1025_v42  ;;  %vm1024_vm9 = vcmp.eq.f32.partialorder %v1023_v5, 8.507059e+37 }
 0x337   : > { %1160 = vst.sshfl [vmem:[#allocation1 + $0x20] sm:$0xff pattern:$0x73625140] %v6057_v45  ;;  %v947_v37 = vmul.f32 %v5128_v13, %v946_v26  ;;  %4756 = vmatmul.msk.f32.vlgmr.msra.gmra.mxu3 %vm701_vm3, %v6057_v45  ;;  %v4689_v41 = vrot.slane %v6057_v45, 9 }
 0x338   : > { %4770 = vmatpush.xpose.msk.msra.mxu3 %vm410_vm2, %v5663_v7  ;;  %1090 = vst.msk [vmem:[%s5913_s14 + $0xc] sm:$0x1] %vm1086_vm8, %v6057_v45 }
 0x339   : > { %v948_v53 = vadd.f32 %v5128_v13, %v947_v37  ;;  %1125 = vrot.lane.b32.xlu0 %v4689_v41, %s5304_s15 }
 0x33a   : > { %v5130_v29 = vpop.eup %5129  ;;  %4780 = vmatmul.msk.f32.vlgmr.msra.gmra.mxu2 %vm410_vm2, %v5726_v51 }
 0x33b   : > { %v952_v23 = vsel %vm951_vm15, %v5128_v13, %v948_v53  ;;  %v1015_v7 = vmul.f32 %v5130_v29, %v836_v18  ;;  %3793 = vmatpush.msra.mxu2 %v5035_v1  ;;  %v6073_v19 = vpop.xlane.xlu2 %838  ;;  %vm1020_vm4 = vweird.f32 %v5130_v29 }
 0x33c   : > { %v957_v40 = vsel %vm954_vm0, %v956_v31, %v952_v23  ;;  %v6075_v3 = vpop.xlane.xlu1 %826  ;;  %4771 = vmatpush.xpose.msk.msra.mxu3 %vm410_vm2, %v5615_v55  ;;  %5131 = vrcp.f32 %v6073_v19  ;;  %vm1021_vm7 = vmor %vm1019_vm5, %vm1020_vm4  ;;  %v1039_v37 = vand.u32 2147483648, %v6073_v19  ;;  %v5030_v31 = vunpack.i.l.bf16 %v5705_v32 }
 0x33d   : > { %v6081_v24 = vmul.f32 %v5906_v52, %v957_v40  ;;  %v1016_v51 = vsub.f32 1.0, %v1015_v7  ;;  %5133 = vrcp.f32 %v6075_v3  ;;  %3794 = vmatpush.msra.mxu2 %v5036_v43  ;;  %v983_v41 = vand.u32 2147483648, %v6075_v3 }
 0x33e   : > { %v1161_v56 = vld [vmem:[#allocation1 + $0x21] ss:$4 sm:$0xff]  ;;  %vm1033_vm12 = vweird.f32 %v6073_v19  ;;  %vm977_vm13 = vweird.f32 %v6075_v3  ;;  %v1040_v7 = vor.u32 1.1754944e-38, %v1039_v37  ;;  %v5031_v40 = vunpack.i.h.bf16 %v5705_v32 }
 0x33f   : > { %1164 = vst.sshfl [vmem:[#allocation1 + $0x20] sm:$0xff pattern:$0x73625140] %v5961_v25  ;;  %v1017_v2 = vmul.f32 %v5130_v29, %v1016_v51  ;;  %1176 = vrot.lane.b32.xlu1 %v1161_v56, %s8336_s16  ;;  %4757 = vmatmul.msk.f32.gmra.mxu3 %vm701_vm3, %v6081_v24  ;;  %v4721_v12 = vrot.slane %v6081_v24, 9  ;;  %v4723_v32 = vrot.slane %v6035_v47, 9  ;;  %v5015_v37 = vunpack.i.l.bf16 %v5588_v46 }
 0x340   : > { %1509 = vst.msk [vmem:[%s5913_s14 + $0xe] sm:$0x1] %vm1086_vm8, %v6081_v24 }
 0x341   : > { %v1018_v55 = vadd.f32 %v5130_v29, %v1017_v2 }
 0x342   : > { %v5132_v52 = vpop.eup %5131  ;;  %4781 = vmatmul.msk.f32.gmra.mxu2 %vm410_vm2, %v5711_v36  ;;  %v1037_v36 = vand.u32 2147483647, %v6073_v19 }
 0x343   : > { %v5134_v38 = vpop.eup %5133  ;;  %v1022_v11 = vsel %vm1021_vm7, %v5130_v29, %v1018_v55  ;;  %v1029_v35 = vmul.f32 %v5132_v52, %v6073_v19  ;;  %v1120_v34 = vpop.permute.xlu2 %1119  ;;  %vm1034_vm10 = vweird.f32 %v5132_v52  ;;  %v981_v29 = vand.u32 2147483647, %v6075_v3 }
 0x344   : > { %v1027_v13 = vsel %vm1024_vm9, %v1026_v50, %v1022_v11  ;;  %v973_v28 = vmul.f32 %v5134_v38, %v6075_v3  ;;  %v6095_v57 = vpop.xlane.xlu1 %844  ;;  %1144 = vst.msk [vmem:[%s5913_s14] sm:$0x1] %vm1143_vm6, %v1120_v34  ;;  %vm978_vm11 = vweird.f32 %v5134_v38  ;;  %vm1035_vm14 = vmor %vm1033_vm12, %vm1034_vm10  ;;  %v984_v19 = vor.u32 1.1754944e-38, %v983_v41 }
 0x345   : > { %v6102_v18 = vmul.f32 %v5920_v44, %v1027_v13  ;;  %v1030_v49 = vsub.f32 1.0, %v1029_v35  ;;  %5135 = vrcp.f32 %v6095_v57  ;;  %vm979_vm15 = vmor %vm977_vm13, %vm978_vm11  ;;  %vm1038_vm0 = vcmp.eq.f32.partialorder %v1037_v36, 8.507059e+37 }
 0x346   : > { %v1165_v26 = vld [vmem:[#allocation1 + $0x21] ss:$4 sm:$0xff]  ;;  %v974_v14 = vsub.f32 1.0, %v973_v28  ;;  %vm982_vm4 = vcmp.eq.f32.partialorder %v981_v29, 8.507059e+37  ;;  %vm1061_vm7 = vweird.f32 %v6095_v57  ;;  %v4693_v13 = vrot.slane %v6047_v27, 9 }
 0x347   : > { %1168 = vst.sshfl [vmem:[#allocation1 + $0x20] sm:$0xff pattern:$0x73625140] %v6047_v27  ;;  %v1031_v1 = vmul.f32 %v5132_v52, %v1030_v49  ;;  %1180 = vrot.lane.b32.xlu2 %v1165_v26, %s8336_s16  ;;  %4762 = vmatmul.msk.f32.vlgmr.msrb.gmra.mxu3 %vm701_vm3, %v6102_v18  ;;  %v4692_v44 = vrot.slane %v6102_v18, 9  ;;  %vm1194_vm11 = vcmask 385280   ;;  %vm8334_vm12 = vcmask 516480  }
 0x348   : > { %1166 = vst.sshfl [vmem:[#allocation1] sm:$0xff pattern:$0x73625140] %v6102_v18  ;;  %v975_v53 = vmul.f32 %v5134_v38, %v974_v14  ;;  %4782 = vmatpush.xpose.msk.msrb.mxu3 %vm410_vm2, %v5562_v39  ;;  %1544 = vrot.lane.b32.xlu1 %v4721_v12, %s5304_s15  ;;  %v8356_v12 = vld [vmem:[#allocation9_spill] sm:$0xff]  ;;  %vm8333_vm13 = vcmask 647680  }
 0x349   : > { %v1032_v43 = vadd.f32 %v5132_v52, %v1031_v1  ;;  %1093 = vst.msk [vmem:[%s5913_s14 + $0x18] sm:$0x1] %vm1086_vm8, %v6102_v18  ;;  %1131 = vrot.lane.b32.xlu0 %v4692_v44, %s5304_s15  ;;  %v8357_v41 = vunpack.i.l.bf16 %v8356_v12 }
 0x34a   : > { %v976_v23 = vadd.f32 %v5134_v38, %v975_v53  ;;  %4792 = vmatmul.msk.f32.vlgmr.msrb.gmra.mxu2 %vm410_vm2, %v5685_v17  ;;  %v5016_v53 = vunpack.i.h.bf16 %v5588_v46 }
 0x34b   : > { %v5136_v39 = vpop.eup %5135  ;;  %v1036_v51 = vsel %vm1035_vm14, %v5132_v52, %v1032_v43  ;;  %3925 = vmatpush.msrb.mxu2 %v5030_v31  ;;  %v8359_v43 = vld [vmem:[#allocation8_spill] sm:$0xff]  ;;  %vm1379_vm14 = vcmask 778880  }
 0x34c   : > { %v980_v56 = vsel %vm979_vm15, %v5134_v38, %v976_v23  ;;  %v1041_v42 = vsel %vm1038_vm0, %v1040_v7, %v1036_v51  ;;  %v1057_v3 = vmul.f32 %v5136_v39, %v6095_v57  ;;  %4783 = vmatpush.xpose.msk.msrb.mxu3 %vm410_vm2, %v5801_v8  ;;  %v1067_v38 = vand.u32 2147483648, %v6095_v57  ;;  %v8360_v7 = vld [vmem:[#allocation16_spill] sm:$0xff] }
 0x34d   : > { %v985_v2 = vsel %vm982_vm4, %v984_v19, %v980_v56  ;;  %v6135_v17 = vmul.f32 %v5925_v30, %v1041_v42  ;;  %3926 = vmatpush.msrb.mxu2 %v5031_v40  ;;  %vm1062_vm5 = vweird.f32 %v5136_v39  ;;  %v1065_v30 = vand.u32 2147483647, %v6095_v57  ;;  %v8361_v56 = vld [vmem:[#allocation15_spill] sm:$0xff] }
 0x34e   : > { %v1169_v5 = vld [vmem:[#allocation1 + $0x21] ss:$4 sm:$0xff]  ;;  %v6139_v55 = vmul.f32 %v5927_v48, %v985_v2  ;;  %v1058_v52 = vsub.f32 1.0, %v1057_v3  ;;  %vm1063_vm9 = vmor %vm1061_vm7, %vm1062_vm5  ;;  %v1068_v11 = vor.u32 1.1754944e-38, %v1067_v38  ;;  %v5060_v42 = vunpack.i.l.bf16 %v8361_v56 }
 0x34f   : > { %1206 = vst.sshfl [vmem:[#allocation1 + $0x20] sm:$0xff pattern:$0x73625140] %v5978_v58  ;;  %v1167_v50 = vld [vmem:[#allocation1 + $0x1] ss:$4 sm:$0xff]  ;;  %1548 = vrot.lane.b32.xlu2 %v4723_v32, %s5304_s15  ;;  %4763 = vmatmul.msk.f32.gmra.mxu3 %vm701_vm3, %v6135_v17  ;;  %vm1066_vm10 = vcmp.eq.f32.partialorder %v1065_v30, 8.507059e+37 }
 0x350   : > { %1203 = vst.sshfl [vmem:[#allocation1] sm:$0xff pattern:$0x73625140] %v5950_v62  ;;  %v1059_v8 = vmul.f32 %v5136_v39, %v1058_v52  ;;  %4759 = vmatmul.msk.f32.gmra.mxu1 %vm701_vm3, %v6139_v55  ;;  %1182 = vrot.lane.b32.xlu1 %v1167_v50, %s8336_s16  ;;  %v8362_v32 = vld [vmem:[#allocation13_spill] sm:$0xff]  ;;  %v8363_v50 = vld [vmem:[#allocation12_spill] sm:$0xff]  ;;  %v8364_v38 = vld [vmem:[#allocation11_spill] sm:$0xff] }
 0x351   : > { %1510 = vst.msk [vmem:[%s5913_s14 + $0x12] sm:$0x1] %vm1086_vm8, %v6139_v55  ;;  %1178 = vrot.lane.b32.xlu0 %v6099_v16, %s8336_s16  ;;  %v5006_v30 = vunpack.i.h.bf16 %v8362_v32  ;;  %vm1430_vm15 = vcmask 910080   ;;  %vm1497_vm0 = vcmask 1041280  }
 0x352   : > { %v1060_v48 = vadd.f32 %v5136_v39, %v1059_v8  ;;  %1512 = vst.msk [vmem:[%s5913_s14 + $0x1a] sm:$0x1] %vm1086_vm8, %v6135_v17  ;;  %4793 = vmatmul.msk.f32.gmra.mxu2 %vm410_vm2, %v5628_v59  ;;  %v4724_v59 = vrot.slane %v6135_v17, 9 }
 0x354   : > { %v1064_v35 = vsel %vm1063_vm9, %v5136_v39, %v1060_v48  ;;  %v5061_v48 = vunpack.i.h.bf16 %v8361_v56 }
 0x355   : > { %v1069_v34 = vsel %vm1066_vm10, %v1068_v11, %v1064_v35 }
 0x356   : > { %v1208_v28 = vld [vmem:[#allocation1 + $0x21] ss:$4 sm:$0xff]  ;;  %v6164_v16 = vmul.f32 %v5943_v0, %v1069_v34  ;;  %v4722_v0 = vrot.slane %v6139_v55, 9 }
 0x357   : > { %1211 = vst.sshfl [vmem:[#allocation1 + $0x20] sm:$0xff pattern:$0x73625140] %v6057_v45  ;;  %v1205_v57 = vld [vmem:[#allocation1 + $0x1] ss:$4 sm:$0xff]  ;;  %1133 = vrot.lane.b32.xlu2 %v4693_v13, %s5304_s15  ;;  %4772 = vmatmul.msk.f32.vlgmr.msra.gmra.mxu3 %vm410_vm2, %v5681_v15  ;;  %v4695_v36 = vrot.slane %v1208_v28, 9 }
 0x358   : > { %1209 = vst.sshfl [vmem:[#allocation1] sm:$0xff pattern:$0x73625140] %v5934_v63  ;;  %4764 = vmatmul.msk.f32.vlgmr.msrb.gmra.mxu1 %vm701_vm3, %v6047_v27  ;;  %4794 = vmatpush.xpose.msk.msra.mxu3 %vm410_vm2, %v5693_v20  ;;  %v4694_v20 = vrot.slane %v1205_v57, 9  ;;  %v4725_v1 = vrot.slane %v6164_v16, 9  ;;  %v8365_v13 = vld [vmem:[#allocation17_spill] sm:$0xff] }
 0x359   : > { %1513 = vst.msk [vmem:[%s5913_s14 + $0x1e] sm:$0x1] %vm1086_vm8, %v6164_v16  ;;  %4786 = vmatpush.xpose.msk.msrb.mxu1 %vm410_vm2, %v5632_v60  ;;  %1550 = vrot.lane.b32.xlu1 %v4724_v59, %s5304_s15  ;;  %v8366_v28 = vld [vmem:[#allocation10_spill] sm:$0xff] }
 0x35a   : > { %1546 = vrot.lane.b32.xlu0 %v4722_v0, %s5304_s15 }
 0x35c   : > { %v1171_v15 = vpop.permute.xlu1 %1170  ;;  %4795 = vmatpush.xpose.msk.msra.mxu3 %vm410_vm2, %v5671_v10  ;;  %v1175_v10 = vpop.permute.xlu2 %1174 }
 0x35d   : > { %1195 = vst.msk [vmem:[%s5913_s14] sm:$0x1] %vm1194_vm11, %v1171_v15  ;;  %4787 = vmatpush.xpose.msk.msrb.mxu1 %vm410_vm2, %v5659_v4 }
 0x35e   : > { %v1212_v49 = vld [vmem:[#allocation1 + $0x21] ss:$4 sm:$0xff] }
 0x35f   : > { %1215 = vst.sshfl [vmem:[#allocation1 + $0x20] sm:$0xff pattern:$0x73625140] %v5961_v25  ;;  %v1210_v60 = vld [vmem:[#allocation1 + $0x1] ss:$4 sm:$0xff]  ;;  %1237 = vrot.lane.b32.xlu2 %v4694_v20, %s8339_s17  ;;  %4773 = vmatmul.msk.f32.gmra.mxu3 %vm410_vm2, %v5709_v33  ;;  %v4697_v26 = vrot.slane %v1212_v49, 9 }
 0x360   : > { %1213 = vst.sshfl [vmem:[#allocation1] sm:$0xff pattern:$0x73625140] %v6018_v9  ;;  %4765 = vmatmul.msk.f32.gmra.mxu1 %vm701_vm3, %v6164_v16  ;;  %v4696_v39 = vrot.slane %v1210_v60, 9 }
 0x361   : > { %1239 = vrot.lane.b32.xlu1 %v4695_v36, %s8339_s17 }
 0x362   : > { %1184 = vrot.lane.b32.xlu0 %v1169_v5, %s8336_s16  ;;  %v5005_v5 = vunpack.i.l.bf16 %v8362_v32 }
 0x364   : > { %v1539_v4 = vpop.permute.xlu1 %1538 }
 0x365   : > { %1562 = vst.msk [vmem:[%s5913_s14 + $0x2] sm:$0x1] %vm1143_vm6, %v1539_v4 }
 0x366   : > { %v1216_v14 = vld [vmem:[#allocation1 + $0x21] ss:$4 sm:$0xff] }
 0x367   : > { %1219 = vst.sshfl [vmem:[#allocation1 + $0x20] sm:$0xff pattern:$0x73625140] %v6047_v27  ;;  %v1214_v33 = vld [vmem:[#allocation1 + $0x1] ss:$4 sm:$0xff]  ;;  %1243 = vrot.lane.b32.xlu2 %v4697_v26, %s8339_s17  ;;  %4784 = vmatmul.msk.f32.vlgmr.msrb.gmra.mxu3 %vm410_vm2, %v5810_v54  ;;  %v8358_v54 = vunpack.i.h.bf16 %v8356_v12  ;;  %v4699_v8 = vrot.slane %v1216_v14, 9 }
 0x368   : > { %1217 = vst.sshfl [vmem:[#allocation1] sm:$0xff pattern:$0x73625140] %v6102_v18  ;;  %4776 = vmatmul.msk.f32.vlgmr.msra.gmra.mxu1 %vm410_vm2, %v5719_v22  ;;  %4923 = vmatpush.msrb.mxu3 %v8357_v41  ;;  %v4698_v44 = vrot.slane %v1214_v33, 9 }
 0x369   : > { %3760 = vmatpush.msra.mxu1 %v5015_v37  ;;  %v1543_v29 = vpop.permute.xlu2 %1542 }
 0x36a   : > { %1552 = vrot.lane.b32.xlu0 %v4725_v1, %s5304_s15  ;;  %4924 = vmatpush.msrb.mxu3 %v8358_v54  ;;  %1564 = vst.msk [vmem:[%s5913_s14 + $0xa] sm:$0x1] %vm1143_vm6, %v1543_v29 }
 0x36b   : > { %3761 = vmatpush.msra.mxu1 %v5016_v53  ;;  %1245 = vrot.lane.b32.xlu1 %v4698_v44, %s8339_s17 }
 0x36c   : > { %v1124_v22 = vpop.permute.xlu1 %1123 }
 0x36d   : > { %1146 = vst.msk [vmem:[%s5913_s14 + $0x8] sm:$0x1] %vm1143_vm6, %v1124_v22 }
 0x36e   : > { %v1220_v31 = vld [vmem:[#allocation1 + $0x21] ss:$4 sm:$0xff]  ;;  %1197 = vst.msk [vmem:[%s5913_s14 + $0x8] sm:$0x1] %vm1194_vm11, %v1175_v10 }
 0x36f   : > { %1273 = vst.sshfl [vmem:[#allocation1 + $0x20] sm:$0xff pattern:$0x73625140] %v5978_v58  ;;  %v1218_v46 = vld [vmem:[#allocation1 + $0x1] ss:$4 sm:$0xff]  ;;  %4785 = vmatmul.msk.f32.gmra.mxu3 %vm410_vm2, %v8359_v43  ;;  %v4701_v23 = vrot.slane %v1220_v31, 9 }
 0x370   : > { %1270 = vst.sshfl [vmem:[#allocation1] sm:$0xff pattern:$0x73625140] %v5950_v62  ;;  %4777 = vmatmul.msk.f32.gmra.mxu1 %vm410_vm2, %v8360_v7  ;;  %v4700_v40 = vrot.slane %v1218_v46, 9 }
 0x371   : > { %v1122_v19 = vpop.permute.xlu0 %1121 }
 0x372   : > { %1145 = vst.msk [vmem:[%s5913_s14 + $0x4] sm:$0x1] %vm1143_vm6, %v1122_v19  ;;  %1241 = vrot.lane.b32.xlu0 %v4696_v39, %s8339_s17  ;;  %1249 = vrot.lane.b32.xlu2 %v4700_v40, %s8339_s17  ;;  %v6298_v40 = vpop.f32.mrf.mxu3 }
 0x373   : > { %1251 = vrot.lane.b32.xlu1 %v4701_v23, %s8339_s17  ;;  %8367 = vst [vmem:[#allocation9_spill] sm:$0xff] %v6298_v40 }
 0x374   : > { %v1130_v51 = vpop.permute.xlu1 %1129 }
 0x375   : > { %1149 = vst.msk [vmem:[%s5913_s14 + $0x14] sm:$0x1] %vm1143_vm6, %v1130_v51 }
 0x376   : > { %v1275_v3 = vld [vmem:[#allocation1 + $0x22] ss:$4 sm:$0xff]  ;;  %v1128_v2 = vpop.permute.xlu2 %1127 }
 0x377   : > { %1278 = vst.sshfl [vmem:[#allocation1 + $0x20] sm:$0xff pattern:$0x73625140] %v6057_v45  ;;  %v1272_v52 = vld [vmem:[#allocation1 + $0x2] ss:$4 sm:$0xff]  ;;  %4796 = vmatmul.msk.f32.vlgmr.msra.gmra.mxu3 %vm410_vm2, %v8363_v50 }
 0x378   : > { %1276 = vst.sshfl [vmem:[#allocation1] sm:$0xff pattern:$0x73625140] %v5934_v63  ;;  %4788 = vmatmul.msk.f32.vlgmr.msrb.gmra.mxu1 %vm410_vm2, %v8364_v38  ;;  %3826 = vmatpush.msra.mxu3 %v5060_v42  ;;  %v6321_v38 = vpop.f32.mrf.mxu2 }
 0x379   : > { %1148 = vst.msk [vmem:[%s5913_s14 + $0x10] sm:$0x1] %vm1143_vm6, %v1128_v2  ;;  %3892 = vmatpush.msrb.mxu1 %v5005_v5  ;;  %v1173_v11 = vpop.permute.xlu0 %1172 }
 0x37a   : > { %1196 = vst.msk [vmem:[%s5913_s14 + $0x4] sm:$0x1] %vm1194_vm11, %v1173_v11  ;;  %1247 = vrot.lane.b32.xlu0 %v4699_v8, %s8339_s17  ;;  %1290 = vrot.lane.b32.xlu2 %v1275_v3, %s8337_s18  ;;  %v6313_v2 = vpop.f32.mrf.mxu3 }
 0x37b   : > { %3893 = vmatpush.msrb.mxu1 %v5006_v30  ;;  %3827 = vmatpush.msra.mxu3 %v5061_v48  ;;  %8368 = vst [vmem:[#allocation8_spill] sm:$0xff] %v6313_v2  ;;  %v6325_v30 = vpop.f32.mrf.mxu1 }
 0x37c   : > { %8369 = vst [vmem:[#allocation16_spill] sm:$0xff] %v6321_v38 }
 0x37d   : > { %8370 = vst [vmem:[#allocation15_spill] sm:$0xff] %v6325_v30 }
 0x37e   : > { %v1279_v35 = vld [vmem:[#allocation1 + $0x22] ss:$4 sm:$0xff] }
 0x37f   : > { %1282 = vst.sshfl [vmem:[#allocation1 + $0x20] sm:$0xff pattern:$0x73625140] %v5961_v25  ;;  %v1277_v34 = vld [vmem:[#allocation1 + $0x2] ss:$4 sm:$0xff]  ;;  %4797 = vmatmul.msk.f32.gmra.mxu3 %vm410_vm2, %v8365_v13 }
 0x380   : > { %1280 = vst.sshfl [vmem:[#allocation1] sm:$0xff pattern:$0x73625140] %v6018_v9  ;;  %4789 = vmatmul.msk.f32.gmra.mxu1 %vm410_vm2, %v8366_v28  ;;  %1292 = vrot.lane.b32.xlu1 %v1277_v34, %s8337_s18 }
 0x381   : > { %v1541_v57 = vpop.permute.xlu0 %1540 }
 0x382   : > { %1563 = vst.msk [vmem:[%s5913_s14 + $0x6] sm:$0x1] %vm1143_vm6, %v1541_v57  ;;  %1288 = vrot.lane.b32.xlu0 %v1272_v52, %s8337_s18 }
 0x386   : > { %v1283_v59 = vld [vmem:[#allocation1 + $0x22] ss:$4 sm:$0xff] }
 0x387   : > { %1286 = vst.sshfl [vmem:[#allocation1 + $0x20] sm:$0xff pattern:$0x73625140] %v6047_v27  ;;  %v1281_v0 = vld [vmem:[#allocation1 + $0x2] ss:$4 sm:$0xff] }
 0x388   : > { %1284 = vst.sshfl [vmem:[#allocation1] sm:$0xff pattern:$0x73625140] %v6102_v18  ;;  %1296 = vrot.lane.b32.xlu2 %v1281_v0, %s8337_s18  ;;  %1298 = vrot.lane.b32.xlu1 %v1283_v59, %s8337_s18  ;;  %v6344_v59 = vpop.f32.mrf.mxu1 }
 0x389   : > { %8373 = vst [vmem:[#allocation11_spill] sm:$0xff] %v6344_v59 }
 0x38a   : > { %1294 = vrot.lane.b32.xlu0 %v1279_v35, %s8337_s18 }
 0x38e   : > { %v1287_v15 = vld [vmem:[#allocation1 + $0x22] ss:$4 sm:$0xff] }
 0x38f   : > { %1324 = vst.sshfl [vmem:[#allocation1 + $0x20] sm:$0xff pattern:$0x73625140] %v5978_v58  ;;  %v1285_v20 = vld [vmem:[#allocation1 + $0x2] ss:$4 sm:$0xff] }
 0x390   : > { %1321 = vst.sshfl [vmem:[#allocation1] sm:$0xff pattern:$0x73625140] %v5950_v62  ;;  %1302 = vrot.lane.b32.xlu2 %v1287_v15, %s8337_s18  ;;  %v6337_v28 = vpop.f32.mrf.mxu2 }
 0x391   : > { %8372 = vst [vmem:[#allocation12_spill] sm:$0xff] %v6337_v28 }
 0x392   : > { %1300 = vrot.lane.b32.xlu0 %v1285_v20, %s8337_s18 }
 0x396   : > { %v1326_v49 = vld [vmem:[#allocation1 + $0x22] ss:$4 sm:$0xff] }
 0x397   : > { %1329 = vst.sshfl [vmem:[#allocation1 + $0x20] sm:$0xff pattern:$0x73625140] %v6057_v45  ;;  %v1323_v60 = vld [vmem:[#allocation1 + $0x2] ss:$4 sm:$0xff]  ;;  %v4703_v36 = vrot.slane %v1326_v49, 9 }
 0x398   : > { %1327 = vst.sshfl [vmem:[#allocation1] sm:$0xff pattern:$0x73625140] %v5934_v63  ;;  %v4702_v10 = vrot.slane %v1323_v60, 9  ;;  %v6358_v60 = vpop.f32.mrf.mxu2 }
 0x399   : > { %8375 = vst [vmem:[#allocation10_spill] sm:$0xff] %v6358_v60 }
 0x39a   : > { %1357 = vrot.lane.b32.xlu0 %v4703_v36, %s5308_s26  ;;  %1355 = vrot.lane.b32.xlu1 %v4702_v10, %s5308_s26  ;;  %v6361_v10 = vpop.f32.mrf.mxu1 }
 0x39b   : > { %8376 = vst [vmem:[#allocation18_spill] sm:$0xff] %v6361_v10 }
 0x39e   : > { %v1330_v4 = vld [vmem:[#allocation1 + $0x22] ss:$4 sm:$0xff] }
 0x39f   : > { %1333 = vst.sshfl [vmem:[#allocation1 + $0x20] sm:$0xff pattern:$0x73625140] %v5961_v25  ;;  %v1328_v26 = vld [vmem:[#allocation1 + $0x2] ss:$4 sm:$0xff]  ;;  %v4705_v14 = vrot.slane %v1330_v4, 9 }
 0x3a0   : > { %1331 = vst.sshfl [vmem:[#allocation1] sm:$0xff pattern:$0x73625140] %v6018_v9  ;;  %v4704_v37 = vrot.slane %v1328_v26, 9 }
 0x3a1   : > { %v1181_v33 = vpop.permute.xlu2 %1180 }
 0x3a2   : > { %1359 = vrot.lane.b32.xlu2 %v4704_v37, %s5308_s26  ;;  %1361 = vrot.lane.b32.xlu1 %v4705_v14, %s5308_s26  ;;  %1200 = vst.msk [vmem:[%s5913_s14 + $0x14] sm:$0x1] %vm1194_vm11, %v1181_v33 }
 0x3a5   : > { %v6375_v37 = vpop.f32.mrf.mxu2 }
 0x3a6   : > { %v1334_v12 = vld [vmem:[#allocation1 + $0x22] ss:$4 sm:$0xff]  ;;  %8378 = vst [vmem:[#allocation20_spill] sm:$0xff] %v6375_v37 }
 0x3a7   : > { %1337 = vst.sshfl [vmem:[#allocation1 + $0x20] sm:$0xff pattern:$0x73625140] %v6047_v27  ;;  %v1332_v41 = vld [vmem:[#allocation1 + $0x2] ss:$4 sm:$0xff]  ;;  %v4707_v1 = vrot.slane %v1334_v12, 9 }
 0x3a8   : > { %1335 = vst.sshfl [vmem:[#allocation1] sm:$0xff pattern:$0x73625140] %v6102_v18  ;;  %v4706_v44 = vrot.slane %v1332_v41, 9 }
 0x3a9   : > { %v1549_v53 = vpop.permute.xlu2 %1548 }
 0x3aa   : > { %1363 = vrot.lane.b32.xlu0 %v4706_v44, %s5308_s26  ;;  %1365 = vrot.lane.b32.xlu2 %v4707_v1, %s5308_s26  ;;  %1567 = vst.msk [vmem:[%s5913_s14 + $0x16] sm:$0x1] %vm1143_vm6, %v1549_v53 }
 0x3ab   : > { %v1126_v29 = vpop.permute.xlu0 %1125 }
 0x3ac   : > { %1147 = vst.msk [vmem:[%s5913_s14 + $0xc] sm:$0x1] %vm1143_vm6, %v1126_v29 }
 0x3ad   : > { %v2216_v53 = vpop.f32.mrf.mxu2 }
 0x3ae   : > { %v1338_v54 = vld [vmem:[#allocation1 + $0x22] ss:$4 sm:$0xff] }
 0x3af   : > { %1391 = vst.sshfl [vmem:[#allocation1 + $0x20] sm:$0xff pattern:$0x73625140] %v5978_v58  ;;  %v1336_v22 = vld [vmem:[#allocation1 + $0x2] ss:$4 sm:$0xff]  ;;  %v4709_v31 = vrot.slane %v1338_v54, 9 }
 0x3b0   : > { %1388 = vst.sshfl [vmem:[#allocation1] sm:$0xff pattern:$0x73625140] %v5950_v62  ;;  %v4708_v46 = vrot.slane %v1336_v22, 9  ;;  %v6398_v22 = vld [vmem:[%s8317_s1] sm:$0xff] }
 0x3b1   : > { %v1177_v43 = vpop.permute.xlu1 %1176  ;;  %v1134_v23 = vpop.permute.xlu2 %1133 }
 0x3b2   : > { %1369 = vrot.lane.b32.xlu0 %v4709_v31, %s5308_s26  ;;  %1198 = vst.msk [vmem:[%s5913_s14 + $0xc] sm:$0x1] %vm1194_vm11, %v1177_v43  ;;  %1367 = vrot.lane.b32.xlu1 %v4708_v46, %s5308_s26 }
 0x3b3   : > { %1151 = vst.msk [vmem:[%s5913_s14 + $0x1c] sm:$0x1] %vm1143_vm6, %v1134_v23 }
 0x3b6   : > { %v1393_v7 = vld [vmem:[#allocation1 + $0x23] ss:$4 sm:$0xff] }
 0x3b7   : > { %1396 = vst.sshfl [vmem:[#allocation1 + $0x20] sm:$0xff pattern:$0x73625140] %v6057_v45  ;;  %v1390_v39 = vld [vmem:[#allocation1 + $0x3] ss:$4 sm:$0xff] }
 0x3b8   : > { %1394 = vst.sshfl [vmem:[#allocation1] sm:$0xff pattern:$0x73625140] %v5934_v63  ;;  %1406 = vrot.lane.b32.xlu2 %v1390_v39, %s5302_s20 }
 0x3b9   : > { %v1238_v19 = vpop.permute.xlu2 %1237 }
 0x3ba   : > { %v1545_v51 = vpop.permute.xlu1 %1544  ;;  %1408 = vrot.lane.b32.xlu1 %v1393_v7, %s5302_s20  ;;  %1262 = vst.msk [vmem:[%s5913_s14] sm:$0x1] %vm8334_vm12, %v1238_v19  ;;  %v6329_v48 = vpop.f32.mrf.mxu3 }
 0x3bb   : > { %1565 = vst.msk [vmem:[%s5913_s14 + $0xe] sm:$0x1] %vm1143_vm6, %v1545_v51  ;;  %v1132_v56 = vpop.permute.xlu0 %1131 }
 0x3bc   : > { %1150 = vst.msk [vmem:[%s5913_s14 + $0x18] sm:$0x1] %vm1143_vm6, %v1132_v56 }
 0x3bd   : > { %8371 = vst [vmem:[#allocation13_spill] sm:$0xff] %v6329_v48 }
 0x3be   : > { %v1397_v42 = vld [vmem:[#allocation1 + $0x23] ss:$4 sm:$0xff] }
 0x3bf   : > { %1400 = vst.sshfl [vmem:[#allocation1 + $0x20] sm:$0xff pattern:$0x73625140] %v5961_v25  ;;  %v1395_v3 = vld [vmem:[#allocation1 + $0x3] ss:$4 sm:$0xff] }
 0x3c0   : > { %1398 = vst.sshfl [vmem:[#allocation1] sm:$0xff pattern:$0x73625140] %v6018_v9  ;;  %1412 = vrot.lane.b32.xlu2 %v1397_v42, %s5302_s20  ;;  %1410 = vrot.lane.b32.xlu0 %v1395_v3, %s5302_s20 }
 0x3c1   : > { %v1244_v32 = vpop.permute.xlu2 %1243 }
 0x3c2   : > { %v1183_v5 = vpop.permute.xlu1 %1182  ;;  %1265 = vst.msk [vmem:[%s5913_s14 + $0xc] sm:$0x1] %vm8334_vm12, %v1244_v32  ;;  %v6346_v0 = vpop.f32.mrf.mxu3 }
 0x3c3   : > { %1201 = vst.msk [vmem:[%s5913_s14 + $0x18] sm:$0x1] %vm1194_vm11, %v1183_v5  ;;  %v1179_v52 = vpop.permute.xlu0 %1178  ;;  %v2219_v5 = vpop.f32.mrf.mxu2 }
 0x3c4   : > { %1199 = vst.msk [vmem:[%s5913_s14 + $0x10] sm:$0x1] %vm1194_vm11, %v1179_v52 }
 0x3c5   : > { %8374 = vst [vmem:[#allocation17_spill] sm:$0xff] %v6346_v0 }
 0x3c6   : > { %v1401_v50 = vld [vmem:[#allocation1 + $0x23] ss:$4 sm:$0xff] }
 0x3c7   : > { %1404 = vst.sshfl [vmem:[#allocation1 + $0x20] sm:$0xff pattern:$0x73625140] %v6047_v27  ;;  %v1399_v8 = vld [vmem:[#allocation1 + $0x3] ss:$4 sm:$0xff] }
 0x3c8   : > { %1402 = vst.sshfl [vmem:[#allocation1] sm:$0xff pattern:$0x73625140] %v6102_v18  ;;  %1416 = vrot.lane.b32.xlu0 %v1401_v50, %s5302_s20  ;;  %1414 = vrot.lane.b32.xlu1 %v1399_v8, %s5302_s20 }
 0x3ca   : > { %v6363_v26 = vpop.f32.mrf.mxu3 }
 0x3cb   : > { %v1551_v11 = vpop.permute.xlu1 %1550  ;;  %8377 = vst [vmem:[#allocation19_spill] sm:$0xff] %v6363_v26 }
 0x3cc   : > { %1568 = vst.msk [vmem:[%s5913_s14 + $0x1a] sm:$0x1] %vm1143_vm6, %v1551_v11  ;;  %v1547_v35 = vpop.permute.xlu0 %1546  ;;  %v1250_v34 = vpop.permute.xlu2 %1249 }
 0x3cd   : > { %1566 = vst.msk [vmem:[%s5913_s14 + $0x12] sm:$0x1] %vm1143_vm6, %v1547_v35  ;;  %v6379_v41 = vpop.f32.mrf.mxu1  ;;  %v6446_v35 = vld [vmem:[%s8317_s1 + $0x8] sm:$0xff] }
 0x3ce   : > { %v6335_v13 = vld [vmem:[#allocation1 + $0x23] ss:$4 sm:$0xff]  ;;  %1268 = vst.msk [vmem:[%s5913_s14 + $0x18] sm:$0x1] %vm8334_vm12, %v1250_v34  ;;  %v6449_v34 = vadd.f32 %v6446_v35, %v2219_v5 }
 0x3cf   : > { %1442 = vst.sshfl [vmem:[#allocation1 + $0x20] sm:$0xff pattern:$0x73625140] %v5978_v58  ;;  %v1403_v57 = vld [vmem:[#allocation1 + $0x3] ss:$4 sm:$0xff] }
 0x3d0   : > { %1439 = vst.sshfl [vmem:[#allocation1] sm:$0xff pattern:$0x73625140] %v5950_v62  ;;  %1418 = vrot.lane.b32.xlu2 %v1403_v57, %s5302_s20 }
 0x3d1   : > { %8379 = vst [vmem:[#allocation21_spill] sm:$0xff] %v6379_v41 }
 0x3d3   : > { %v1240_v15 = vpop.permute.xlu1 %1239 }
 0x3d4   : > { %1263 = vst.msk [vmem:[%s5913_s14 + $0x4] sm:$0x1] %vm8334_vm12, %v1240_v15  ;;  %v1185_v20 = vpop.permute.xlu0 %1184  ;;  %v1291_v49 = vpop.permute.xlu2 %1290  ;;  %v2498_v15 = vsel %vm701_vm3, %v6449_v34, -inf }
 0x3d5   : > { %1202 = vst.msk [vmem:[%s5913_s14 + $0x1c] sm:$0x1] %vm1194_vm11, %v1185_v20  ;;  %v6410_v46 = vpop.f32.mrf.mxu1 }
 0x3d6   : > { %v6352_v58 = vld [vmem:[#allocation1 + $0x23] ss:$4 sm:$0xff]  ;;  %1314 = vst.msk [vmem:[%s5913_s14 + $0x4] sm:$0x1] %vm8333_vm13, %v1291_v49 }
 0x3d7   : > { %1447 = vst.sshfl [vmem:[#allocation1 + $0x20] sm:$0xff pattern:$0x73625140] %v6057_v45  ;;  %v1441_v62 = vld [vmem:[#allocation1 + $0x3] ss:$4 sm:$0xff] }
 0x3d8   : > { %1445 = vst.sshfl [vmem:[#allocation1] sm:$0xff pattern:$0x73625140] %v5934_v63  ;;  %v4710_v36 = vrot.slane %v1441_v62, 9 }
 0x3d9   : > { %8381 = vst [vmem:[#allocation23_spill] sm:$0xff] %v6410_v46 }
 0x3da   : > { %1473 = vrot.lane.b32.xlu0 %v4710_v36, %s5301_s19 }
 0x3dc   : > { %v1553_v4 = vpop.permute.xlu0 %1552 }
 0x3dd   : > { %1569 = vst.msk [vmem:[%s5913_s14 + $0x1e] sm:$0x1] %vm1143_vm6, %v1553_v4  ;;  %v1246_v14 = vpop.permute.xlu1 %1245  ;;  %v6430_v3 = vpop.f32.mrf.mxu1 }
 0x3de   : > { %v6367_v45 = vld [vmem:[#allocation1 + $0x23] ss:$4 sm:$0xff]  ;;  %1266 = vst.msk [vmem:[%s5913_s14 + $0x10] sm:$0x1] %vm8334_vm12, %v1246_v14 }
 0x3df   : > { %1451 = vst.sshfl [vmem:[#allocation1 + $0x20] sm:$0xff pattern:$0x73625140] %v5961_v25  ;;  %v6372_v63 = vld [vmem:[#allocation1 + $0x3] ss:$4 sm:$0xff] }
 0x3e0   : > { %1449 = vst.sshfl [vmem:[#allocation1] sm:$0xff pattern:$0x73625140] %v6018_v9  ;;  %v6390_v9 = vpop.f32.mrf.mxu3 }
 0x3e1   : > { %8380 = vst [vmem:[#allocation22_spill] sm:$0xff] %v6390_v9 }
 0x3e2   : > { %v1297_v33 = vpop.permute.xlu2 %1296  ;;  %8382 = vst [vmem:[#allocation24_spill] sm:$0xff] %v6430_v3 }
 0x3e3   : > { %1317 = vst.msk [vmem:[%s5913_s14 + $0x10] sm:$0x1] %vm8333_vm13, %v1297_v33 }
 0x3e4   : > { %v1242_v12 = vpop.permute.xlu0 %1241 }
 0x3e5   : > { %1264 = vst.msk [vmem:[%s5913_s14 + $0x8] sm:$0x1] %vm8334_vm12, %v1242_v12  ;;  %v1252_v1 = vpop.permute.xlu1 %1251  ;;  %v2294_v57 = vpop.f32.mrf.mxu1 }
 0x3e6   : > { %v6383_v44 = vld [vmem:[#allocation1 + $0x23] ss:$4 sm:$0xff]  ;;  %1269 = vst.msk [vmem:[%s5913_s14 + $0x1c] sm:$0x1] %vm8334_vm12, %v1252_v1  ;;  %v6464_v4 = vadd.f32 %v6398_v22, %v2294_v57 }
 0x3e7   : > { %1455 = vst.sshfl [vmem:[#allocation1 + $0x20] sm:$0xff pattern:$0x73625140] %v6047_v27  ;;  %v6388_v25 = vld [vmem:[#allocation1 + $0x3] ss:$4 sm:$0xff]  ;;  %v6401_v27 = vadd.f32 %v6398_v22, %v2216_v53 }
 0x3e8   : > { %1453 = vst.sshfl [vmem:[#allocation1] sm:$0xff pattern:$0x73625140] %v6102_v18  ;;  %v2255_v43 = vpop.f32.mrf.mxu3  ;;  %v2507_v14 = vsel %vm701_vm3, %v6464_v4, -inf  ;;  %v4714_v9 = vrot.slane %v6388_v25, 9 }
 0x3e9   : > { %v2495_v23 = vsel %vm701_vm3, %v6401_v27, -inf  ;;  %v6418_v39 = vadd.f32 %v6398_v22, %v2255_v43 }
 0x3ea   : > { %v1303_v29 = vpop.permute.xlu2 %1302 }
 0x3eb   : > { %1320 = vst.msk [vmem:[%s5913_s14 + $0x1c] sm:$0x1] %vm8333_vm13, %v1303_v29  ;;  %v2501_v42 = vsel %vm701_vm3, %v6418_v39, -inf  ;;  %v4712_v29 = vrot.slane %v6372_v63, 9 }
 0x3ec   : > { %v1248_v54 = vpop.permute.xlu0 %1247 }
 0x3ed   : > { %1267 = vst.msk [vmem:[%s5913_s14 + $0x14] sm:$0x1] %vm8334_vm12, %v1248_v54 }
 0x3ee   : > { %v6405_v31 = vld [vmem:[#allocation1 + $0x23] ss:$4 sm:$0xff] }
 0x3ef   : > { %1573 = vst.sshfl [vmem:[#allocation1 + $0x20] sm:$0xff pattern:$0x73625140] %v5993_v21  ;;  %v6408_v18 = vld [vmem:[#allocation1 + $0x3] ss:$4 sm:$0xff] }
 0x3f0   : > { %1570 = vst.sshfl [vmem:[#allocation1] sm:$0xff pattern:$0x73625140] %v5909_v6 }
 0x3f2   : > { %2496 = vmax.xlane.f32.xlu1 %v2495_v23  ;;  %v1293_v7 = vpop.permute.xlu1 %1292 }
 0x3f3   : > { %1315 = vst.msk [vmem:[%s5913_s14 + $0x8] sm:$0x1] %vm8333_vm13, %v1293_v7 }
 0x3f4   : > { %v1289_v19 = vpop.permute.xlu0 %1288 }
 0x3f5   : > { %1313 = vst.msk [vmem:[%s5913_s14] sm:$0x1] %vm8333_vm13, %v1289_v19 }
 0x3f6   : > { %v6422_v51 = vld [vmem:[#allocation1 + $0x21] ss:$4 sm:$0xff] }
 0x3f7   : > { %1578 = vst.sshfl [vmem:[#allocation1 + $0x20] sm:$0xff pattern:$0x73625140] %v6081_v24  ;;  %v6425_v56 = vld [vmem:[#allocation1 + $0x1] ss:$4 sm:$0xff] }
 0x3f8   : > { %1576 = vst.sshfl [vmem:[#allocation1] sm:$0xff pattern:$0x73625140] %v6002_v61 }
 0x3f9   : > { %2502 = vmax.xlane.f32.xlu2 %v2501_v42  ;;  %v4713_v42 = vrot.slane %v6367_v45, 9 }
 0x3fa   : > { %v1299_v32 = vpop.permute.xlu1 %1298 }
 0x3fb   : > { %1318 = vst.msk [vmem:[%s5913_s14 + $0x14] sm:$0x1] %vm8333_vm13, %v1299_v32 }
 0x3fc   : > { %v1295_v52 = vpop.permute.xlu0 %1294  ;;  %v1360_v50 = vpop.permute.xlu2 %1359 }
 0x3fd   : > { %1316 = vst.msk [vmem:[%s5913_s14 + $0xc] sm:$0x1] %vm8333_vm13, %v1295_v52 }
 0x3fe   : > { %v6436_v8 = vld [vmem:[#allocation1 + $0x21] ss:$4 sm:$0xff]  ;;  %1382 = vst.msk [vmem:[%s5913_s14 + $0x8] sm:$0x1] %vm1379_vm14, %v1360_v50 }
 0x3ff   : > { %1582 = vst.sshfl [vmem:[#allocation1 + $0x20] sm:$0xff pattern:$0x73625140] %v6035_v47  ;;  %v6441_v11 = vld [vmem:[#allocation1 + $0x1] ss:$4 sm:$0xff] }
 0x400   : > { %1580 = vst.sshfl [vmem:[#allocation1] sm:$0xff pattern:$0x73625140] %v6139_v55 }
 0x404   : > { %v1301_v20 = vpop.permute.xlu0 %1300  ;;  %2499 = vmax.xlane.f32.xlu0 %v2498_v15  ;;  %v1366_v49 = vpop.permute.xlu2 %1365 }
 0x405   : > { %1319 = vst.msk [vmem:[%s5913_s14 + $0x18] sm:$0x1] %vm8333_vm13, %v1301_v20 }
 0x406   : > { %v6456_v62 = vld [vmem:[#allocation1 + $0x21] ss:$4 sm:$0xff]  ;;  %1385 = vst.msk [vmem:[%s5913_s14 + $0x14] sm:$0x1] %vm1379_vm14, %v1366_v49 }
 0x407   : > { %v6460_v36 = vld [vmem:[#allocation1 + $0x1] ss:$4 sm:$0xff]  ;;  %1586 = vst.sshfl [vmem:[#allocation1 + $0x20] sm:$0xff pattern:$0x73625140] %v6164_v16 }
 0x408   : > { %1584 = vst.sshfl [vmem:[#allocation1] sm:$0xff pattern:$0x73625140] %v6135_v17 }
 0x40b   : > { %1420 = vrot.lane.b32.xlu1 %v6335_v13, %s5302_s20  ;;  %v4711_v13 = vrot.slane %v6352_v58, 9 }
 0x40c   : > { %v1358_v33 = vpop.permute.xlu0 %1357  ;;  %2508 = vmax.xlane.f32.xlu0 %v2507_v14  ;;  %v1356_v12 = vpop.permute.xlu1 %1355 }
 0x40d   : > { %1381 = vst.msk [vmem:[%s5913_s14 + $0x4] sm:$0x1] %vm1379_vm14, %v1358_v33  ;;  %v2297_v14 = vpop.f32.mrf.mxu1 }
 0x40e   : > { %v6473_v1 = vld [vmem:[#allocation1 + $0x21] ss:$4 sm:$0xff]  ;;  %1380 = vst.msk [vmem:[%s5913_s14] sm:$0x1] %vm1379_vm14, %v1356_v12  ;;  %v2333_v12 = vpop.f32.mrf.mxu2 }
 0x40f   : > { %v6477_v53 = vld [vmem:[#allocation1 + $0x1] ss:$4 sm:$0xff]  ;;  %1623 = vst.sshfl [vmem:[#allocation1 + $0x20] sm:$0xff pattern:$0x73625140] %v5993_v21 }
 0x410   : > { %1620 = vst.sshfl [vmem:[#allocation1] sm:$0xff pattern:$0x73625140] %v5909_v6 }
 0x411   : > { %1475 = vrot.lane.b32.xlu2 %v4711_v13, %s5301_s19  ;;  %v6530_v13 = vadd.f32 %v6446_v35, %v2297_v14 }
 0x412   : > { %v1407_v54 = vpop.permute.xlu2 %1406 }
 0x413   : > { %1431 = vst.msk [vmem:[%s5913_s14] sm:$0x1] %vm1430_vm15, %v1407_v54  ;;  %1477 = vrot.lane.b32.xlu1 %v4712_v29, %s5301_s19 }
 0x414   : > { %v1362_v43 = vpop.permute.xlu1 %1361 }
 0x415   : > { %1383 = vst.msk [vmem:[%s5913_s14 + $0xc] sm:$0x1] %vm1379_vm14, %v1362_v43  ;;  %v6539_v43 = vadd.f32 %v6398_v22, %v2333_v12 }
 0x416   : > { %v6489_v23 = vld [vmem:[#allocation1 + $0x21] ss:$4 sm:$0xff] }
 0x417   : > { %v6491_v58 = vld [vmem:[#allocation1 + $0x1] ss:$4 sm:$0xff]  ;;  %1628 = vst.sshfl [vmem:[#allocation1 + $0x20] sm:$0xff pattern:$0x73625140] %v6081_v24 }
 0x418   : > { %1626 = vst.sshfl [vmem:[#allocation1] sm:$0xff pattern:$0x73625140] %v6002_v61 }
 0x41a   : > { %v1413_v7 = vpop.permute.xlu2 %1412 }
 0x41b   : > { %1434 = vst.msk [vmem:[%s5913_s14 + $0xc] sm:$0x1] %vm1430_vm15, %v1413_v7  ;;  %v2510_v7 = vsel %vm701_vm3, %v6530_v13, -inf }
 0x41c   : > { %v1364_v63 = vpop.permute.xlu0 %1363 }
 0x41d   : > { %1384 = vst.msk [vmem:[%s5913_s14 + $0x10] sm:$0x1] %vm1379_vm14, %v1364_v63 }
 0x41e   : > { %v6499_v19 = vld [vmem:[#allocation1 + $0x21] ss:$4 sm:$0xff] }
 0x41f   : > { %v6502_v32 = vld [vmem:[#allocation1 + $0x1] ss:$4 sm:$0xff]  ;;  %1632 = vst.sshfl [vmem:[#allocation1 + $0x20] sm:$0xff pattern:$0x73625140] %v6035_v47 }
 0x420   : > { %1630 = vst.sshfl [vmem:[#allocation1] sm:$0xff pattern:$0x73625140] %v6139_v55  ;;  %1479 = vrot.lane.b32.xlu0 %v4713_v42, %s5301_s19 }
 0x424   : > { %v1370_v5 = vpop.permute.xlu0 %1369  ;;  %v1368_v52 = vpop.permute.xlu1 %1367 }
 0x425   : > { %1387 = vst.msk [vmem:[%s5913_s14 + $0x1c] sm:$0x1] %vm1379_vm14, %v1370_v5  ;;  %v2513_v5 = vsel %vm701_vm3, %v6539_v43, -inf }
 0x426   : > { %v6509_v50 = vld [vmem:[#allocation1 + $0x21] ss:$4 sm:$0xff]  ;;  %1386 = vst.msk [vmem:[%s5913_s14 + $0x18] sm:$0x1] %vm1379_vm14, %v1368_v52  ;;  %v2258_v52 = vpop.f32.mrf.mxu3 }
 0x427   : > { %v6513_v57 = vld [vmem:[#allocation1 + $0x1] ss:$4 sm:$0xff]  ;;  %1636 = vst.sshfl [vmem:[#allocation1 + $0x20] sm:$0xff pattern:$0x73625140] %v6164_v16  ;;  %v6556_v14 = vadd.f32 %v6446_v35, %v2258_v52  ;;  %v2411_v52 = vpop.f32.mrf.mxu1 }
 0x428   : > { %1634 = vst.sshfl [vmem:[#allocation1] sm:$0xff pattern:$0x73625140] %v6135_v17  ;;  %v6572_v46 = vadd.f32 %v6398_v22, %v2411_v52 }
 0x429   : > { %v2504_v12 = vsel %vm701_vm3, %v6556_v14, -inf }
 0x42a   : > { %v1419_v45 = vpop.permute.xlu2 %1418  ;;  %8383 = vst [vmem:[#allocation25_spill] sm:$0xff] %v6572_v46 }
 0x42b   : > { %1437 = vst.msk [vmem:[%s5913_s14 + $0x18] sm:$0x1] %vm1430_vm15, %v1419_v45 }
 0x42c   : > { %v1409_v15 = vpop.permute.xlu1 %1408 }
 0x42d   : > { %1432 = vst.msk [vmem:[%s5913_s14 + $0x4] sm:$0x1] %vm1430_vm15, %v1409_v15 }
 0x42e   : > { %v6521_v20 = vld [vmem:[#allocation1 + $0x21] ss:$4 sm:$0xff] }
 0x42f   : > { %v6523_v49 = vld [vmem:[#allocation1 + $0x1] ss:$4 sm:$0xff]  ;;  %1689 = vst.sshfl [vmem:[#allocation1 + $0x20] sm:$0xff pattern:$0x73625140] %v5993_v21 }
 0x430   : > { %1686 = vst.sshfl [vmem:[#allocation1] sm:$0xff pattern:$0x73625140] %v5909_v6 }
 0x432   : > { %v1411_v33 = vpop.permute.xlu0 %1410 }
 0x433   : > { %1433 = vst.msk [vmem:[%s5913_s14 + $0x8] sm:$0x1] %vm1430_vm15, %v1411_v33  ;;  %v2336_v33 = vpop.f32.mrf.mxu2 }
 0x436   : > { %v6532_v29 = vld [vmem:[#allocation1 + $0x22] ss:$4 sm:$0xff] }
 0x437   : > { %v6534_v54 = vld [vmem:[#allocation1 + $0x2] ss:$4 sm:$0xff]  ;;  %1694 = vst.sshfl [vmem:[#allocation1 + $0x20] sm:$0xff pattern:$0x73625140] %v6081_v24 }
 0x438   : > { %1692 = vst.sshfl [vmem:[#allocation1] sm:$0xff pattern:$0x73625140] %v6002_v61 }
 0x43a   : > { %v1417_v63 = vpop.permute.xlu0 %1416  ;;  %2511 = vmax.xlane.f32.xlu2 %v2510_v7  ;;  %v1415_v42 = vpop.permute.xlu1 %1414  ;;  %v6561_v7 = vadd.f32 %v6446_v35, %v2336_v33 }
 0x43b   : > { %1436 = vst.msk [vmem:[%s5913_s14 + $0x14] sm:$0x1] %vm1430_vm15, %v1417_v63  ;;  %v2450_v59 = vpop.f32.mrf.mxu2 }
 0x43c   : > { %1435 = vst.msk [vmem:[%s5913_s14 + $0x10] sm:$0x1] %vm1430_vm15, %v1415_v42  ;;  %v6642_v40 = vadd.f32 %v6398_v22, %v2450_v59 }
 0x43d   : > { %2514 = vmax.xlane.f32.xlu1 %v2513_v5  ;;  %v2516_v5 = vsel %vm701_vm3, %v6561_v7, -inf }
 0x43e   : > { %v6549_v45 = vld [vmem:[#allocation1 + $0x22] ss:$4 sm:$0xff] }
 0x43f   : > { %v6551_v15 = vld [vmem:[#allocation1 + $0x2] ss:$4 sm:$0xff]  ;;  %1698 = vst.sshfl [vmem:[#allocation1 + $0x20] sm:$0xff pattern:$0x73625140] %v6035_v47 }
 0x440   : > { %1696 = vst.sshfl [vmem:[#allocation1] sm:$0xff pattern:$0x73625140] %v6139_v55 }
 0x445   : > { %2505 = vmax.xlane.f32.xlu1 %v2504_v12 }
 0x446   : > { %v6563_v63 = vld [vmem:[#allocation1 + $0x22] ss:$4 sm:$0xff] }
 0x447   : > { %v6565_v42 = vld [vmem:[#allocation1 + $0x2] ss:$4 sm:$0xff]  ;;  %1702 = vst.sshfl [vmem:[#allocation1 + $0x20] sm:$0xff pattern:$0x73625140] %v6164_v16 }
 0x448   : > { %1700 = vst.sshfl [vmem:[#allocation1] sm:$0xff pattern:$0x73625140] %v6135_v17 }
 0x44a   : > { %2517 = vmax.xlane.f32.xlu0 %v2516_v5  ;;  %v2525_v5 = vsel %vm701_vm3, %v6572_v46, -inf }
 0x44c   : > { %v1474_v3 = vpop.permute.xlu0 %1473 }
 0x44d   : > { %1498 = vst.msk [vmem:[%s5913_s14] sm:$0x1] %vm1497_vm0, %v1474_v3  ;;  %v4715_v3 = vrot.slane %v6383_v44, 9 }
 0x44e   : > { %v6576_v33 = vld [vmem:[#allocation1 + $0x22] ss:$4 sm:$0xff] }
 0x44f   : > { %v6578_v12 = vld [vmem:[#allocation1 + $0x2] ss:$4 sm:$0xff]  ;;  %1739 = vst.sshfl [vmem:[#allocation1 + $0x20] sm:$0xff pattern:$0x73625140] %v5993_v21 }
 0x450   : > { %1736 = vst.sshfl [vmem:[#allocation1] sm:$0xff pattern:$0x73625140] %v5909_v6 }
 0x452   : > { %2526 = vmax.xlane.f32.xlu0 %v2525_v5  ;;  %1481 = vrot.lane.b32.xlu2 %v4714_v9, %s5301_s19  ;;  %v4716_v9 = vrot.slane %v6408_v18, 9  ;;  %v2372_v18 = vpop.f32.mrf.mxu3 }
 0x453   : > { %v6623_v48 = vadd.f32 %v6398_v22, %v2372_v18 }
 0x455   : > { %8387 = vst [vmem:[#allocation29_spill] sm:$0xff] %v6623_v48  ;;  %v2519_v38 = vsel %vm701_vm3, %v6623_v48, -inf }
 0x456   : > { %v6586_v52 = vld [vmem:[#allocation1 + $0x22] ss:$4 sm:$0xff] }
 0x457   : > { %v6588_v26 = vld [vmem:[#allocation1 + $0x2] ss:$4 sm:$0xff]  ;;  %1744 = vst.sshfl [vmem:[#allocation1 + $0x20] sm:$0xff pattern:$0x73625140] %v6081_v24 }
 0x458   : > { %1742 = vst.sshfl [vmem:[#allocation1] sm:$0xff pattern:$0x73625140] %v6002_v61 }
 0x45e   : > { %v6593_v37 = vld [vmem:[#allocation1 + $0x22] ss:$4 sm:$0xff]  ;;  %1483 = vrot.lane.b32.xlu1 %v4715_v3, %s5301_s19 }
 0x45f   : > { %v6596_v25 = vld [vmem:[#allocation1 + $0x2] ss:$4 sm:$0xff]  ;;  %1748 = vst.sshfl [vmem:[#allocation1 + $0x20] sm:$0xff pattern:$0x73625140] %v6035_v47 }
 0x460   : > { %1746 = vst.sshfl [vmem:[#allocation1] sm:$0xff pattern:$0x73625140] %v6139_v55 }
 0x466   : > { %v6601_v5 = vld [vmem:[#allocation1 + $0x22] ss:$4 sm:$0xff]  ;;  %1485 = vrot.lane.b32.xlu0 %v4716_v9, %s5301_s19  ;;  %v6616_v9 = vpop.xlane.xlu1 %2496 }
 0x467   : > { %v6604_v60 = vld [vmem:[#allocation1 + $0x2] ss:$4 sm:$0xff]  ;;  %1752 = vst.sshfl [vmem:[#allocation1 + $0x20] sm:$0xff pattern:$0x73625140] %v6164_v16 }
 0x468   : > { %1750 = vst.sshfl [vmem:[#allocation1] sm:$0xff pattern:$0x73625140] %v6135_v17 }
 0x46c   : > { %v6608_v44 = vpop.xlane.xlu2 %2502 }
 0x46e   : > { %v6610_v3 = vld [vmem:[#allocation1 + $0x22] ss:$4 sm:$0xff] }
 0x46f   : > { %8384 = vst [vmem:[#allocation26_spill] sm:$0xff] %v6610_v3  ;;  %v6612_v41 = vld [vmem:[#allocation1 + $0x2] ss:$4 sm:$0xff]  ;;  %v2453_v3 = vpop.f32.mrf.mxu2 }
 0x470   : > { %8385 = vst [vmem:[#allocation27_spill] sm:$0xff] %v6612_v41  ;;  %v2375_v41 = vpop.f32.mrf.mxu3  ;;  %v6655_v59 = vadd.f32 %v6446_v35, %v2453_v3 }
 0x471   : > { %1805 = vst.sshfl [vmem:[#allocation1 + $0x20] sm:$0xff pattern:$0x73625140] %v5993_v21 }
 0x472   : > { %1802 = vst.sshfl [vmem:[#allocation1] sm:$0xff pattern:$0x73625140] %v5909_v6 }
 0x474   : > { %v1476_v0 = vpop.permute.xlu2 %1475 }
 0x475   : > { %1499 = vst.msk [vmem:[%s5913_s14 + $0x4] sm:$0x1] %vm1497_vm0, %v1476_v0 }
 0x477   : > { %v6638_v18 = vpop.xlane.xlu0 %2499 }
 0x478   : > { %v6620_v10 = vld [vmem:[#allocation1 + $0x23] ss:$4 sm:$0xff] }
 0x479   : > { %8386 = vst [vmem:[#allocation28_spill] sm:$0xff] %v6620_v10  ;;  %v6626_v28 = vld [vmem:[#allocation1 + $0x3] ss:$4 sm:$0xff] }
 0x47a   : > { %1810 = vst.sshfl [vmem:[#allocation1 + $0x20] sm:$0xff pattern:$0x73625140] %v6081_v24 }
 0x47b   : > { %1808 = vst.sshfl [vmem:[#allocation1] sm:$0xff pattern:$0x73625140] %v6002_v61  ;;  %2520 = vmax.xlane.f32.xlu2 %v2519_v38 }
 0x47d   : > { %v1421_v30 = vpop.permute.xlu1 %1420 }
 0x47e   : > { %1438 = vst.msk [vmem:[%s5913_s14 + $0x1c] sm:$0x1] %vm1430_vm15, %v1421_v30  ;;  %v2531_v30 = vsel %vm701_vm3, %v6642_v40, -inf }
 0x47f   : > { %v6657_v48 = vpop.xlane.xlu0 %2508 }
 0x481   : > { %v6633_v0 = vld [vmem:[#allocation1 + $0x23] ss:$4 sm:$0xff] }
 0x482   : > { %8388 = vst [vmem:[#allocation30_spill] sm:$0xff] %v6633_v0  ;;  %v6635_v2 = vld [vmem:[#allocation1 + $0x3] ss:$4 sm:$0xff] }
 0x483   : > { %1814 = vst.sshfl [vmem:[#allocation1 + $0x20] sm:$0xff pattern:$0x73625140] %v6035_v47 }
 0x484   : > { %1812 = vst.sshfl [vmem:[#allocation1] sm:$0xff pattern:$0x73625140] %v6139_v55 }
 0x485   : > { %v1478_v10 = vpop.permute.xlu1 %1477 }
 0x486   : > { %1500 = vst.msk [vmem:[%s5913_s14 + $0x8] sm:$0x1] %vm1497_vm0, %v1478_v10  ;;  %v6660_v10 = vadd.f32 %v6446_v35, %v2375_v41 }
 0x488   : > { %2532 = vmax.xlane.f32.xlu1 %v2531_v30 }
 0x48a   : > { %v6646_v38 = vld [vmem:[#allocation1 + $0x23] ss:$4 sm:$0xff] }
 0x48b   : > { %8389 = vst [vmem:[#allocation31_spill] sm:$0xff] %v6646_v38  ;;  %v6650_v0 = vld [vmem:[#allocation1 + $0x3] ss:$4 sm:$0xff]  ;;  %v2534_v38 = vsel %vm701_vm3, %v6655_v59, -inf }
 0x48c   : > { %8390 = vst [vmem:[#allocation32_spill] sm:$0xff] %v6650_v0  ;;  %v2522_v0 = vsel %vm701_vm3, %v6660_v10, -inf }
 0x48d   : > { %1818 = vst.sshfl [vmem:[#allocation1 + $0x20] sm:$0xff pattern:$0x73625140] %v6164_v16 }
 0x48e   : > { %1816 = vst.sshfl [vmem:[#allocation1] sm:$0xff pattern:$0x73625140] %v6135_v17 }
 0x490   : > { %2535 = vmax.xlane.f32.xlu0 %v2534_v38  ;;  %2523 = vmax.xlane.f32.xlu1 %v2522_v0 }
 0x492   : > { %v1480_v3 = vpop.permute.xlu0 %1479 }
 0x493   : > { %1501 = vst.msk [vmem:[%s5913_s14 + $0xc] sm:$0x1] %vm1497_vm0, %v1480_v3  ;;  %1588 = vrot.lane.b32.xlu2 %v6425_v56, %s8336_s16 }
 0x494   : > { %v6664_v46 = vld [vmem:[#allocation1 + $0x23] ss:$4 sm:$0xff] }
 0x495   : > { %8391 = vst [vmem:[#allocation33_spill] sm:$0xff] %v6664_v46  ;;  %v6669_v30 = vld [vmem:[#allocation1 + $0x3] ss:$4 sm:$0xff] }
 0x496   : > { %1855 = vst.sshfl [vmem:[#allocation1 + $0x20] sm:$0xff pattern:$0x73625140] %v5993_v21 }
 0x497   : > { %1852 = vst.sshfl [vmem:[#allocation1] sm:$0xff pattern:$0x73625140] %v5909_v6 }
 0x49d   : > { %v6676_v41 = vld [vmem:[#allocation1 + $0x23] ss:$4 sm:$0xff] }
 0x49e   : > { %1860 = vst.sshfl [vmem:[#allocation1 + $0x20] sm:$0xff pattern:$0x73625140] %v6081_v24  ;;  %v6679_v46 = vld [vmem:[#allocation1 + $0x3] ss:$4 sm:$0xff]  ;;  %v2414_v24 = vpop.f32.mrf.mxu1 }
 0x49f   : > { %1858 = vst.sshfl [vmem:[#allocation1] sm:$0xff pattern:$0x73625140] %v6002_v61 }
 0x4a4   : > { %1592 = vrot.lane.b32.xlu0 %v6441_v11, %s8336_s16 }
 0x4a5   : > { %v6682_v21 = vld [vmem:[#allocation1 + $0x23] ss:$4 sm:$0xff] }
 0x4a6   : > { %v6684_v0 = vld [vmem:[#allocation1 + $0x3] ss:$4 sm:$0xff]  ;;  %1864 = vst.sshfl [vmem:[#allocation1 + $0x20] sm:$0xff pattern:$0x73625140] %v6035_v47  ;;  %v4726_v47 = vrot.slane %v6491_v58, 9 }
 0x4a7   : > { %1862 = vst.sshfl [vmem:[#allocation1] sm:$0xff pattern:$0x73625140] %v6139_v55  ;;  %v4732_v58 = vrot.slane %v6523_v49, 9 }
 0x4a9   : > { %1590 = vrot.lane.b32.xlu1 %v6422_v51, %s8336_s16 }
 0x4ac   : > { %1598 = vrot.lane.b32.xlu0 %v6456_v62, %s8336_s16  ;;  %v2489_v62 = vpop.f32.mrf.mxu3 }
 0x4ad   : > { %v6690_v6 = vld [vmem:[#allocation1 + $0x23] ss:$4 sm:$0xff]  ;;  %v6700_v61 = vpop.xlane.xlu2 %2511 }
 0x4ae   : > { %v6692_v56 = vld [vmem:[#allocation1 + $0x3] ss:$4 sm:$0xff]  ;;  %1868 = vst.sshfl [vmem:[#allocation1 + $0x20] sm:$0xff pattern:$0x73625140] %v6164_v16  ;;  %v6707_v16 = vadd.f32 %v6446_v35, %v2414_v24 }
 0x4af   : > { %1866 = vst.sshfl [vmem:[#allocation1] sm:$0xff pattern:$0x73625140] %v6135_v17  ;;  %v4729_v17 = vrot.slane %v6499_v19, 9 }
 0x4b0   : > { %v2528_v51 = vsel %vm701_vm3, %v6707_v16, -inf  ;;  %v6713_v11 = vpop.xlane.xlu1 %2514 }
 0x4b4   : > { %1654 = vrot.lane.b32.xlu0 %v4726_v47, %s8339_s17  ;;  %v2492_v47 = vpop.f32.mrf.mxu3 }
 0x4b5   : > { %v1482_v55 = vpop.permute.xlu2 %1481  ;;  %v6724_v19 = vadd.f32 %v6446_v35, %v2492_v47  ;;  %v2543_v35 = vsub.f32 %v6401_v27, %v6616_v9  ;;  %v4728_v27 = vrot.slane %v6502_v32, 9  ;;  %v4731_v9 = vrot.slane %v6509_v50, 9 }
 0x4b6   : > { %1502 = vst.msk [vmem:[%s5913_s14 + $0x10] sm:$0x1] %vm1497_vm0, %v1482_v55 }
 0x4b7   : > { %v2540_v49 = vsel %vm701_vm3, %v6724_v19, -inf }
 0x4b8   : > { %v6719_v3 = vpop.xlane.xlu1 %2505 }
 0x4bc   : > { %2529 = vmax.xlane.f32.xlu2 %v2528_v51  ;;  %1660 = vrot.lane.b32.xlu0 %v4729_v17, %s8339_s17  ;;  %v4717_v17 = vrot.slane %v6405_v31, 9 }
 0x4bd   : > { %v6717_v38 = vpop.xlane.xlu0 %2517 }
 0x4c4   : > { %1666 = vrot.lane.b32.xlu0 %v4732_v58, %s8339_s17  ;;  %v2559_v58 = vmul.f32 1.442695, %v2543_v35 }
 0x4c5   : > { %v6726_v24 = vpop.xlane.xlu0 %2526 }
 0x4c6   : > { %5137 = vpow2.f32 %v2559_v58  ;;  %v4734_v58 = vrot.slane %v6588_v26, 9  ;;  %v2544_v26 = vsub.f32 %v6449_v34, %v6638_v18 }
 0x4cc   : > { %1706 = vrot.lane.b32.xlu0 %v6532_v29, %s8337_s18  ;;  %v6751_v47 = vpop.eup %5137 }
 0x4d0   : > { %v1484_v55 = vpop.permute.xlu1 %1483 }
 0x4d1   : > { %1503 = vst.msk [vmem:[%s5913_s14 + $0x14] sm:$0x1] %vm1497_vm0, %v1484_v55  ;;  %v4736_v55 = vrot.slane %v6596_v25, 9  ;;  %v4730_v25 = vrot.slane %v6513_v57, 9  ;;  %v2546_v57 = vsub.f32 %v6556_v14, %v6719_v3 }
 0x4d3   : > { %2541 = vmax.xlane.f32.xlu1 %v2540_v49 }
 0x4d4   : > { %1487 = vrot.lane.b32.xlu2 %v4717_v17, %s5301_s19  ;;  %1712 = vrot.lane.b32.xlu0 %v6565_v42, %s8337_s18  ;;  %v6749_v42 = vadd.f32 %v6398_v22, %v2489_v62  ;;  %v2545_v17 = vsub.f32 %v6418_v39, %v6608_v44 }
 0x4d6   : > { %v2563_v35 = vmul.f32 1.442695, %v2545_v17 }
 0x4d8   : > { %v1486_v29 = vpop.permute.xlu0 %1485 }
 0x4d9   : > { %1504 = vst.msk [vmem:[%s5913_s14 + $0x18] sm:$0x1] %vm1497_vm0, %v1486_v29 }
 0x4ec   : > { %1596 = vrot.lane.b32.xlu1 %v6460_v36, %s8336_s16  ;;  %v2537_v36 = vsel %vm701_vm3, %v6749_v42, -inf }
 0x4ee   : > { %v6742_v51 = vpop.xlane.xlu2 %2520 }
 0x4f4   : > { %1602 = vrot.lane.b32.xlu1 %v6473_v1, %s8336_s16  ;;  %v2591_v1 = vsel %vm701_vm3, %v6751_v47, 0.0 }
 0x4f6   : > { %v1589_v31 = vpop.permute.xlu2 %1588 }
 0x4f7   : > { %1612 = vst.msk [vmem:[%s5913_s14 + $0x2] sm:$0x1] %vm1194_vm11, %v1589_v31 }
 0x4fb   : > { %v6761_v22 = vpop.xlane.xlu1 %2532 }
 0x4fc   : > { %1658 = vrot.lane.b32.xlu1 %v4728_v27, %s8339_s17 }
 0x4fd   : > { %2538 = vmax.xlane.f32.xlu2 %v2537_v36 }
 0x4fe   : > { %2592 = vadd.xlane.f32.xlu0 %v2591_v1  ;;  %v4739_v1 = vrot.slane %v6601_v5, 9  ;;  %v2547_v5 = vsub.f32 %v6464_v4, %v6657_v48  ;;  %v2548_v48 = vsub.f32 %v6530_v13, %v6700_v61 }
 0x503   : > { %v6765_v32 = vpop.xlane.xlu0 %2535  ;;  %v6769_v62 = vpop.xlane.xlu1 %2523 }
 0x504   : > { %1664 = vrot.lane.b32.xlu1 %v4731_v9, %s8339_s17 }
 0x50c   : > { %1704 = vrot.lane.b32.xlu1 %v6534_v54, %s8337_s18 }
 0x512   : > { %1718 = vrot.lane.b32.xlu0 %v6576_v33, %s8337_s18 }
 0x514   : > { %1710 = vrot.lane.b32.xlu1 %v6549_v45, %s8337_s18 }
 0x515   : > { %1594 = vrot.lane.b32.xlu2 %v6436_v8, %s8336_s16  ;;  %v4727_v8 = vrot.slane %v6489_v23, 9 }
 0x516   : > { %v1593_v50 = vpop.permute.xlu0 %1592 }
 0x517   : > { %1614 = vst.msk [vmem:[%s5913_s14 + $0xa] sm:$0x1] %vm1194_vm11, %v1593_v50 }
 0x51a   : > { %1774 = vrot.lane.b32.xlu0 %v4736_v55, %s5308_s26  ;;  %v2561_v55 = vmul.f32 1.442695, %v2544_v26 }
 0x51b   : > { %v1591_v54 = vpop.permute.xlu1 %1590 }
 0x51c   : > { %1613 = vst.msk [vmem:[%s5913_s14 + $0x6] sm:$0x1] %vm1194_vm11, %v1591_v54  ;;  %1716 = vrot.lane.b32.xlu1 %v6578_v12, %s8337_s18  ;;  %v4733_v12 = vrot.slane %v6521_v20, 9 }
 0x51d   : > { %1600 = vrot.lane.b32.xlu2 %v6477_v53, %s8336_s16  ;;  %v2549_v53 = vsub.f32 %v6539_v43, %v6713_v11  ;;  %v2565_v43 = vmul.f32 1.442695, %v2546_v57 }
 0x51e   : > { %v1599_v45 = vpop.permute.xlu0 %1598 }
 0x51f   : > { %1617 = vst.msk [vmem:[%s5913_s14 + $0x16] sm:$0x1] %vm1194_vm11, %v1599_v45  ;;  %v2571_v23 = vmul.f32 1.442695, %v2549_v53  ;;  %v2567_v45 = vmul.f32 1.442695, %v2547_v5  ;;  %v2555_v53 = vsub.f32 %v6642_v40, %v6761_v22 }
 0x521   : > { %5139 = vpow2.f32 %v2571_v23  ;;  %v2583_v57 = vmul.f32 1.442695, %v2555_v53 }
 0x522   : > { %5141 = vpow2.f32 %v2563_v35 }
 0x523   : > { %5143 = vpow2.f32 %v2565_v43 }
 0x524   : > { %5145 = vpow2.f32 %v2561_v55 }
 0x525   : > { %1656 = vrot.lane.b32.xlu2 %v4727_v8, %s8339_s17 }
 0x526   : > { %v1655_v33 = vpop.permute.xlu0 %1654 }
 0x527   : > { %1678 = vst.msk [vmem:[%s5913_s14 + $0x2] sm:$0x1] %vm8334_vm12, %v1655_v33  ;;  %v6807_v20 = vpop.eup %5139 }
 0x528   : > { %v6809_v11 = vpop.eup %5141  ;;  %v2609_v39 = vsel %vm701_vm3, %v6807_v20, 0.0 }
 0x529   : > { %v2597_v14 = vsel %vm701_vm3, %v6809_v11, 0.0  ;;  %v6817_v44 = vpop.eup %5143 }
 0x52a   : > { %v2600_v3 = vsel %vm701_vm3, %v6817_v44, 0.0  ;;  %v6845_v18 = vpop.eup %5145 }
 0x52b   : > { %v2594_v33 = vsel %vm701_vm3, %v6845_v18, 0.0 }
 0x52d   : > { %1662 = vrot.lane.b32.xlu2 %v4730_v25, %s8339_s17 }
 0x52f   : > { %v6793_v49 = vpop.xlane.xlu2 %2529 }
 0x535   : > { %1668 = vrot.lane.b32.xlu2 %v4733_v12, %s8339_s17 }
 0x537   : > { %v1488_v29 = vpop.permute.xlu2 %1487 }
 0x538   : > { %1505 = vst.msk [vmem:[%s5913_s14 + $0x1c] sm:$0x1] %vm1497_vm0, %v1488_v29  ;;  %v2569_v29 = vmul.f32 1.442695, %v2548_v48 }
 0x53d   : > { %1708 = vrot.lane.b32.xlu2 %v6551_v15, %s8337_s18  ;;  %v1661_v15 = vpop.permute.xlu0 %1660 }
 0x544   : > { %2610 = vadd.xlane.f32.xlu0 %v2609_v39 }
 0x545   : > { %1714 = vrot.lane.b32.xlu2 %v6563_v63, %s8337_s18  ;;  %v1667_v31 = vpop.permute.xlu0 %1666  ;;  %v4735_v63 = vrot.slane %v6586_v52, 9 }
 0x546   : > { %2598 = vadd.xlane.f32.xlu1 %v2597_v14  ;;  %v6823_v27 = vpop.xlane.xlu1 %2541  ;;  %v2552_v14 = vsub.f32 %v6660_v10, %v6769_v62  ;;  %v6881_v10 = vld [vmem:[#allocation1 + $0x3] ss:$4 sm:$0xff] }
 0x54c   : > { %2601 = vadd.xlane.f32.xlu0 %v2600_v3 }
 0x54d   : > { %1770 = vrot.lane.b32.xlu2 %v4734_v58, %s5308_s26  ;;  %v6827_v9 = vpop.permute.xlu0 %1706 }
 0x555   : > { %v6837_v52 = vpop.permute.xlu0 %1712 }
 0x55e   : > { %v1597_v36 = vpop.permute.xlu1 %1596 }
 0x55f   : > { %1616 = vst.msk [vmem:[%s5913_s14 + $0x12] sm:$0x1] %vm1194_vm11, %v1597_v36  ;;  %1772 = vrot.lane.b32.xlu1 %v4735_v63, %s5308_s26 }
 0x560   : > { %1780 = vrot.lane.b32.xlu0 %v4739_v1, %s5308_s26  ;;  %v2577_v1 = vmul.f32 1.442695, %v2552_v14 }
 0x566   : > { %v1603_v50 = vpop.permute.xlu1 %1602 }
 0x567   : > { %1619 = vst.msk [vmem:[%s5913_s14 + $0x1e] sm:$0x1] %vm1194_vm11, %v1603_v50 }
 0x56e   : > { %v1659_v54 = vpop.permute.xlu1 %1658 }
 0x56f   : > { %1680 = vst.msk [vmem:[%s5913_s14 + $0xa] sm:$0x1] %vm8334_vm12, %v1659_v54 }
 0x570   : > { %v6843_v8 = vpop.xlane.xlu2 %2538 }
 0x571   : > { %v2593_v34 = vpop.xlane.xlu0 %2592 }
 0x572   : > { %5147 = vrcp.f32 %v2593_v34  ;;  %v2650_v43 = vand.u32 2147483648, %v2593_v34  ;;  %v2648_v61 = vand.u32 2147483647, %v2593_v34  ;;  %vm2644_vm5 = vweird.f32 %v2593_v34 }
 0x573   : > { %5149 = vpow2.f32 %v2567_v45 }
 0x574   : > { %5151 = vpow2.f32 %v2569_v29  ;;  %vm2649_vm9 = vcmp.eq.f32.partialorder %v2648_v61, 8.507059e+37 }
 0x575   : > { %5153 = vpow2.f32 %v2583_v57 }
 0x576   : > { %2595 = vadd.xlane.f32.xlu2 %v2594_v33  ;;  %v1665_v25 = vpop.permute.xlu1 %1664  ;;  %5155 = vpow2.f32 %v2577_v1 }
 0x577   : > { %1683 = vst.msk [vmem:[%s5913_s14 + $0x16] sm:$0x1] %vm8334_vm12, %v1665_v25 }
 0x578   : > { %v5148_v4 = vpop.eup %5147  ;;  %v1595_v12 = vpop.permute.xlu2 %1594 }
 0x579   : > { %v2640_v17 = vmul.f32 %v5148_v4, %v2593_v34  ;;  %1615 = vst.msk [vmem:[%s5913_s14 + $0xe] sm:$0x1] %vm1194_vm11, %v1595_v12  ;;  %v6857_v23 = vpop.eup %5149  ;;  %vm2645_vm4 = vweird.f32 %v5148_v4 }
 0x57a   : > { %1681 = vst.msk [vmem:[%s5913_s14 + $0xe] sm:$0x1] %vm8334_vm12, %v1661_v15  ;;  %v2603_v40 = vsel %vm701_vm3, %v6857_v23, 0.0  ;;  %vm2646_vm7 = vmor %vm2644_vm5, %vm2645_vm4  ;;  %v2651_v15 = vor.u32 1.1754944e-38, %v2650_v43  ;;  %v6874_v26 = vpop.eup %5151 }
 0x57b   : > { %v2641_v35 = vsub.f32 1.0, %v2640_v17  ;;  %v6883_v62 = vpop.eup %5153  ;;  %v2606_v50 = vsel %vm701_vm3, %v6874_v26, 0.0  ;;  %v8392_v17 = vld [vmem:[#allocation25_spill] sm:$0xff] }
 0x57c   : > { %v2627_v55 = vsel %vm701_vm3, %v6883_v62, 0.0  ;;  %v6897_v5 = vpop.eup %5155  ;;  %v2553_v29 = vsub.f32 %v8392_v17, %v6726_v24 }
 0x57d   : > { %v2642_v13 = vmul.f32 %v5148_v4, %v2641_v35  ;;  %v2618_v34 = vsel %vm701_vm3, %v6897_v5, 0.0 }
 0x57e   : > { %2604 = vadd.xlane.f32.xlu2 %v2603_v40  ;;  %v1705_v22 = vpop.permute.xlu1 %1704  ;;  %v2579_v35 = vmul.f32 1.442695, %v2553_v29 }
 0x57f   : > { %v2643_v39 = vadd.f32 %v5148_v4, %v2642_v13  ;;  %1728 = vst.msk [vmem:[%s5913_s14 + $0x2] sm:$0x1] %vm8333_vm13, %v1705_v22 }
 0x580   : > { %v1601_v3 = vpop.permute.xlu2 %1600 }
 0x581   : > { %v2647_v58 = vsel %vm2646_vm7, %v5148_v4, %v2643_v39  ;;  %1618 = vst.msk [vmem:[%s5913_s14 + $0x1a] sm:$0x1] %vm1194_vm11, %v1601_v3  ;;  %v4738_v4 = vrot.slane %v6604_v60, 9 }
 0x582   : > { %v2652_v63 = vsel %vm2649_vm9, %v2651_v15, %v2647_v58  ;;  %1684 = vst.msk [vmem:[%s5913_s14 + $0x1a] sm:$0x1] %vm8334_vm12, %v1667_v31  ;;  %v2554_v15 = vsub.f32 %v6707_v16, %v6793_v49  ;;  %v2558_v16 = vsub.f32 %v6724_v19, %v6823_v27 }
 0x583   : > { %v6872_v36 = vmul.f32 %v6751_v47, %v2652_v63 }
 0x584   : > { %v1719_v33 = vpop.permute.xlu0 %1718 }
 0x585   : > { %2879 = vst.msk [vmem:[%s5913_s14 + $0x1] sm:$0x1] %vm1086_vm8, %v6872_v36  ;;  %4862 = vmatmul.msk.f32.vlgmr.msrb.gmra.mxu0 %vm701_vm3, %v6872_v36 }
 0x586   : > { %v1711_v31 = vpop.permute.xlu1 %1710  ;;  %2943 = vst.sshfl [vmem:[#allocation1] sm:$0xff pattern:$0x73625140] %v6872_v36 }
 0x587   : > { %1731 = vst.msk [vmem:[%s5913_s14 + $0xe] sm:$0x1] %vm8333_vm13, %v1711_v31 }
 0x588   : > { %v1657_v47 = vpop.permute.xlu2 %1656 }
 0x589   : > { %1679 = vst.msk [vmem:[%s5913_s14 + $0x6] sm:$0x1] %vm8334_vm12, %v1657_v47  ;;  %2607 = vadd.xlane.f32.xlu1 %v2606_v50 }
 0x58a   : > { %1729 = vst.msk [vmem:[%s5913_s14 + $0x6] sm:$0x1] %vm8333_vm13, %v6827_v9  ;;  %2628 = vadd.xlane.f32.xlu0 %v2627_v55  ;;  %v4737_v9 = vrot.slane %v6593_v37, 9 }
 0x58c   : > { %v1775_v53 = vpop.permute.xlu0 %1774 }
 0x58e   : > { %v1717_v54 = vpop.permute.xlu1 %1716 }
 0x58f   : > { %1734 = vst.msk [vmem:[%s5913_s14 + $0x1a] sm:$0x1] %vm8333_vm13, %v1717_v54 }
 0x590   : > { %v1663_v45 = vpop.permute.xlu2 %1662 }
 0x591   : > { %1682 = vst.msk [vmem:[%s5913_s14 + $0x12] sm:$0x1] %vm8334_vm12, %v1663_v45 }
 0x592   : > { %1732 = vst.msk [vmem:[%s5913_s14 + $0x12] sm:$0x1] %vm8333_vm13, %v6837_v52  ;;  %2619 = vadd.xlane.f32.xlu0 %v2618_v34  ;;  %v2550_v52 = vsub.f32 %v6561_v7, %v6717_v38 }
 0x594   : > { %v2573_v12 = vmul.f32 1.442695, %v2550_v52 }
 0x596   : > { %1776 = vrot.lane.b32.xlu2 %v4737_v9, %s5308_s26  ;;  %5157 = vpow2.f32 %v2573_v12  ;;  %v2581_v9 = vmul.f32 1.442695, %v2554_v15 }
 0x598   : > { %v1669_v25 = vpop.permute.xlu2 %1668 }
 0x599   : > { %1685 = vst.msk [vmem:[%s5913_s14 + $0x1e] sm:$0x1] %vm8334_vm12, %v1669_v25 }
 0x59a   : > { %1735 = vst.msk [vmem:[%s5913_s14 + $0x1e] sm:$0x1] %vm8333_vm13, %v1719_v33 }
 0x59c   : > { %v6934_v7 = vpop.eup %5157 }
 0x59d   : > { %v2612_v61 = vsel %vm701_vm3, %v6934_v7, 0.0 }
 0x5a0   : > { %v1709_v48 = vpop.permute.xlu2 %1708 }
 0x5a1   : > { %1730 = vst.msk [vmem:[%s5913_s14 + $0xa] sm:$0x1] %vm8333_vm13, %v1709_v48 }
 0x5a2   : > { %1796 = vst.msk [vmem:[%s5913_s14 + $0xa] sm:$0x1] %vm1379_vm14, %v1775_v53  ;;  %1778 = vrot.lane.b32.xlu1 %v4738_v4, %s5308_s26 }
 0x5a6   : > { %1820 = vrot.lane.b32.xlu0 %v6626_v28, %s5302_s20  ;;  %v8393_v28 = vld [vmem:[#allocation29_spill] sm:$0xff] }
 0x5a7   : > { %v2551_v57 = vsub.f32 %v8393_v28, %v6742_v51 }
 0x5a8   : > { %v1715_v37 = vpop.permute.xlu2 %1714 }
 0x5a9   : > { %1733 = vst.msk [vmem:[%s5913_s14 + $0x16] sm:$0x1] %vm8333_vm13, %v1715_v37 }
 0x5ae   : > { %1824 = vrot.lane.b32.xlu0 %v6635_v2, %s5302_s20  ;;  %v2575_v2 = vmul.f32 1.442695, %v2551_v57  ;;  %v6964_v57 = vld [vmem:[#allocation1 + $0x23] ss:$4 sm:$0xff] }
 0x5b0   : > { %v1771_v60 = vpop.permute.xlu2 %1770 }
 0x5b1   : > { %1794 = vst.msk [vmem:[%s5913_s14 + $0x2] sm:$0x1] %vm1379_vm14, %v1771_v60  ;;  %v2589_v60 = vmul.f32 1.442695, %v2558_v16 }
 0x5b7   : > { %v2611_v43 = vpop.xlane.xlu0 %2610 }
 0x5b8   : > { %5159 = vrcp.f32 %v2611_v43  ;;  %v2732_v3 = vand.u32 2147483647, %v2611_v43  ;;  %v2734_v58 = vand.u32 2147483648, %v2611_v43  ;;  %vm2728_vm4 = vweird.f32 %v2611_v43 }
 0x5b9   : > { %v2599_v13 = vpop.xlane.xlu1 %2598 }
 0x5ba   : > { %5161 = vrcp.f32 %v2599_v13  ;;  %v2678_v31 = vand.u32 2147483648, %v2599_v13  ;;  %v2676_v45 = vand.u32 2147483647, %v2599_v13  ;;  %vm2733_vm9 = vcmp.eq.f32.partialorder %v2732_v3, 8.507059e+37 }
 0x5bb   : > { %5163 = vpow2.f32 %v2579_v35  ;;  %v2735_v49 = vor.u32 1.1754944e-38, %v2734_v58  ;;  %vm2672_vm1 = vweird.f32 %v2599_v13  ;;  %v8395_v58 = vld [vmem:[#allocation26_spill] sm:$0xff] }
 0x5bc   : > { %5165 = vpow2.f32 %v2575_v2  ;;  %v2679_v53 = vor.u32 1.1754944e-38, %v2678_v31 }
 0x5be   : > { %v5160_v38 = vpop.eup %5159 }
 0x5bf   : > { %v2724_v40 = vmul.f32 %v5160_v38, %v2611_v43  ;;  %2613 = vadd.xlane.f32.xlu2 %v2612_v61  ;;  %v2602_v24 = vpop.xlane.xlu0 %2601  ;;  %vm2729_vm10 = vweird.f32 %v5160_v38 }
 0x5c0   : > { %v5162_v22 = vpop.eup %5161  ;;  %5167 = vrcp.f32 %v2602_v24  ;;  %vm2730_vm7 = vmor %vm2728_vm4, %vm2729_vm10  ;;  %vm2677_vm10 = vcmp.eq.f32.partialorder %v2676_v45, 8.507059e+37  ;;  %v2692_v17 = vand.u32 2147483648, %v2602_v24  ;;  %v2690_v28 = vand.u32 2147483647, %v2602_v24 }
 0x5c1   : > { %v6938_v39 = vpop.eup %5163  ;;  %v2725_v51 = vsub.f32 1.0, %v2724_v40  ;;  %v2668_v14 = vmul.f32 %v5162_v22, %v2599_v13  ;;  %vm2673_vm5 = vweird.f32 %v5162_v22  ;;  %5169 = vpow2.f32 %v2581_v9 }
 0x5c2   : > { %v2621_v47 = vsel %vm701_vm3, %v6938_v39, 0.0  ;;  %v6944_v50 = vpop.eup %5165  ;;  %vm2674_vm13 = vmor %vm2672_vm1, %vm2673_vm5  ;;  %5171 = vpow2.f32 %v2589_v60  ;;  %vm2691_vm5 = vcmp.eq.f32.partialorder %v2690_v28, 8.507059e+37  ;;  %v8397_v60 = vld [vmem:[#allocation14_spill] sm:$0xff] }
 0x5c3   : > { %v2726_v63 = vmul.f32 %v5160_v38, %v2725_v51  ;;  %v2669_v1 = vsub.f32 1.0, %v2668_v14  ;;  %v2615_v37 = vsel %vm701_vm3, %v6944_v50, 0.0  ;;  %v8394_v14 = vld [vmem:[#allocation27_spill] sm:$0xff] }
 0x5c4   : > { %v4740_v15 = vrot.slane %v8394_v14, 9  ;;  %v2557_v14 = vsub.f32 %v6749_v42, %v6843_v8 }
 0x5c5   : > { %v2727_v55 = vadd.f32 %v5160_v38, %v2726_v63  ;;  %v2670_v54 = vmul.f32 %v5162_v22, %v2669_v1  ;;  %v4741_v63 = vrot.slane %v8395_v58, 9  ;;  %v8396_v1 = vld [vmem:[#allocation31_spill] sm:$0xff] }
 0x5c6   : > { %v5168_v34 = vpop.eup %5167  ;;  %v2587_v8 = vmul.f32 1.442695, %v2557_v14  ;;  %v8398_v14 = vld [vmem:[#allocation28_spill] sm:$0xff] }
 0x5c7   : > { %v2731_v33 = vsel %vm2730_vm7, %v5160_v38, %v2727_v55  ;;  %v2671_v25 = vadd.f32 %v5162_v22, %v2670_v54  ;;  %v2682_v48 = vmul.f32 %v5168_v34, %v2602_v24  ;;  %2622 = vadd.xlane.f32.xlu2 %v2621_v47  ;;  %vm2687_vm1 = vweird.f32 %v5168_v34  ;;  %v6967_v13 = vpop.eup %5169 }
 0x5c8   : > { %v2736_v4 = vsel %vm2733_vm9, %v2735_v49, %v2731_v33  ;;  %v4743_v54 = vrot.slane %v6676_v41, 9 }
 0x5c9   : > { %v6951_v52 = vmul.f32 %v6807_v20, %v2736_v4  ;;  %v2675_v19 = vsel %vm2674_vm13, %v5162_v22, %v2671_v25  ;;  %v2683_v27 = vsub.f32 1.0, %v2682_v48  ;;  %vm2686_vm13 = vweird.f32 %v2602_v24  ;;  %v6979_v22 = vpop.eup %5171 }
 0x5ca   : > { %v2680_v12 = vsel %vm2677_vm10, %v2679_v53, %v2675_v19  ;;  %vm2688_vm4 = vmor %vm2686_vm13, %vm2687_vm1  ;;  %v2624_v24 = vsel %vm701_vm3, %v6967_v13, 0.0  ;;  %v2636_v51 = vsel %vm701_vm3, %v6979_v22, 0.0 }
 0x5cb   : > { %2882 = vst.msk [vmem:[%s5913_s14 + $0xd] sm:$0x1] %vm1086_vm8, %v6951_v52  ;;  %v6957_v29 = vmul.f32 %v6809_v11, %v2680_v12  ;;  %v2684_v35 = vmul.f32 %v5168_v34, %v2683_v27  ;;  %v2693_v11 = vor.u32 1.1754944e-38, %v2692_v17  ;;  %v5050_v12 = vunpack.i.l.bf16 %v8397_v60 }
 0x5cc   : > { %2616 = vadd.xlane.f32.xlu1 %v2615_v37 }
 0x5cd   : > { %2880 = vst.msk [vmem:[%s5913_s14 + $0x5] sm:$0x1] %vm1086_vm8, %v6957_v29  ;;  %v2685_v20 = vadd.f32 %v5168_v34, %v2684_v35  ;;  %4864 = vmatmul.msk.f32.vlgmr.msra.gmra.mxu1 %vm701_vm3, %v6957_v29 }
 0x5ce   : > { %2946 = vst.sshfl [vmem:[#allocation1 + $0x20] sm:$0xff pattern:$0x73625140] %v6957_v29 }
 0x5cf   : > { %v2689_v43 = vsel %vm2688_vm4, %v5168_v34, %v2685_v20  ;;  %v2556_v34 = vsub.f32 %v6655_v59, %v6765_v32  ;;  %v4748_v59 = vrot.slane %v6881_v10, 9 }
 0x5d0   : > { %v2694_v2 = vsel %vm2691_vm5, %v2693_v11, %v2689_v43 }
 0x5d1   : > { %v6970_v38 = vmul.f32 %v6817_v44, %v2694_v2  ;;  %v1773_v61 = vpop.permute.xlu1 %1772  ;;  %v2585_v48 = vmul.f32 1.442695, %v2556_v34 }
 0x5d2   : > { %1795 = vst.msk [vmem:[%s5913_s14 + $0x6] sm:$0x1] %vm1379_vm14, %v1773_v61  ;;  %v1781_v40 = vpop.permute.xlu0 %1780 }
 0x5d3   : > { %3292 = vst.msk [vmem:[%s5913_s14 + $0x7] sm:$0x1] %vm1086_vm8, %v6970_v38 }
 0x5d4   : > { %1799 = vst.msk [vmem:[%s5913_s14 + $0x16] sm:$0x1] %vm1379_vm14, %v1781_v40  ;;  %2625 = vadd.xlane.f32.xlu1 %v2624_v24 }
 0x5d5   : > { %4865 = vmatmul.msk.f32.gmra.mxu1 %vm701_vm3, %v6970_v38  ;;  %v6985_v44 = vld [vmem:[#allocation1 + $0x21] ss:$4 sm:$0xff] }
 0x5d6   : > { %2951 = vst.sshfl [vmem:[#allocation1 + $0x20] sm:$0xff pattern:$0x73625140] %v6951_v52 }
 0x5d8   : > { %2637 = vadd.xlane.f32.xlu0 %v2636_v51 }
 0x5df   : > { %1782 = vrot.lane.b32.xlu2 %v4740_v15, %s5308_s26 }
 0x5e9   : > { %v2596_v3 = vpop.xlane.xlu2 %2595 }
 0x5ea   : > { %5173 = vrcp.f32 %v2596_v3  ;;  %v2664_v9 = vand.u32 2147483648, %v2596_v3  ;;  %v2662_v49 = vand.u32 2147483647, %v2596_v3  ;;  %vm2658_vm9 = vweird.f32 %v2596_v3 }
 0x5ec   : > { %1830 = vrot.lane.b32.xlu0 %v8396_v1, %s5302_s20  ;;  %v2665_v4 = vor.u32 1.1754944e-38, %v2664_v9  ;;  %vm2663_vm1 = vcmp.eq.f32.partialorder %v2662_v49, 8.507059e+37 }
 0x5ed   : > { %1784 = vrot.lane.b32.xlu1 %v4741_v63, %s5308_s26 }
 0x5f0   : > { %v5174_v31 = vpop.eup %5173 }
 0x5f1   : > { %v2654_v47 = vmul.f32 %v5174_v31, %v2596_v3  ;;  %v2605_v55 = vpop.xlane.xlu2 %2604  ;;  %vm2659_vm7 = vweird.f32 %v5174_v31 }
 0x5f2   : > { %5175 = vrcp.f32 %v2605_v55  ;;  %vm2660_vm10 = vmor %vm2658_vm9, %vm2659_vm7  ;;  %v2706_v17 = vand.u32 2147483648, %v2605_v55  ;;  %v2704_v20 = vand.u32 2147483647, %v2605_v55  ;;  %vm2700_vm4 = vweird.f32 %v2605_v55 }
 0x5f3   : > { %v2655_v45 = vsub.f32 1.0, %v2654_v47  ;;  %5177 = vpow2.f32 %v2585_v48 }
 0x5f4   : > { %1888 = vrot.lane.b32.xlu0 %v4743_v54, %s5301_s19  ;;  %v2707_v43 = vor.u32 1.1754944e-38, %v2706_v17  ;;  %vm2705_vm7 = vcmp.eq.f32.partialorder %v2704_v20, 8.507059e+37 }
 0x5f5   : > { %v2656_v16 = vmul.f32 %v5174_v31, %v2655_v45 }
 0x5f7   : > { %v2657_v33 = vadd.f32 %v5174_v31, %v2656_v16 }
 0x5f8   : > { %v5176_v25 = vpop.eup %5175 }
 0x5f9   : > { %v2661_v53 = vsel %vm2660_vm10, %v5174_v31, %v2657_v33  ;;  %v2696_v41 = vmul.f32 %v5176_v25, %v2605_v55  ;;  %v1777_v37 = vpop.permute.xlu2 %1776  ;;  %vm2701_vm13 = vweird.f32 %v5176_v25  ;;  %v7014_v61 = vpop.eup %5177  ;;  %v7030_v31 = vld [vmem:[#allocation1 + $0x1] ss:$4 sm:$0xff]  ;;  %v4799_v33 = vrot.slane %v6957_v29, 9 }
 0x5fa   : > { %v2666_v19 = vsel %vm2663_vm1, %v2665_v4, %v2661_v53  ;;  %1797 = vst.msk [vmem:[%s5913_s14 + $0xe] sm:$0x1] %vm1379_vm14, %v1777_v37  ;;  %vm2702_vm5 = vmor %vm2700_vm4, %vm2701_vm13  ;;  %v2630_v55 = vsel %vm701_vm3, %v7014_v61, 0.0 }
 0x5fb   : > { %v7004_v32 = vmul.f32 %v6845_v18, %v2666_v19  ;;  %v2697_v27 = vsub.f32 1.0, %v2696_v41  ;;  %v5051_v18 = vunpack.i.h.bf16 %v8397_v60 }
 0x5fc   : > { %1898 = vrot.lane.b32.xlu0 %v4748_v59, %s5301_s19  ;;  %v2608_v35 = vpop.xlane.xlu1 %2607 }
 0x5fd   : > { %3291 = vst.msk [vmem:[%s5913_s14 + $0x3] sm:$0x1] %vm1086_vm8, %v7004_v32  ;;  %v2698_v28 = vmul.f32 %v5176_v25, %v2697_v27  ;;  %5179 = vrcp.f32 %v2608_v35  ;;  %v2629_v11 = vpop.xlane.xlu0 %2628  ;;  %4863 = vmatmul.msk.f32.vlgmr.msrb.gmra.mxu3 %vm701_vm3, %v7004_v32  ;;  %v4830_v24 = vrot.slane %v7004_v32, 9  ;;  %v2718_v45 = vand.u32 2147483647, %v2608_v35 }
 0x5fe   : > { %5181 = vrcp.f32 %v2629_v11  ;;  %3958 = vmatpush.msrb.mxu3 %v5050_v12  ;;  %v2818_v34 = vand.u32 2147483648, %v2629_v11  ;;  %v2816_v16 = vand.u32 2147483647, %v2629_v11  ;;  %vm2714_vm1 = vweird.f32 %v2608_v35 }
 0x5ff   : > { %v2699_v10 = vadd.f32 %v5176_v25, %v2698_v28  ;;  %vm2812_vm4 = vweird.f32 %v2629_v11 }
 0x600   : > { %3959 = vmatpush.msrb.mxu3 %v5051_v18  ;;  %v2819_v41 = vor.u32 1.1754944e-38, %v2818_v34  ;;  %vm2817_vm12 = vcmp.eq.f32.partialorder %v2816_v16, 8.507059e+37  ;;  %v4746_v34 = vrot.slane %v6692_v56, 9  ;;  %v2182_v56 = vld [vmem:[%s8319_s3] sm:$0xff] }
 0x601   : > { %v2703_v2 = vsel %vm2702_vm5, %v5176_v25, %v2699_v10  ;;  %vm2719_vm5 = vcmp.eq.f32.partialorder %v2718_v45, 8.507059e+37  ;;  %4145 = vmatpush.msra.mxu1 %v2182_v56 }
 0x602   : > { %v2708_v40 = vsel %vm2705_vm7, %v2707_v43, %v2703_v2 }
 0x603   : > { %v5180_v51 = vpop.eup %5179  ;;  %v7020_v15 = vmul.f32 %v6857_v23, %v2708_v40  ;;  %v2720_v23 = vand.u32 2147483648, %v2608_v35 }
 0x604   : > { %v5182_v3 = vpop.eup %5181  ;;  %v2710_v58 = vmul.f32 %v5180_v51, %v2608_v35  ;;  %3323 = vrot.lane.b32.xlu0 %v4830_v24, %s5304_s15  ;;  %vm2715_vm9 = vweird.f32 %v5180_v51 }
 0x605   : > { %2881 = vst.msk [vmem:[%s5913_s14 + $0x9] sm:$0x1] %vm1086_vm8, %v7020_v15  ;;  %v2808_v63 = vmul.f32 %v5182_v3, %v2629_v11  ;;  %v2620_v1 = vpop.xlane.xlu0 %2619  ;;  %4866 = vmatmul.msk.f32.vlgmr.msra.gmra.mxu2 %vm701_vm3, %v7020_v15  ;;  %4868 = vmatmul.msk.f32.vlgmr.msra.gmra.mxu3 %vm701_vm3, %v6951_v52  ;;  %vm2813_vm10 = vweird.f32 %v5182_v3  ;;  %vm2716_vm13 = vmor %vm2714_vm1, %vm2715_vm9  ;;  %v2721_v25 = vor.u32 1.1754944e-38, %v2720_v23 }
 0x606   : > { %v2711_v42 = vsub.f32 1.0, %v2710_v58  ;;  %5183 = vrcp.f32 %v2620_v1  ;;  %2949 = vst.sshfl [vmem:[#allocation1] sm:$0xff pattern:$0x73625140] %v7020_v15  ;;  %vm2814_vm7 = vmor %vm2812_vm4, %vm2813_vm10  ;;  %v2776_v35 = vand.u32 2147483648, %v2620_v1  ;;  %v8400_v58 = vld [vmem:[#allocation32_spill] sm:$0xff]  ;;  %4925 = vmatpush.msra.mxu2 %v2182_v56 }
 0x607   : > { %v2809_v47 = vsub.f32 1.0, %v2808_v63  ;;  %5185 = vpow2.f32 %v2587_v8 }
 0x608   : > { %v2712_v54 = vmul.f32 %v5180_v51, %v2711_v42  ;;  %2631 = vadd.xlane.f32.xlu2 %v2630_v55  ;;  %v2777_v18 = vor.u32 1.1754944e-38, %v2776_v35 }
 0x609   : > { %v2810_v9 = vmul.f32 %v5182_v3, %v2809_v47 }
 0x60a   : > { %v2713_v49 = vadd.f32 %v5180_v51, %v2712_v54 }
 0x60b   : > { %v2811_v48 = vadd.f32 %v5182_v3, %v2810_v9 }
 0x60c   : > { %v5184_v4 = vpop.eup %5183  ;;  %v2717_v53 = vsel %vm2716_vm13, %v5180_v51, %v2713_v49  ;;  %2913 = vrot.lane.b32.xlu0 %v4799_v33, %s5304_s15 }
 0x60d   : > { %v2722_v37 = vsel %vm2719_vm5, %v2721_v25, %v2717_v53  ;;  %v2815_v19 = vsel %vm2814_vm7, %v5182_v3, %v2811_v48  ;;  %v2766_v59 = vmul.f32 %v5184_v4, %v2620_v1  ;;  %vm2771_vm9 = vweird.f32 %v5184_v4  ;;  %v7051_v20 = vpop.eup %5185 }
 0x60e   : > { %v7038_v27 = vmul.f32 %v6874_v26, %v2722_v37  ;;  %v2820_v60 = vsel %vm2817_vm12, %v2819_v41, %v2815_v19  ;;  %v2774_v26 = vand.u32 2147483647, %v2620_v1  ;;  %vm2770_vm12 = vweird.f32 %v2620_v1 }
 0x60f   : > { %v7041_v12 = vmul.f32 %v6883_v62, %v2820_v60  ;;  %v2767_v17 = vsub.f32 1.0, %v2766_v59  ;;  %v4801_v62 = vrot.slane %v6951_v52, 9  ;;  %vm2772_vm10 = vmor %vm2770_vm12, %vm2771_vm9  ;;  %v2633_v40 = vsel %vm701_vm3, %v7051_v20, 0.0 }
 0x610   : > { %3293 = vst.msk [vmem:[%s5913_s14 + $0xb] sm:$0x1] %vm1086_vm8, %v7038_v27  ;;  %4867 = vmatmul.msk.f32.gmra.mxu2 %vm701_vm3, %v7038_v27  ;;  %vm2775_vm1 = vcmp.eq.f32.partialorder %v2774_v26, 8.507059e+37  ;;  %v4744_v1 = vrot.slane %v6684_v0, 9  ;;  %v4749_v19 = vrot.slane %v6964_v57, 9  ;;  %v4745_v59 = vrot.slane %v6682_v21, 9 }
 0x611   : > { %2885 = vst.msk [vmem:[%s5913_s14 + $0x19] sm:$0x1] %vm1086_vm8, %v7041_v12  ;;  %v2768_v28 = vmul.f32 %v5184_v4, %v2767_v17 }
 0x613   : > { %v2769_v11 = vadd.f32 %v5184_v4, %v2768_v28 }
 0x614   : > { %v1779_v10 = vpop.permute.xlu1 %1778  ;;  %2917 = vrot.lane.b32.xlu0 %v4801_v62, %s5304_s15 }
 0x615   : > { %v2773_v43 = vsel %vm2772_vm10, %v5184_v4, %v2769_v11  ;;  %1798 = vst.msk [vmem:[%s5913_s14 + $0x12] sm:$0x1] %vm1379_vm14, %v1779_v10 }
 0x616   : > { %v2778_v2 = vsel %vm2775_vm1, %v2777_v18, %v2773_v43 }
 0x617   : > { %v7060_v24 = vmul.f32 %v6897_v5, %v2778_v2  ;;  %2634 = vadd.xlane.f32.xlu1 %v2633_v40  ;;  %v8399_v5 = vld [vmem:[#allocation30_spill] sm:$0xff] }
 0x618   : > { %v1821_v51 = vpop.permute.xlu0 %1820  ;;  %4874 = vmatmul.msk.f32.vlgmr.msrb.gmra.mxu2 %vm701_vm3, %v7041_v12 }
 0x619   : > { %3295 = vst.msk [vmem:[%s5913_s14 + $0x13] sm:$0x1] %vm1086_vm8, %v7060_v24 }
 0x61a   : > { %1844 = vst.msk [vmem:[%s5913_s14 + $0x2] sm:$0x1] %vm1430_vm15, %v1821_v51 }
 0x61c   : > { %2963 = vrot.lane.b32.xlu0 %v6985_v44, %s8336_s16  ;;  %v8401_v44 = vld [vmem:[#allocation33_spill] sm:$0xff] }
 0x620   : > { %1822 = vrot.lane.b32.xlu2 %v8398_v14, %s5302_s20  ;;  %v1825_v3 = vpop.permute.xlu0 %1824 }
 0x621   : > { %1846 = vst.msk [vmem:[%s5913_s14 + $0xa] sm:$0x1] %vm1430_vm15, %v1825_v3  ;;  %v4798_v3 = vrot.slane %v6872_v36, 9 }
 0x628   : > { %1826 = vrot.lane.b32.xlu2 %v8399_v5, %s5302_s20  ;;  %v4747_v5 = vrot.slane %v6690_v6, 9 }
 0x630   : > { %1832 = vrot.lane.b32.xlu2 %v6669_v30, %s5302_s20  ;;  %1828 = vrot.lane.b32.xlu1 %v8400_v58, %s5302_s20  ;;  %v4742_v30 = vrot.slane %v6679_v46, 9  ;;  %v4878_v46 = vld [vmem:[%s8319_s3 + $0x8] sm:$0xff] }
 0x631   : > { %4032 = vmatpush.msrb.mxu0 %v4878_v46 }
 0x632   : > { %v2614_v63 = vpop.xlane.xlu2 %2613 }
 0x633   : > { %5187 = vrcp.f32 %v2614_v63  ;;  %v2748_v55 = vand.u32 2147483648, %v2614_v63  ;;  %v2746_v45 = vand.u32 2147483647, %v2614_v63  ;;  %vm2742_vm4 = vweird.f32 %v2614_v63 }
 0x635   : > { %v2749_v49 = vor.u32 1.1754944e-38, %v2748_v55  ;;  %vm2747_vm7 = vcmp.eq.f32.partialorder %v2746_v45, 8.507059e+37 }
 0x638   : > { %1890 = vrot.lane.b32.xlu2 %v4744_v1, %s5301_s19  ;;  %1834 = vrot.lane.b32.xlu1 %v8401_v44, %s5302_s20  ;;  %v7129_v1 = vld [vmem:[#allocation1 + $0x21] ss:$4 sm:$0xff] }
 0x639   : > { %v5188_v42 = vpop.eup %5187 }
 0x63a   : > { %v2738_v8 = vmul.f32 %v5188_v42, %v2614_v63  ;;  %v2623_v23 = vpop.xlane.xlu2 %2622  ;;  %vm2743_vm13 = vweird.f32 %v5188_v42 }
 0x63b   : > { %5189 = vrcp.f32 %v2623_v23  ;;  %vm2744_vm5 = vmor %vm2742_vm4, %vm2743_vm13  ;;  %v2790_v37 = vand.u32 2147483648, %v2623_v23  ;;  %v2788_v35 = vand.u32 2147483647, %v2623_v23  ;;  %vm2784_vm12 = vweird.f32 %v2623_v23 }
 0x63c   : > { %v2739_v47 = vsub.f32 1.0, %v2738_v8 }
 0x63d   : > { %v2791_v21 = vor.u32 1.1754944e-38, %v2790_v37  ;;  %vm2789_vm1 = vcmp.eq.f32.partialorder %v2788_v35, 8.507059e+37 }
 0x63e   : > { %v2740_v54 = vmul.f32 %v5188_v42, %v2739_v47 }
 0x63f   : > { %v7087_v9 = vpop.xlane.xlu1 %2616 }
 0x640   : > { %v2741_v0 = vadd.f32 %v5188_v42, %v2740_v54  ;;  %5191 = vrcp.f32 %v7087_v9  ;;  %1894 = vrot.lane.b32.xlu2 %v4746_v34, %s5301_s19  ;;  %1886 = vrot.lane.b32.xlu1 %v4742_v30, %s5301_s19  ;;  %v2762_v18 = vand.u32 2147483648, %v7087_v9  ;;  %v2760_v2 = vand.u32 2147483647, %v7087_v9  ;;  %v2950_v34 = vld [vmem:[#allocation1 + $0x1] ss:$4 sm:$0xff] }
 0x641   : > { %v5190_v16 = vpop.eup %5189  ;;  %vm2756_vm4 = vweird.f32 %v7087_v9 }
 0x642   : > { %v2745_v33 = vsel %vm2744_vm5, %v5188_v42, %v2741_v0  ;;  %v2780_v25 = vmul.f32 %v5190_v16, %v2623_v23  ;;  %v1783_v48 = vpop.permute.xlu2 %1782  ;;  %vm2785_vm9 = vweird.f32 %v5190_v16  ;;  %v2763_v63 = vor.u32 1.1754944e-38, %v2762_v18 }
 0x643   : > { %v2750_v4 = vsel %vm2747_vm7, %v2749_v49, %v2745_v33  ;;  %1800 = vst.msk [vmem:[%s5913_s14 + $0x1a] sm:$0x1] %vm1379_vm14, %v1783_v48  ;;  %vm2786_vm10 = vmor %vm2784_vm12, %vm2785_vm9  ;;  %vm2761_vm7 = vcmp.eq.f32.partialorder %v2760_v2, 8.507059e+37  ;;  %v4800_v49 = vrot.slane %v7020_v15, 9  ;;  %v4804_v18 = vrot.slane %v7041_v12, 9 }
 0x644   : > { %v7101_v53 = vmul.f32 %v6934_v7, %v2750_v4  ;;  %v2781_v41 = vsub.f32 1.0, %v2780_v25 }
 0x646   : > { %v5192_v60 = vpop.eup %5191  ;;  %3294 = vst.msk [vmem:[%s5913_s14 + $0xf] sm:$0x1] %vm1086_vm8, %v7101_v53  ;;  %v2782_v17 = vmul.f32 %v5190_v16, %v2781_v41  ;;  %4869 = vmatmul.msk.f32.gmra.mxu3 %vm701_vm3, %v7101_v53  ;;  %v4833_v28 = vrot.slane %v7101_v53, 9 }
 0x647   : > { %v2752_v7 = vmul.f32 %v5192_v60, %v7087_v9  ;;  %v2626_v26 = vpop.xlane.xlu1 %2625  ;;  %vm2757_vm13 = vweird.f32 %v5192_v60 }
 0x648   : > { %v2783_v62 = vadd.f32 %v5190_v16, %v2782_v17  ;;  %5193 = vrcp.f32 %v2626_v26  ;;  %1900 = vrot.lane.b32.xlu2 %v4749_v19, %s5301_s19  ;;  %1892 = vrot.lane.b32.xlu1 %v4745_v59, %s5301_s19  ;;  %vm2758_vm5 = vmor %vm2756_vm4, %vm2757_vm13  ;;  %v2802_v55 = vand.u32 2147483647, %v2626_v26  ;;  %v2804_v30 = vand.u32 2147483648, %v2626_v26 }
 0x649   : > { %v2753_v57 = vsub.f32 1.0, %v2752_v7  ;;  %3329 = vrot.lane.b32.xlu0 %v4833_v28, %s5304_s15  ;;  %vm2798_vm12 = vweird.f32 %v2626_v26  ;;  %v4832_v17 = vrot.slane %v7038_v27, 9  ;;  %v3730_v28 = vpop.f32.mrf.mxu0 }
 0x64a   : > { %v2787_v11 = vsel %vm2786_vm10, %v5190_v16, %v2783_v62  ;;  %v2805_v0 = vor.u32 1.1754944e-38, %v2804_v30  ;;  %v8403_v62 = vld [vmem:[#allocation8_spill] sm:$0xff]  ;;  %v3763_v30 = vpop.f32.mrf.mxu1 }
 0x64b   : > { %v2792_v10 = vsel %vm2789_vm1, %v2791_v21, %v2787_v11  ;;  %v2754_v43 = vmul.f32 %v5192_v60, %v2753_v57  ;;  %v2638_v40 = vpop.xlane.xlu0 %2637  ;;  %vm2803_vm1 = vcmp.eq.f32.partialorder %v2802_v55, 8.507059e+37 }
 0x64c   : > { %v7118_v51 = vmul.f32 %v6938_v39, %v2792_v10  ;;  %5195 = vrcp.f32 %v2638_v40  ;;  %v2860_v16 = vand.u32 2147483648, %v2638_v40  ;;  %v2858_v33 = vand.u32 2147483647, %v2638_v40  ;;  %v8404_v10 = vld [vmem:[#allocation15_spill] sm:$0xff] }
 0x64d   : > { %v2755_v14 = vadd.f32 %v5192_v60, %v2754_v43  ;;  %vm2854_vm4 = vweird.f32 %v2638_v40 }
 0x64e   : > { %v5194_v58 = vpop.eup %5193  ;;  %2884 = vst.msk [vmem:[%s5913_s14 + $0x15] sm:$0x1] %vm1086_vm8, %v7118_v51  ;;  %4872 = vmatmul.msk.f32.vlgmr.msrb.gmra.mxu1 %vm701_vm3, %v7118_v51  ;;  %v4803_v39 = vrot.slane %v7118_v51, 9  ;;  %v2861_v41 = vor.u32 1.1754944e-38, %v2860_v16 }
 0x64f   : > { %v2759_v44 = vsel %vm2758_vm5, %v5192_v60, %v2755_v14  ;;  %v2794_v42 = vmul.f32 %v5194_v58, %v2626_v26  ;;  %2955 = vst.sshfl [vmem:[#allocation1 + $0x20] sm:$0xff pattern:$0x73625140] %v7118_v51  ;;  %vm2799_vm9 = vweird.f32 %v5194_v58  ;;  %v4831_v60 = vrot.slane %v6970_v38, 9 }
 0x650   : > { %v2764_v6 = vsel %vm2761_vm7, %v2763_v63, %v2759_v44  ;;  %2911 = vrot.lane.b32.xlu2 %v4798_v3, %s5304_s15  ;;  %1896 = vrot.lane.b32.xlu1 %v4747_v5, %s5301_s19  ;;  %vm2800_vm10 = vmor %vm2798_vm12, %vm2799_vm9  ;;  %vm2859_vm7 = vcmp.eq.f32.partialorder %v2858_v33, 8.507059e+37  ;;  %v8405_v3 = vld [vmem:[#allocation11_spill] sm:$0xff] }
 0x651   : > { %v7135_v8 = vmul.f32 %v6944_v50, %v2764_v6  ;;  %v2795_v23 = vsub.f32 1.0, %v2794_v42  ;;  %2921 = vrot.lane.b32.xlu0 %v4803_v39, %s5304_s15  ;;  %v8406_v6 = vld [vmem:[#allocation16_spill] sm:$0xff] }
 0x652   : > { %v5196_v47 = vpop.eup %5195 }
 0x653   : > { %2883 = vst.msk [vmem:[%s5913_s14 + $0x11] sm:$0x1] %vm1086_vm8, %v7135_v8  ;;  %v2796_v54 = vmul.f32 %v5194_v58, %v2795_v23  ;;  %v2850_v45 = vmul.f32 %v5196_v47, %v2638_v40  ;;  %4870 = vmatmul.msk.f32.vlgmr.msra.gmra.mxu0 %vm701_vm3, %v7135_v8  ;;  %vm2855_vm13 = vweird.f32 %v5196_v47  ;;  %v4802_v11 = vrot.slane %v7135_v8, 9 }
 0x654   : > { %2953 = vst.sshfl [vmem:[#allocation1] sm:$0xff pattern:$0x73625140] %v7135_v8  ;;  %vm2856_vm5 = vmor %vm2854_vm4, %vm2855_vm13  ;;  %v4834_v40 = vrot.slane %v7060_v24, 9 }
 0x655   : > { %v2797_v50 = vadd.f32 %v5194_v58, %v2796_v54  ;;  %v2851_v9 = vsub.f32 1.0, %v2850_v45 }
 0x656   : > { %v2956_v39 = vld [vmem:[#allocation1 + $0x21] ss:$4 sm:$0xff] }
 0x657   : > { %v2801_v46 = vsel %vm2800_vm10, %v5194_v58, %v2797_v50  ;;  %v2852_v56 = vmul.f32 %v5196_v47, %v2851_v9 }
 0x658   : > { %v2806_v25 = vsel %vm2803_vm1, %v2805_v0, %v2801_v46  ;;  %2961 = vrot.lane.b32.xlu1 %v7030_v31, %s8336_s16  ;;  %2915 = vrot.lane.b32.xlu2 %v4800_v49, %s5304_s15 }
 0x659   : > { %v7149_v48 = vmul.f32 %v6967_v13, %v2806_v25  ;;  %v2853_v4 = vadd.f32 %v5196_v47, %v2852_v56  ;;  %v8407_v56 = vld [vmem:[#allocation12_spill] sm:$0xff] }
 0x65b   : > { %3296 = vst.msk [vmem:[%s5913_s14 + $0x17] sm:$0x1] %vm1086_vm8, %v7149_v48  ;;  %v2857_v37 = vsel %vm2856_vm5, %v5196_v47, %v2853_v4  ;;  %4871 = vmatmul.msk.f32.gmra.mxu0 %vm701_vm3, %v7060_v24  ;;  %4873 = vmatmul.msk.f32.gmra.mxu1 %vm701_vm3, %v7149_v48  ;;  %v2954_v13 = vld [vmem:[#allocation1 + $0x1] ss:$4 sm:$0xff]  ;;  %v4835_v14 = vrot.slane %v7149_v48, 9 }
 0x65c   : > { %v2862_v31 = vsel %vm2859_vm7, %v2861_v41, %v2857_v37  ;;  %2969 = vrot.lane.b32.xlu0 %v2954_v13, %s8336_s16  ;;  %2957 = vst.sshfl [vmem:[#allocation1] sm:$0xff pattern:$0x73625140] %v7041_v12 }
 0x65d   : > { %v7161_v19 = vmul.f32 %v6979_v22, %v2862_v31  ;;  %v8402_v22 = vld [vmem:[#allocation9_spill] sm:$0xff] }
 0x65e   : > { %v1831_v59 = vpop.permute.xlu0 %1830 }
 0x65f   : > { %3298 = vst.msk [vmem:[%s5913_s14 + $0x1f] sm:$0x1] %vm1086_vm8, %v7161_v19  ;;  %v1785_v35 = vpop.permute.xlu1 %1784 }
 0x660   : > { %1849 = vst.msk [vmem:[%s5913_s14 + $0x16] sm:$0x1] %vm1430_vm15, %v1831_v59  ;;  %3325 = vrot.lane.b32.xlu1 %v4831_v60, %s5304_s15  ;;  %3327 = vrot.lane.b32.xlu2 %v4832_v17, %s5304_s15  ;;  %v3766_v59 = vpop.f32.mrf.mxu1  ;;  %v8408_v17 = vld [vmem:[#allocation13_spill] sm:$0xff] }
 0x661   : > { %1801 = vst.msk [vmem:[%s5913_s14 + $0x1e] sm:$0x1] %vm1379_vm14, %v1785_v35 }
 0x663   : > { %4879 = vmatmul.msk.f32.vlgmr.msrb.gmra.mxu0 %vm410_vm2, %v3730_v28  ;;  %4895 = vmatmul.msk.f32.vlgmr.msra.gmra.mxu1 %vm410_vm2, %v8402_v22  ;;  %v2958_v7 = vld [vmem:[#allocation1 + $0x1] ss:$4 sm:$0xff] }
 0x664   : > { %2993 = vst.sshfl [vmem:[#allocation1] sm:$0xff pattern:$0x73625140] %v6872_v36 }
 0x666   : > { %v1889_v26 = vpop.permute.xlu0 %1888 }
 0x668   : > { %2965 = vrot.lane.b32.xlu1 %v2950_v34, %s8336_s16  ;;  %2967 = vrot.lane.b32.xlu2 %v7129_v1, %s8336_s16 }
 0x66b   : > { %4896 = vmatmul.msk.f32.gmra.mxu1 %vm410_vm2, %v8403_v62  ;;  %v2995_v21 = vld [vmem:[#allocation1 + $0x1] ss:$4 sm:$0xff] }
 0x66c   : > { %2999 = vst.sshfl [vmem:[#allocation1] sm:$0xff pattern:$0x73625140] %v7020_v15  ;;  %v4806_v34 = vrot.slane %v2995_v21, 9 }
 0x66e   : > { %v7184_v57 = vpop.permute.xlu0 %1898 }
 0x670   : > { %2919 = vrot.lane.b32.xlu1 %v4802_v11, %s5304_s15  ;;  %2923 = vrot.lane.b32.xlu2 %v4804_v18, %s5304_s15  ;;  %v8409_v11 = vld [vmem:[#allocation18_spill] sm:$0xff] }
 0x673   : > { %4897 = vmatmul.msk.f32.gmra.mxu1 %vm410_vm2, %v8404_v10  ;;  %v3000_v43 = vld [vmem:[#allocation1 + $0x1] ss:$4 sm:$0xff] }
 0x674   : > { %3003 = vst.sshfl [vmem:[#allocation1] sm:$0xff pattern:$0x73625140] %v7135_v8  ;;  %v4808_v13 = vrot.slane %v3000_v43, 9 }
 0x676   : > { %v3324_v2 = vpop.permute.xlu0 %3323 }
 0x677   : > { %3347 = vst.msk [vmem:[%s5913_s14 + $0x3] sm:$0x1] %vm1143_vm6, %v3324_v2 }
 0x678   : > { %3331 = vrot.lane.b32.xlu1 %v4834_v40, %s5304_s15  ;;  %3333 = vrot.lane.b32.xlu2 %v4835_v14, %s5304_s15  ;;  %v8410_v40 = vld [vmem:[#allocation17_spill] sm:$0xff] }
 0x67b   : > { %4898 = vmatmul.msk.f32.gmra.mxu1 %vm410_vm2, %v8405_v3  ;;  %v2632_v5 = vpop.xlane.xlu2 %2631  ;;  %v7201_v58 = vld [vmem:[#allocation1 + $0x1] ss:$4 sm:$0xff] }
 0x67c   : > { %5197 = vrcp.f32 %v2632_v5  ;;  %3007 = vst.sshfl [vmem:[#allocation1] sm:$0xff pattern:$0x73625140] %v7041_v12  ;;  %v2832_v54 = vand.u32 2147483648, %v2632_v5  ;;  %v2830_v9 = vand.u32 2147483647, %v2632_v5  ;;  %vm2826_vm12 = vweird.f32 %v2632_v5 }
 0x67d   : > { %v4810_v21 = vrot.slane %v7201_v58, 9 }
 0x67e   : > { %v2914_v63 = vpop.permute.xlu0 %2913  ;;  %v2833_v16 = vor.u32 1.1754944e-38, %v2832_v54  ;;  %vm2831_vm1 = vcmp.eq.f32.partialorder %v2830_v9, 8.507059e+37  ;;  %v4837_v54 = vrot.slane %v7161_v19, 9 }
 0x67f   : > { %2936 = vst.msk [vmem:[%s5913_s14 + $0x5] sm:$0x1] %vm1143_vm6, %v2914_v63  ;;  %v8411_v63 = vld [vmem:[#allocation21_spill] sm:$0xff] }
 0x680   : > { %v3733_v1 = vpop.f32.mrf.mxu3  ;;  %2973 = vrot.lane.b32.xlu2 %v2958_v7, %s8336_s16  ;;  %2971 = vrot.lane.b32.xlu1 %v2956_v39, %s8336_s16 }
 0x681   : > { %4880 = vmatmul.msk.f32.gmra.mxu0 %vm410_vm2, %v3733_v1 }
 0x682   : > { %v5198_v44 = vpop.eup %5197 }
 0x683   : > { %v2822_v42 = vmul.f32 %v5198_v44, %v2632_v5  ;;  %4899 = vmatmul.msk.f32.gmra.mxu1 %vm410_vm2, %v8406_v6  ;;  %v1823_v23 = vpop.permute.xlu2 %1822  ;;  %v7211_v47 = vld [vmem:[#allocation1 + $0x1] ss:$4 sm:$0xff]  ;;  %vm2827_vm9 = vweird.f32 %v5198_v44 }
 0x684   : > { %1845 = vst.msk [vmem:[%s5913_s14 + $0x6] sm:$0x1] %vm1430_vm15, %v1823_v23  ;;  %vm2828_vm10 = vmor %vm2826_vm12, %vm2827_vm9  ;;  %vm4239_vm12 = vcmask 1046534  }
 0x685   : > { %v2823_v55 = vsub.f32 1.0, %v2822_v42  ;;  %1911 = vst.msk [vmem:[%s5913_s14 + $0x6] sm:$0x1] %vm1497_vm0, %v1889_v26  ;;  %v8412_v42 = vld [vmem:[#allocation10_spill] sm:$0xff] }
 0x686   : > { %v2918_v45 = vpop.permute.xlu0 %2917  ;;  %3059 = vst.sshfl [vmem:[#allocation1] sm:$0xff pattern:$0x73625140] %v6872_v36 }
 0x687   : > { %v2824_v50 = vmul.f32 %v5198_v44, %v2823_v55  ;;  %2938 = vst.msk [vmem:[%s5913_s14 + $0xd] sm:$0x1] %vm1143_vm6, %v2918_v45 }
 0x688   : > { %3027 = vrot.lane.b32.xlu2 %v4806_v34, %s8339_s17  ;;  %v3796_v18 = vpop.f32.mrf.mxu2  ;;  %v3829_v23 = vpop.f32.mrf.mxu3  ;;  %v8413_v34 = vld [vmem:[#allocation20_spill] sm:$0xff] }
 0x689   : > { %v2825_v0 = vadd.f32 %v5198_v44, %v2824_v50  ;;  %4881 = vmatmul.msk.f32.gmra.mxu0 %vm410_vm2, %v3763_v30 }
 0x68a   : > { %v2635_v49 = vpop.xlane.xlu1 %2634 }
 0x68b   : > { %v2829_v46 = vsel %vm2828_vm10, %v5198_v44, %v2825_v0  ;;  %5199 = vrcp.f32 %v2635_v49  ;;  %4900 = vmatmul.msk.f32.gmra.mxu1 %vm410_vm2, %v8407_v56  ;;  %v1827_v33 = vpop.permute.xlu2 %1826  ;;  %v2846_v22 = vand.u32 2147483648, %v2635_v49  ;;  %v2844_v62 = vand.u32 2147483647, %v2635_v49 }
 0x68c   : > { %v2834_v25 = vsel %vm2831_vm1, %v2833_v16, %v2829_v46  ;;  %1847 = vst.msk [vmem:[%s5913_s14 + $0xe] sm:$0x1] %vm1430_vm15, %v1827_v33  ;;  %vm2840_vm4 = vweird.f32 %v2635_v49  ;;  %v8414_v46 = vld [vmem:[#allocation19_spill] sm:$0xff]  ;;  %vm4236_vm10 = vcmask 1045509   ;;  %vm4233_vm1 = vcmask 1044484  }
 0x68d   : > { %v7227_v4 = vmul.f32 %v7014_v61, %v2834_v25  ;;  %v7229_v41 = vld [vmem:[#allocation1 + $0x2] ss:$4 sm:$0xff]  ;;  %vm2845_vm7 = vcmp.eq.f32.partialorder %v2844_v62, 8.507059e+37 }
 0x68e   : > { %v2964_v37 = vpop.permute.xlu0 %2963  ;;  %3065 = vst.sshfl [vmem:[#allocation1] sm:$0xff pattern:$0x73625140] %v7020_v15 }
 0x68f   : > { %3297 = vst.msk [vmem:[%s5913_s14 + $0x1b] sm:$0x1] %vm1086_vm8, %v7227_v4  ;;  %4875 = vmatmul.msk.f32.gmra.mxu2 %vm701_vm3, %v7227_v4  ;;  %v4836_v31 = vrot.slane %v7227_v4, 9 }
 0x690   : > { %2986 = vst.msk [vmem:[%s5913_s14 + $0x5] sm:$0x1] %vm1194_vm11, %v2964_v37  ;;  %3031 = vrot.lane.b32.xlu2 %v4808_v13, %s8339_s17 }
 0x691   : > { %v5200_v61 = vpop.eup %5199  ;;  %4882 = vmatmul.msk.f32.gmra.mxu0 %vm410_vm2, %v3766_v59  ;;  %3335 = vrot.lane.b32.xlu0 %v4836_v31, %s5304_s15  ;;  %v4812_v31 = vrot.slane %v7211_v47, 9 }
 0x692   : > { %v2836_v60 = vmul.f32 %v5200_v61, %v2635_v49  ;;  %vm2841_vm13 = vweird.f32 %v5200_v61 }
 0x693   : > { %4901 = vmatmul.msk.f32.gmra.mxu1 %vm410_vm2, %v8408_v17  ;;  %v1833_v35 = vpop.permute.xlu2 %1832  ;;  %vm2842_vm5 = vmor %vm2840_vm4, %vm2841_vm13  ;;  %v3799_v39 = vpop.f32.mrf.mxu2  ;;  %vm4230_vm13 = vcmask 1043459   ;;  %vm4227_vm4 = vcmask 1042434  }
 0x694   : > { %v2837_v28 = vsub.f32 1.0, %v2836_v60  ;;  %1850 = vst.msk [vmem:[%s5913_s14 + $0x1a] sm:$0x1] %vm1430_vm15, %v1833_v35 }
 0x695   : > { %1916 = vst.msk [vmem:[%s5913_s14 + $0x1a] sm:$0x1] %vm1497_vm0, %v7184_v57  ;;  %v7250_v7 = vld [vmem:[#allocation1 + $0x2] ss:$4 sm:$0xff]  ;;  %v2847_v57 = vor.u32 1.1754944e-38, %v2846_v22 }
 0x696   : > { %v2838_v26 = vmul.f32 %v5200_v61, %v2837_v28  ;;  %3069 = vst.sshfl [vmem:[#allocation1] sm:$0xff pattern:$0x73625140] %v7135_v8 }
 0x697   : > { %4903 = vmatmul.msk.f32.vlgmr.msra.gmra.mxu2 %vm410_vm2, %v8409_v11 }
 0x698   : > { %v2839_v10 = vadd.f32 %v5200_v61, %v2838_v26  ;;  %3035 = vrot.lane.b32.xlu2 %v4810_v21, %s8339_s17  ;;  %v8416_v26 = vld [vmem:[#allocation23_spill] sm:$0xff] }
 0x699   : > { %4883 = vmatmul.msk.f32.gmra.mxu0 %vm410_vm2, %v3796_v18 }
 0x69a   : > { %v2843_v43 = vsel %vm2842_vm5, %v5200_v61, %v2839_v10  ;;  %v8415_v61 = vld [vmem:[#allocation22_spill] sm:$0xff]  ;;  %vm4224_vm5 = vcmask 1041409  }
 0x69b   : > { %v2848_v2 = vsel %vm2845_vm7, %v2847_v57, %v2843_v43  ;;  %4902 = vmatmul.msk.f32.gmra.mxu1 %vm410_vm2, %v8410_v40  ;;  %v1891_v14 = vpop.permute.xlu2 %1890  ;;  %v8417_v43 = vld [vmem:[#allocation24_spill] sm:$0xff]  ;;  %vm4242_vm7 = vcmask 1047559  }
 0x69c   : > { %v7261_v3 = vmul.f32 %v7051_v20, %v2848_v2  ;;  %1912 = vst.msk [vmem:[%s5913_s14 + $0xa] sm:$0x1] %vm1497_vm0, %v1891_v14 }
 0x69d   : > { %v7265_v5 = vld [vmem:[#allocation1 + $0x2] ss:$4 sm:$0xff] }
 0x69e   : > { %2886 = vst.msk [vmem:[%s5913_s14 + $0x1d] sm:$0x1] %vm1086_vm8, %v7261_v3  ;;  %4876 = vmatmul.msk.f32.vlgmr.msrb.gmra.mxu3 %vm701_vm3, %v7261_v3  ;;  %v4805_v58 = vrot.slane %v7261_v3, 9 }
 0x69f   : > { %2959 = vst.sshfl [vmem:[#allocation1 + $0x20] sm:$0xff pattern:$0x73625140] %v7261_v3  ;;  %4904 = vmatmul.msk.f32.gmra.mxu2 %vm410_vm2, %v8411_v63 }
 0x6a0   : > { %2925 = vrot.lane.b32.xlu0 %v4805_v58, %s5304_s15  ;;  %3073 = vst.sshfl [vmem:[#allocation1] sm:$0xff pattern:$0x73625140] %v7041_v12 }
 0x6a1   : > { %4884 = vmatmul.msk.f32.gmra.mxu0 %vm410_vm2, %v3799_v39 }
 0x6a2   : > { %v1829_v20 = vpop.permute.xlu1 %1828 }
 0x6a3   : > { %1848 = vst.msk [vmem:[%s5913_s14 + $0x12] sm:$0x1] %vm1430_vm15, %v1829_v20  ;;  %v1895_v1 = vpop.permute.xlu2 %1894 }
 0x6a4   : > { %1914 = vst.msk [vmem:[%s5913_s14 + $0x12] sm:$0x1] %vm1497_vm0, %v1895_v1 }
 0x6a6   : > { %4877 = vmatmul.msk.f32.gmra.mxu3 %vm701_vm3, %v7161_v19  ;;  %v2960_v44 = vld [vmem:[#allocation1 + $0x21] ss:$4 sm:$0xff]  ;;  %vm8418_vm3 = vcmask 516480  }
 0x6a7   : > { %2975 = vrot.lane.b32.xlu1 %v2960_v44, %s8336_s16  ;;  %2996 = vst.sshfl [vmem:[#allocation1 + $0x20] sm:$0xff pattern:$0x73625140] %v6957_v29  ;;  %4905 = vmatmul.msk.f32.gmra.mxu2 %vm410_vm2, %v8412_v42  ;;  %v7289_v6 = vld [vmem:[#allocation1 + $0x2] ss:$4 sm:$0xff]  ;;  %vm8419_vm8 = vmmov %vm8418_vm3 }
 0x6a8   : > { %3109 = vst.sshfl [vmem:[#allocation1] sm:$0xff pattern:$0x73625140] %v6872_v36  ;;  %vm8420_vm9 = vmmov %vm8418_vm3 }
 0x6a9   : > { %4885 = vmatmul.msk.f32.gmra.mxu0 %vm410_vm2, %v3829_v23 }
 0x6aa   : > { %v1835_v55 = vpop.permute.xlu1 %1834 }
 0x6ab   : > { %1851 = vst.msk [vmem:[%s5913_s14 + $0x1e] sm:$0x1] %vm1430_vm15, %v1835_v55  ;;  %v1901_v30 = vpop.permute.xlu2 %1900 }
 0x6ac   : > { %1917 = vst.msk [vmem:[%s5913_s14 + $0x1e] sm:$0x1] %vm1497_vm0, %v1901_v30 }
 0x6ae   : > { %v2998_v45 = vld [vmem:[#allocation1 + $0x21] ss:$4 sm:$0xff] }
 0x6af   : > { %3337 = vrot.lane.b32.xlu1 %v4837_v54, %s5304_s15  ;;  %4906 = vmatmul.msk.f32.gmra.mxu2 %vm410_vm2, %v8413_v34  ;;  %v4807_v50 = vrot.slane %v2998_v45, 9  ;;  %3001 = vst.sshfl [vmem:[#allocation1 + $0x20] sm:$0xff pattern:$0x73625140] %v6951_v52  ;;  %v7302_v9 = vld [vmem:[#allocation1 + $0x2] ss:$4 sm:$0xff] }
 0x6b0   : > { %3115 = vst.sshfl [vmem:[#allocation1] sm:$0xff pattern:$0x73625140] %v7020_v15 }
 0x6b1   : > { %3029 = vrot.lane.b32.xlu0 %v4807_v50, %s8339_s17 }
 0x6b2   : > { %v1887_v0 = vpop.permute.xlu1 %1886 }
 0x6b3   : > { %1910 = vst.msk [vmem:[%s5913_s14 + $0x2] sm:$0x1] %vm1497_vm0, %v1887_v0  ;;  %v2912_v16 = vpop.permute.xlu2 %2911 }
 0x6b4   : > { %2935 = vst.msk [vmem:[%s5913_s14 + $0x1] sm:$0x1] %vm1143_vm6, %v2912_v16 }
 0x6b6   : > { %v3002_v49 = vld [vmem:[#allocation1 + $0x21] ss:$4 sm:$0xff] }
 0x6b7   : > { %4907 = vmatmul.msk.f32.gmra.mxu2 %vm410_vm2, %v8414_v46  ;;  %v4809_v56 = vrot.slane %v3002_v49, 9  ;;  %3005 = vst.sshfl [vmem:[#allocation1 + $0x20] sm:$0xff pattern:$0x73625140] %v7118_v51  ;;  %v7313_v33 = vld [vmem:[#allocation1 + $0x2] ss:$4 sm:$0xff]  ;;  %v3928_v46 = vpop.f32.mrf.mxu2 }
 0x6b8   : > { %3119 = vst.sshfl [vmem:[#allocation1] sm:$0xff pattern:$0x73625140] %v7135_v8  ;;  %v4816_v0 = vrot.slane %v7313_v33, 9 }
 0x6b9   : > { %3033 = vrot.lane.b32.xlu1 %v4809_v56, %s8339_s17 }
 0x6ba   : > { %v1893_v25 = vpop.permute.xlu1 %1892 }
 0x6bb   : > { %1913 = vst.msk [vmem:[%s5913_s14 + $0xe] sm:$0x1] %vm1497_vm0, %v1893_v25  ;;  %v3330_v37 = vpop.permute.xlu0 %3329  ;;  %v2916_v13 = vpop.permute.xlu2 %2915 }
 0x6bc   : > { %3350 = vst.msk [vmem:[%s5913_s14 + $0xf] sm:$0x1] %vm1143_vm6, %v3330_v37 }
 0x6bd   : > { %2937 = vst.msk [vmem:[%s5913_s14 + $0x9] sm:$0x1] %vm1143_vm6, %v2916_v13 }
 0x6be   : > { %v3006_v59 = vld [vmem:[#allocation1 + $0x21] ss:$4 sm:$0xff] }
 0x6bf   : > { %4908 = vmatmul.msk.f32.gmra.mxu2 %vm410_vm2, %v8415_v61  ;;  %v4811_v60 = vrot.slane %v3006_v59, 9  ;;  %3009 = vst.sshfl [vmem:[#allocation1 + $0x20] sm:$0xff pattern:$0x73625140] %v7261_v3  ;;  %v7327_v17 = vld [vmem:[#allocation1 + $0x2] ss:$4 sm:$0xff] }
 0x6c0   : > { %3123 = vst.sshfl [vmem:[#allocation1] sm:$0xff pattern:$0x73625140] %v7041_v12  ;;  %v4818_v13 = vrot.slane %v7327_v17, 9 }
 0x6c1   : > { %3039 = vrot.lane.b32.xlu1 %v4812_v31, %s8339_s17  ;;  %3037 = vrot.lane.b32.xlu0 %v4811_v60, %s8339_s17 }
 0x6c2   : > { %v1897_v35 = vpop.permute.xlu1 %1896 }
 0x6c3   : > { %1915 = vst.msk [vmem:[%s5913_s14 + $0x16] sm:$0x1] %vm1497_vm0, %v1897_v35  ;;  %v2922_v47 = vpop.permute.xlu0 %2921  ;;  %v3328_v28 = vpop.permute.xlu2 %3327 }
 0x6c4   : > { %2940 = vst.msk [vmem:[%s5913_s14 + $0x15] sm:$0x1] %vm1143_vm6, %v2922_v47 }
 0x6c5   : > { %3349 = vst.msk [vmem:[%s5913_s14 + $0xb] sm:$0x1] %vm1143_vm6, %v3328_v28 }
 0x6c6   : > { %v3010_v22 = vld [vmem:[#allocation1 + $0x21] ss:$4 sm:$0xff] }
 0x6c7   : > { %4909 = vmatmul.msk.f32.gmra.mxu2 %vm410_vm2, %v8416_v26  ;;  %v4813_v62 = vrot.slane %v3010_v22, 9  ;;  %3062 = vst.sshfl [vmem:[#allocation1 + $0x20] sm:$0xff pattern:$0x73625140] %v6957_v29  ;;  %v7341_v21 = vld [vmem:[#allocation1 + $0x2] ss:$4 sm:$0xff] }
 0x6c8   : > { %3175 = vst.sshfl [vmem:[#allocation1] sm:$0xff pattern:$0x73625140] %v6872_v36  ;;  %v4820_v17 = vrot.slane %v7341_v21, 9 }
 0x6c9   : > { %3077 = vrot.lane.b32.xlu1 %v7229_v41, %s8337_s18  ;;  %3041 = vrot.lane.b32.xlu0 %v4813_v62, %s8339_s17  ;;  %v3832_v11 = vpop.f32.mrf.mxu3 }
 0x6ca   : > { %v2962_v18 = vpop.permute.xlu1 %2961  ;;  %4886 = vmatmul.msk.f32.gmra.mxu0 %vm410_vm2, %v3832_v11 }
 0x6cb   : > { %2985 = vst.msk [vmem:[%s5913_s14 + $0x1] sm:$0x1] %vm1194_vm11, %v2962_v18  ;;  %v2968_v10 = vpop.permute.xlu2 %2967  ;;  %v3895_v63 = vpop.f32.mrf.mxu1 }
 0x6cc   : > { %2988 = vst.msk [vmem:[%s5913_s14 + $0xd] sm:$0x1] %vm1194_vm11, %v2968_v10 }
 0x6ce   : > { %v3064_v57 = vld [vmem:[#allocation1 + $0x22] ss:$4 sm:$0xff]  ;;  %v2970_v55 = vpop.permute.xlu0 %2969 }
 0x6cf   : > { %3079 = vrot.lane.b32.xlu2 %v3064_v57, %s8337_s18  ;;  %3067 = vst.sshfl [vmem:[#allocation1 + $0x20] sm:$0xff pattern:$0x73625140] %v6951_v52  ;;  %4910 = vmatmul.msk.f32.gmra.mxu2 %vm410_vm2, %v8417_v43  ;;  %v7356_v41 = vld [vmem:[#allocation1 + $0x3] ss:$4 sm:$0xff] }
 0x6d0   : > { %v3862_v2 = vpop.f32.mrf.mxu0  ;;  %3181 = vst.sshfl [vmem:[#allocation1] sm:$0xff pattern:$0x73625140] %v7020_v15 }
 0x6d1   : > { %3081 = vrot.lane.b32.xlu0 %v7250_v7, %s8337_s18 }
 0x6d2   : > { %v3326_v40 = vpop.permute.xlu1 %3325  ;;  %4887 = vmatmul.msk.f32.gmra.mxu0 %vm410_vm2, %v3862_v2  ;;  %v7453_v2 = vld [vmem:[%s8320_s4] ss:$0 sm:$0xff] }
 0x6d3   : > { %3348 = vst.msk [vmem:[%s5913_s14 + $0x7] sm:$0x1] %vm1143_vm6, %v3326_v40  ;;  %v2924_v14 = vpop.permute.xlu2 %2923 }
 0x6d4   : > { %2941 = vst.msk [vmem:[%s5913_s14 + $0x19] sm:$0x1] %vm1143_vm6, %v2924_v14 }
 0x6d6   : > { %v3068_v58 = vld [vmem:[#allocation1 + $0x22] ss:$4 sm:$0xff] }
 0x6d7   : > { %3085 = vrot.lane.b32.xlu2 %v7265_v5, %s8337_s18  ;;  %3083 = vrot.lane.b32.xlu1 %v3068_v58, %s8337_s18  ;;  %3071 = vst.sshfl [vmem:[#allocation1 + $0x20] sm:$0xff pattern:$0x73625140] %v7118_v51  ;;  %v7370_v7 = vld [vmem:[#allocation1 + $0x3] ss:$4 sm:$0xff] }
 0x6d8   : > { %v3865_v39 = vpop.f32.mrf.mxu0  ;;  %3185 = vst.sshfl [vmem:[#allocation1] sm:$0xff pattern:$0x73625140] %v7135_v8  ;;  %v3898_v44 = vpop.f32.mrf.mxu1 }
 0x6da   : > { %v2966_v20 = vpop.permute.xlu1 %2965  ;;  %4888 = vmatmul.msk.f32.gmra.mxu0 %vm410_vm2, %v3865_v39 }
 0x6db   : > { %2987 = vst.msk [vmem:[%s5913_s14 + $0x9] sm:$0x1] %vm1194_vm11, %v2966_v20  ;;  %v3334_v1 = vpop.permute.xlu2 %3333 }
 0x6dc   : > { %3352 = vst.msk [vmem:[%s5913_s14 + $0x17] sm:$0x1] %vm1143_vm6, %v3334_v1 }
 0x6de   : > { %v3072_v5 = vld [vmem:[#allocation1 + $0x22] ss:$4 sm:$0xff] }
 0x6df   : > { %3089 = vrot.lane.b32.xlu1 %v7289_v6, %s8337_s18  ;;  %3087 = vrot.lane.b32.xlu0 %v3072_v5, %s8337_s18  ;;  %3075 = vst.sshfl [vmem:[#allocation1 + $0x20] sm:$0xff pattern:$0x73625140] %v7261_v3  ;;  %v7382_v42 = vld [vmem:[#allocation1 + $0x3] ss:$4 sm:$0xff]  ;;  %v4814_v6 = vrot.slane %v7302_v9, 9 }
 0x6e0   : > { %3189 = vst.sshfl [vmem:[#allocation1] sm:$0xff pattern:$0x73625140] %v7041_v12  ;;  %v7399_v34 = vpop.f32.mrf.mxu1  ;;  %v4034_v37 = vpop.f32.mrf.mxu0 }
 0x6e2   : > { %v2920_v23 = vpop.permute.xlu1 %2919  ;;  %4889 = vmatmul.msk.f32.gmra.mxu0 %vm410_vm2, %v3895_v63  ;;  %v4148_v63 = vadd.f32 %v7399_v34, %v4034_v37 }
 0x6e3   : > { %2939 = vst.msk [vmem:[%s5913_s14 + $0x11] sm:$0x1] %vm1143_vm6, %v2920_v23  ;;  %v2974_v30 = vpop.permute.xlu2 %2973 }
 0x6e4   : > { %2989 = vst.msk [vmem:[%s5913_s14 + $0x11] sm:$0x1] %vm1194_vm11, %v2970_v55  ;;  %v7471_v23 = vadd.f32 %v7453_v2, %v4148_v63 }
 0x6e5   : > { %2991 = vst.msk [vmem:[%s5913_s14 + $0x19] sm:$0x1] %vm1194_vm11, %v2974_v30 }
 0x6e6   : > { %v3076_v54 = vld [vmem:[#allocation1 + $0x22] ss:$4 sm:$0xff] }
 0x6e7   : > { %3091 = vrot.lane.b32.xlu2 %v3076_v54, %s8337_s18  ;;  %3112 = vst.sshfl [vmem:[#allocation1 + $0x20] sm:$0xff pattern:$0x73625140] %v6957_v29  ;;  %3143 = vrot.lane.b32.xlu0 %v4814_v6, %s5308_s26  ;;  %v7396_v45 = vld [vmem:[#allocation1 + $0x3] ss:$4 sm:$0xff] }
 0x6e8   : > { %3225 = vst.sshfl [vmem:[#allocation1] sm:$0xff pattern:$0x73625140] %v6872_v36  ;;  %v7414_v25 = vpop.f32.mrf.mxu1 }
 0x6ea   : > { %v3332_v50 = vpop.permute.xlu1 %3331  ;;  %4890 = vmatmul.msk.f32.gmra.mxu0 %vm410_vm2, %v3898_v44 }
 0x6eb   : > { %3351 = vst.msk [vmem:[%s5913_s14 + $0x13] sm:$0x1] %vm1143_vm6, %v3332_v50  ;;  %v3028_v9 = vpop.permute.xlu2 %3027 }
 0x6ec   : > { %3051 = vst.msk [vmem:[%s5913_s14 + $0x1] sm:$0x1] %vm8418_vm3, %v3028_v9 }
 0x6ee   : > { %v3114_v16 = vld [vmem:[#allocation1 + $0x22] ss:$4 sm:$0xff] }
 0x6ef   : > { %3147 = vrot.lane.b32.xlu2 %v4816_v0, %s5308_s26  ;;  %v4815_v49 = vrot.slane %v3114_v16, 9  ;;  %3117 = vst.sshfl [vmem:[#allocation1 + $0x20] sm:$0xff pattern:$0x73625140] %v6951_v52  ;;  %v7409_v36 = vld [vmem:[#allocation1 + $0x3] ss:$4 sm:$0xff] }
 0x6f0   : > { %3231 = vst.sshfl [vmem:[#allocation1] sm:$0xff pattern:$0x73625140] %v7020_v15  ;;  %v4153_v60 = vpop.f32.mrf.mxu1 }
 0x6f1   : > { %3145 = vrot.lane.b32.xlu1 %v4815_v49, %s5308_s26 }
 0x6f2   : > { %4891 = vmatmul.msk.f32.gmra.mxu0 %vm410_vm2, %v3928_v46  ;;  %v2972_v56 = vpop.permute.xlu1 %2971 }
 0x6f3   : > { %2990 = vst.msk [vmem:[%s5913_s14 + $0x15] sm:$0x1] %vm1194_vm11, %v2972_v56  ;;  %v3032_v33 = vpop.permute.xlu2 %3031 }
 0x6f4   : > { %3053 = vst.msk [vmem:[%s5913_s14 + $0x9] sm:$0x1] %vm8419_vm8, %v3032_v33  ;;  %vm8422_vm8 = vmmov %vm8418_vm3 }
 0x6f6   : > { %v3118_v31 = vld [vmem:[#allocation1 + $0x22] ss:$4 sm:$0xff] }
 0x6f7   : > { %v4817_v59 = vrot.slane %v3118_v31, 9  ;;  %3121 = vst.sshfl [vmem:[#allocation1 + $0x20] sm:$0xff pattern:$0x73625140] %v7118_v51  ;;  %v7422_v15 = vld [vmem:[#allocation1 + $0x3] ss:$4 sm:$0xff] }
 0x6f8   : > { %3235 = vst.sshfl [vmem:[#allocation1] sm:$0xff pattern:$0x73625140] %v7135_v8  ;;  %v4156_v11 = vpop.f32.mrf.mxu1 }
 0x6f9   : > { %3151 = vrot.lane.b32.xlu1 %v4818_v13, %s5308_s26  ;;  %3149 = vrot.lane.b32.xlu0 %v4817_v59, %s5308_s26 }
 0x6fb   : > { %v3036_v61 = vpop.permute.xlu2 %3035 }
 0x6fc   : > { %3055 = vst.msk [vmem:[%s5913_s14 + $0x11] sm:$0x1] %vm8420_vm9, %v3036_v61  ;;  %vm8424_vm9 = vmmov %vm8418_vm3 }
 0x6fe   : > { %v4037_v35 = vpop.f32.mrf.mxu0  ;;  %v3122_v47 = vld [vmem:[#allocation1 + $0x22] ss:$4 sm:$0xff] }
 0x6ff   : > { %v4819_v28 = vrot.slane %v3122_v47, 9  ;;  %3125 = vst.sshfl [vmem:[#allocation1 + $0x20] sm:$0xff pattern:$0x73625140] %v7261_v3  ;;  %v7431_v22 = vld [vmem:[#allocation1 + $0x3] ss:$4 sm:$0xff]  ;;  %v4151_v6 = vadd.f32 %v7414_v25, %v4037_v35 }
 0x700   : > { %3239 = vst.sshfl [vmem:[#allocation1] sm:$0xff pattern:$0x73625140] %v7041_v12  ;;  %v4159_v40 = vpop.f32.mrf.mxu1 }
 0x701   : > { %3153 = vrot.lane.b32.xlu2 %v4819_v28, %s5308_s26  ;;  %3155 = vrot.lane.b32.xlu0 %v4820_v17, %s5308_s26  ;;  %v7536_v28 = vadd.f32 %v7453_v2, %v4151_v6 }
 0x703   : > { %v3336_v8 = vpop.permute.xlu0 %3335 }
 0x704   : > { %3353 = vst.msk [vmem:[%s5913_s14 + $0x1b] sm:$0x1] %vm1143_vm6, %v3336_v8 }
 0x706   : > { %v4040_v26 = vpop.f32.mrf.mxu0  ;;  %v3126_v62 = vld [vmem:[#allocation1 + $0x22] ss:$4 sm:$0xff] }
 0x707   : > { %v4821_v18 = vrot.slane %v3126_v62, 9  ;;  %3178 = vst.sshfl [vmem:[#allocation1 + $0x20] sm:$0xff pattern:$0x73625140] %v6957_v29  ;;  %v7439_v21 = vld [vmem:[#allocation1 + $0x3] ss:$4 sm:$0xff]  ;;  %v4154_v57 = vadd.f32 %v4153_v60, %v4040_v26 }
 0x708   : > { %3355 = vst.sshfl [vmem:[#allocation1] sm:$0xff pattern:$0x73625140] %v7004_v32  ;;  %v4162_v9 = vpop.f32.mrf.mxu1 }
 0x709   : > { %3193 = vrot.lane.b32.xlu2 %v7356_v41, %s5302_s20  ;;  %3157 = vrot.lane.b32.xlu1 %v4821_v18, %s5308_s26  ;;  %v4201_v58 = vadd.f32 %v7453_v2, %v4154_v57  ;;  %v4822_v18 = vrot.slane %v7409_v36, 9 }
 0x70b   : > { %v7462_v1 = vrot.slane %v4201_v58, 7 }
 0x70d   : > { %v4310_v34 = vsel %vm4239_vm12, %v7462_v1, %v7471_v23  ;;  %v4294_v50 = vsel %vm4236_vm10, %v7462_v1, %v7471_v23  ;;  %v4278_v0 = vsel %vm4233_vm1, %v7462_v1, %v7471_v23  ;;  %v4262_v16 = vsel %vm4230_vm13, %v7462_v1, %v7471_v23 }
 0x70e   : > { %v4043_v12 = vpop.f32.mrf.mxu0  ;;  %v3180_v10 = vld [vmem:[#allocation1 + $0x23] ss:$4 sm:$0xff]  ;;  %v4246_v49 = vsel %vm4227_vm4, %v7462_v1, %v7471_v23  ;;  %v4225_v46 = vsel %vm4224_vm5, %v7462_v1, %v7471_v23 }
 0x70f   : > { %3195 = vrot.lane.b32.xlu0 %v3180_v10, %s5302_s20  ;;  %3183 = vst.sshfl [vmem:[#allocation1 + $0x20] sm:$0xff pattern:$0x73625140] %v6951_v52  ;;  %v7447_v43 = vld [vmem:[#allocation1 + $0x1] ss:$4 sm:$0xff]  ;;  %v4157_v5 = vadd.f32 %v4156_v11, %v4043_v12 }
 0x710   : > { %3361 = vst.sshfl [vmem:[#allocation1] sm:$0xff pattern:$0x73625140] %v7038_v27 }
 0x711   : > { %3197 = vrot.lane.b32.xlu1 %v7370_v7, %s5302_s20 }
 0x712   : > { %v3931_v41 = vpop.f32.mrf.mxu2  ;;  %v2926_v14 = vpop.permute.xlu0 %2925 }
 0x713   : > { %2942 = vst.msk [vmem:[%s5913_s14 + $0x1d] sm:$0x1] %vm1143_vm6, %v2926_v14  ;;  %4892 = vmatmul.msk.f32.gmra.mxu0 %vm410_vm2, %v3931_v41 }
 0x716   : > { %v4046_v39 = vpop.f32.mrf.mxu0  ;;  %v3184_v20 = vld [vmem:[#allocation1 + $0x23] ss:$4 sm:$0xff] }
 0x717   : > { %v4160_v44 = vadd.f32 %v4159_v40, %v4046_v39  ;;  %3199 = vrot.lane.b32.xlu2 %v3184_v20, %s5302_s20  ;;  %3187 = vst.sshfl [vmem:[#allocation1 + $0x20] sm:$0xff pattern:$0x73625140] %v7118_v51  ;;  %3201 = vrot.lane.b32.xlu0 %v7382_v42, %s5302_s20  ;;  %v7468_v7 = vld [vmem:[#allocation1 + $0x1] ss:$4 sm:$0xff]  ;;  %v4202_v42 = vadd.f32 %v7453_v2, %v4157_v5  ;;  %v4165_v20 = vpop.f32.mrf.mxu1 }
 0x718   : > { %3365 = vst.sshfl [vmem:[#allocation1] sm:$0xff pattern:$0x73625140] %v7060_v24 }
 0x719   : > { %v4203_v55 = vadd.f32 %v7453_v2, %v4160_v44  ;;  %v2976_v30 = vpop.permute.xlu1 %2975  ;;  %v7526_v35 = vrot.slane %v4202_v42, 7 }
 0x71a   : > { %2992 = vst.msk [vmem:[%s5913_s14 + $0x1d] sm:$0x1] %vm1194_vm11, %v2976_v30 }
 0x71b   : > { %v7479_v54 = vrot.slane %v4203_v55, 6  ;;  %v4449_v12 = vsel %vm4239_vm12, %v7526_v35, %v7536_v28  ;;  %v4433_v10 = vsel %vm4236_vm10, %v7526_v35, %v7536_v28  ;;  %v4417_v57 = vsel %vm4233_vm1, %v7526_v35, %v7536_v28 }
 0x71c   : > { %v4401_v40 = vsel %vm4230_vm13, %v7526_v35, %v7536_v28  ;;  %v4385_v36 = vsel %vm4227_vm4, %v7526_v35, %v7536_v28  ;;  %v4367_v41 = vsel %vm4224_vm5, %v7526_v35, %v7536_v28 }
 0x71d   : > { %v7501_v56 = vsel %vm4242_vm7, %v7479_v54, %v4310_v34  ;;  %v7505_v25 = vsel %vm4239_vm12, %v7479_v54, %v4294_v50  ;;  %v7509_v33 = vsel %vm4236_vm10, %v7479_v54, %v4278_v0  ;;  %v7513_v37 = vsel %vm4233_vm1, %v7479_v54, %v4262_v16 }
 0x71e   : > { %v4049_v13 = vpop.f32.mrf.mxu0  ;;  %v3188_v31 = vld [vmem:[#allocation1 + $0x23] ss:$4 sm:$0xff]  ;;  %v7517_v59 = vsel %vm4230_vm13, %v7479_v54, %v4246_v49  ;;  %v4342_v61 = vsel %vm4224_vm5, %v7479_v54, %v7462_v1  ;;  %v7524_v60 = vsel %vm4227_vm4, %v7479_v54, %v4225_v46 }
 0x71f   : > { %v4163_v47 = vadd.f32 %v4162_v9, %v4049_v13  ;;  %3205 = vrot.lane.b32.xlu2 %v7396_v45, %s5302_s20  ;;  %3203 = vrot.lane.b32.xlu1 %v3188_v31, %s5302_s20  ;;  %3191 = vst.sshfl [vmem:[#allocation1 + $0x20] sm:$0xff pattern:$0x73625140] %v7261_v3  ;;  %v7532_v17 = vld [vmem:[#allocation1 + $0x1] ss:$4 sm:$0xff] }
 0x720   : > { %3369 = vst.sshfl [vmem:[#allocation1] sm:$0xff pattern:$0x73625140] %v7227_v4 }
 0x721   : > { %v4204_v8 = vadd.f32 %v7453_v2, %v4163_v47  ;;  %v3338_v26 = vpop.permute.xlu1 %3337  ;;  %v3961_v62 = vpop.f32.mrf.mxu3 }
 0x722   : > { %3354 = vst.msk [vmem:[%s5913_s14 + $0x1f] sm:$0x1] %vm1143_vm6, %v3338_v26  ;;  %4893 = vmatmul.msk.f32.gmra.mxu0 %vm410_vm2, %v3961_v62  ;;  %vm8421_vm6 = vcmask 647680  }
 0x723   : > { %v7542_v45 = vrot.slane %v4204_v8, 6  ;;  %v3030_v11 = vpop.permute.xlu0 %3029 }
 0x724   : > { %3052 = vst.msk [vmem:[%s5913_s14 + $0x5] sm:$0x1] %vm8418_vm3, %v3030_v11 }
 0x725   : > { %v7567_v14 = vsel %vm4242_vm7, %v7542_v45, %v4449_v12  ;;  %v7571_v58 = vsel %vm4239_vm12, %v7542_v45, %v4433_v10  ;;  %v7575_v63 = vsel %vm4236_vm10, %v7542_v45, %v4417_v57  ;;  %v7579_v39 = vsel %vm4233_vm1, %v7542_v45, %v4401_v40 }
 0x726   : > { %v4052_v5 = vpop.f32.mrf.mxu0  ;;  %v3192_v44 = vld [vmem:[#allocation1 + $0x23] ss:$4 sm:$0xff]  ;;  %v7583_v55 = vsel %vm4230_vm13, %v7542_v45, %v4385_v36  ;;  %v7587_v30 = vsel %vm4227_vm4, %v7542_v45, %v4367_v41  ;;  %v7592_v6 = vsel %vm4224_vm5, %v7542_v45, %v7526_v35  ;;  %v4168_v41 = vpop.f32.mrf.mxu1 }
 0x727   : > { %v4166_v42 = vadd.f32 %v4165_v20, %v4052_v5  ;;  %3259 = vrot.lane.b32.xlu1 %v4822_v18, %s5301_s19  ;;  %3207 = vrot.lane.b32.xlu0 %v3192_v44, %s5302_s20  ;;  %3228 = vst.sshfl [vmem:[#allocation1 + $0x20] sm:$0xff pattern:$0x73625140] %v6957_v29  ;;  %v7597_v34 = vld [vmem:[#allocation1 + $0x1] ss:$4 sm:$0xff]  ;;  %v4824_v29 = vrot.slane %v7422_v15, 9 }
 0x728   : > { %3405 = vst.sshfl [vmem:[#allocation1] sm:$0xff pattern:$0x73625140] %v7004_v32 }
 0x729   : > { %v4205_v50 = vadd.f32 %v7453_v2, %v4166_v42  ;;  %v3080_v9 = vpop.permute.xlu2 %3079  ;;  %v3964_v0 = vpop.f32.mrf.mxu3 }
 0x72a   : > { %3102 = vst.msk [vmem:[%s5913_s14 + $0x5] sm:$0x1] %vm8421_vm6, %v3080_v9  ;;  %4894 = vmatmul.msk.f32.gmra.mxu0 %vm410_vm2, %v3964_v0  ;;  %vm8423_vm2 = vmmov %vm8421_vm6 }
 0x72b   : > { %v7604_v16 = vrot.slane %v4205_v50, 5  ;;  %v3034_v49 = vpop.permute.xlu1 %3033  ;;  %vm8425_vm6 = vmmov %vm8423_vm2 }
 0x72c   : > { %3054 = vst.msk [vmem:[%s5913_s14 + $0xd] sm:$0x1] %vm8422_vm8, %v3034_v49  ;;  %vm8426_vm8 = vmmov %vm8418_vm3 }
 0x72d   : > { %v7612_v13 = vsel %vm4224_vm5, %v7604_v16, %v7479_v54  ;;  %v7616_v31 = vsel %vm4227_vm4, %v7604_v16, %v4342_v61  ;;  %v4826_v61 = vrot.slane %v7431_v22, 9  ;;  %v4828_v22 = vrot.slane %v7439_v21, 9 }
 0x72e   : > { %v3230_v46 = vld [vmem:[#allocation1 + $0x23] ss:$4 sm:$0xff] }
 0x72f   : > { %3263 = vrot.lane.b32.xlu0 %v4824_v29, %s5301_s19  ;;  %v4823_v47 = vrot.slane %v3230_v46, 9  ;;  %3233 = vst.sshfl [vmem:[#allocation1 + $0x20] sm:$0xff pattern:$0x73625140] %v6951_v52  ;;  %v7620_v8 = vld [vmem:[#allocation1 + $0x1] ss:$4 sm:$0xff] }
 0x730   : > { %3411 = vst.sshfl [vmem:[#allocation1] sm:$0xff pattern:$0x73625140] %v7038_v27 }
 0x731   : > { %3261 = vrot.lane.b32.xlu2 %v4823_v47, %s5301_s19  ;;  %v3086_v15 = vpop.permute.xlu2 %3085 }
 0x732   : > { %3105 = vst.msk [vmem:[%s5913_s14 + $0x11] sm:$0x1] %vm8423_vm2, %v3086_v15 }
 0x733   : > { %v3040_v54 = vpop.permute.xlu1 %3039  ;;  %v3038_v26 = vpop.permute.xlu0 %3037 }
 0x734   : > { %3057 = vst.msk [vmem:[%s5913_s14 + $0x19] sm:$0x1] %vm8424_vm9, %v3040_v54  ;;  %vm8427_vm9 = vmmov %vm8423_vm2 }
 0x735   : > { %3056 = vst.msk [vmem:[%s5913_s14 + $0x15] sm:$0x1] %vm8418_vm3, %v3038_v26  ;;  %vm8428_vm3 = vmmov %vm8423_vm2 }
 0x736   : > { %v3234_v52 = vld [vmem:[#allocation1 + $0x23] ss:$4 sm:$0xff] }
 0x737   : > { %v4825_v62 = vrot.slane %v3234_v52, 9  ;;  %3237 = vst.sshfl [vmem:[#allocation1 + $0x20] sm:$0xff pattern:$0x73625140] %v7118_v51  ;;  %v7632_v11 = vld [vmem:[#allocation1 + $0x1] ss:$4 sm:$0xff] }
 0x738   : > { %3415 = vst.sshfl [vmem:[#allocation1] sm:$0xff pattern:$0x73625140] %v7060_v24 }
 0x739   : > { %3267 = vrot.lane.b32.xlu2 %v4826_v61, %s5301_s19  ;;  %3265 = vrot.lane.b32.xlu1 %v4825_v62, %s5301_s19 }
 0x73b   : > { %v3078_v18 = vpop.permute.xlu1 %3077  ;;  %v3042_v12 = vpop.permute.xlu0 %3041 }
 0x73c   : > { %3101 = vst.msk [vmem:[%s5913_s14 + $0x1] sm:$0x1] %vm8425_vm6, %v3078_v18  ;;  %vm8429_vm6 = vmmov %vm8423_vm2 }
 0x73d   : > { %3058 = vst.msk [vmem:[%s5913_s14 + $0x1d] sm:$0x1] %vm8426_vm8, %v3042_v12  ;;  %vm8430_vm8 = vmmov %vm8423_vm2 }
 0x73e   : > { %v3238_v10 = vld [vmem:[#allocation1 + $0x23] ss:$4 sm:$0xff] }
 0x73f   : > { %v4827_v51 = vrot.slane %v3238_v10, 9  ;;  %3241 = vst.sshfl [vmem:[#allocation1 + $0x20] sm:$0xff pattern:$0x73625140] %v7261_v3  ;;  %v7643_v57 = vld [vmem:[#allocation1 + $0x1] ss:$4 sm:$0xff]  ;;  %v4171_v3 = vpop.f32.mrf.mxu2 }
 0x740   : > { %3419 = vst.sshfl [vmem:[#allocation1] sm:$0xff pattern:$0x73625140] %v7227_v4 }
 0x741   : > { %3373 = vrot.lane.b32.xlu2 %v7447_v43, %s8336_s16  ;;  %3271 = vrot.lane.b32.xlu1 %v4828_v22, %s5301_s19  ;;  %v3092_v40 = vpop.permute.xlu2 %3091 }
 0x742   : > { %3269 = vrot.lane.b32.xlu0 %v4827_v51, %s5301_s19  ;;  %3108 = vst.msk [vmem:[%s5913_s14 + $0x1d] sm:$0x1] %vm8423_vm2, %v3092_v40  ;;  %vm8431_vm2 = vcmask 31744  }
 0x743   : > { %v3082_v36 = vpop.permute.xlu0 %3081 }
 0x744   : > { %3103 = vst.msk [vmem:[%s5913_s14 + $0x9] sm:$0x1] %vm8427_vm9, %v3082_v36  ;;  %vm8432_vm9 = vcmask 516480  }
 0x746   : > { %v3242_v21 = vld [vmem:[#allocation1 + $0x23] ss:$4 sm:$0xff] }
 0x747   : > { %v4055_v20 = vpop.f32.mrf.mxu0  ;;  %v4829_v5 = vrot.slane %v3242_v21, 9  ;;  %3358 = vst.sshfl [vmem:[#allocation1 + $0x20] sm:$0xff pattern:$0x73625140] %v6970_v38  ;;  %v7655_v43 = vld [vmem:[#allocation1 + $0x1] ss:$4 sm:$0xff]  ;;  %v4174_v26 = vpop.f32.mrf.mxu2 }
 0x748   : > { %v4169_v44 = vadd.f32 %v4168_v41, %v4055_v20  ;;  %3471 = vst.sshfl [vmem:[#allocation1] sm:$0xff pattern:$0x73625140] %v7004_v32 }
 0x749   : > { %v3084_v42 = vpop.permute.xlu1 %3083  ;;  %3273 = vrot.lane.b32.xlu2 %v4829_v5, %s5301_s19  ;;  %3377 = vrot.lane.b32.xlu1 %v7468_v7, %s8336_s16  ;;  %v3148_v50 = vpop.permute.xlu2 %3147 }
 0x74a   : > { %v4206_v9 = vadd.f32 %v7453_v2, %v4169_v44  ;;  %3104 = vst.msk [vmem:[%s5913_s14 + $0xd] sm:$0x1] %vm8428_vm3, %v3084_v42  ;;  %vm8433_vm3 = vmmov %vm8432_vm9 }
 0x74b   : > { %3169 = vst.msk [vmem:[%s5913_s14 + $0x9] sm:$0x1] %vm1379_vm14, %v3148_v50 }
 0x74c   : > { %v4370_v0 = vrot.slane %v4206_v9, 5 }
 0x74e   : > { %v3360_v49 = vld [vmem:[#allocation1 + $0x21] ss:$4 sm:$0xff]  ;;  %v7668_v29 = vsel %vm4242_vm7, %v4370_v0, %v7571_v58  ;;  %v4419_v46 = vsel %vm4239_vm12, %v4370_v0, %v7575_v63  ;;  %v4403_v7 = vsel %vm4236_vm10, %v4370_v0, %v7579_v39  ;;  %v4387_v47 = vsel %vm4233_vm1, %v4370_v0, %v7583_v55 }
 0x74f   : > { %3375 = vrot.lane.b32.xlu0 %v3360_v49, %s8336_s16  ;;  %3363 = vst.sshfl [vmem:[#allocation1 + $0x20] sm:$0xff pattern:$0x73625140] %v7101_v53  ;;  %v4058_v15 = vpop.f32.mrf.mxu0  ;;  %v7678_v54 = vld [vmem:[#allocation1 + $0x2] ss:$4 sm:$0xff]  ;;  %v4371_v58 = vsel %vm4230_vm13, %v4370_v0, %v7587_v30  ;;  %v4466_v63 = vsel %vm4224_vm5, %v4370_v0, %v7542_v45  ;;  %v4482_v39 = vsel %vm4227_vm4, %v4370_v0, %v7592_v6 }
 0x750   : > { %v4172_v61 = vadd.f32 %v4171_v3, %v4058_v15  ;;  %3477 = vst.sshfl [vmem:[#allocation1] sm:$0xff pattern:$0x73625140] %v7038_v27 }
 0x751   : > { %v3090_v55 = vpop.permute.xlu1 %3089  ;;  %v3088_v52 = vpop.permute.xlu0 %3087 }
 0x752   : > { %v4207_v62 = vadd.f32 %v7453_v2, %v4172_v61  ;;  %3107 = vst.msk [vmem:[%s5913_s14 + $0x19] sm:$0x1] %vm8429_vm6, %v3090_v55  ;;  %vm8434_vm6 = vmmov %vm8433_vm3 }
 0x753   : > { %3106 = vst.msk [vmem:[%s5913_s14 + $0x15] sm:$0x1] %vm8430_vm8, %v3088_v52  ;;  %vm8436_vm8 = vmmov %vm8433_vm3 }
 0x754   : > { %v7692_v30 = vrot.slane %v4207_v62, 4 }
 0x756   : > { %v3364_v18 = vld [vmem:[#allocation1 + $0x21] ss:$4 sm:$0xff]  ;;  %v4328_v45 = vsel %vm4227_vm4, %v7692_v30, %v7612_v13  ;;  %v4312_v22 = vsel %vm4224_vm5, %v7692_v30, %v7604_v16  ;;  %v4344_v10 = vsel %vm4230_vm13, %v7692_v30, %v7616_v31 }
 0x757   : > { %3379 = vrot.lane.b32.xlu2 %v3364_v18, %s8336_s16  ;;  %3367 = vst.sshfl [vmem:[#allocation1 + $0x20] sm:$0xff pattern:$0x73625140] %v7149_v48  ;;  %3381 = vrot.lane.b32.xlu0 %v7532_v17, %s8336_s16  ;;  %v4061_v6 = vpop.f32.mrf.mxu0  ;;  %v7701_v12 = vld [vmem:[#allocation1 + $0x2] ss:$4 sm:$0xff]  ;;  %v4177_v17 = vpop.f32.mrf.mxu2 }
 0x758   : > { %v4175_v13 = vadd.f32 %v4174_v26, %v4061_v6  ;;  %3481 = vst.sshfl [vmem:[#allocation1] sm:$0xff pattern:$0x73625140] %v7060_v24 }
 0x759   : > { %v3144_v51 = vpop.permute.xlu0 %3143 }
 0x75a   : > { %v4208_v40 = vadd.f32 %v7453_v2, %v4175_v13  ;;  %3167 = vst.msk [vmem:[%s5913_s14 + $0x1] sm:$0x1] %vm1379_vm14, %v3144_v51  ;;  %v4840_v51 = vrot.slane %v7632_v11, 9 }
 0x75b   : > { %v3154_v36 = vpop.permute.xlu2 %3153 }
 0x75c   : > { %v4372_v3 = vrot.slane %v4208_v40, 4  ;;  %3172 = vst.msk [vmem:[%s5913_s14 + $0x15] sm:$0x1] %vm1379_vm14, %v3154_v36 }
 0x75e   : > { %v3368_v21 = vld [vmem:[#allocation1 + $0x21] ss:$4 sm:$0xff]  ;;  %v7716_v41 = vsel %vm4242_vm7, %v4372_v3, %v4419_v46  ;;  %v4404_v20 = vsel %vm4239_vm12, %v4372_v3, %v4403_v7  ;;  %v4388_v31 = vsel %vm4236_vm10, %v4372_v3, %v4387_v47  ;;  %v4373_v5 = vsel %vm4233_vm1, %v4372_v3, %v4371_v58 }
 0x75f   : > { %3383 = vrot.lane.b32.xlu1 %v3368_v21, %s8336_s16  ;;  %3371 = vst.sshfl [vmem:[#allocation1 + $0x20] sm:$0xff pattern:$0x73625140] %v7161_v19  ;;  %3385 = vrot.lane.b32.xlu2 %v7597_v34, %s8336_s16  ;;  %v4064_v44 = vpop.f32.mrf.mxu0  ;;  %v7725_v42 = vld [vmem:[#allocation1 + $0x2] ss:$4 sm:$0xff]  ;;  %v4451_v50 = vsel %vm4224_vm5, %v4372_v3, %v4370_v0  ;;  %v4467_v9 = vsel %vm4227_vm4, %v4372_v3, %v4466_v63  ;;  %v4180_v34 = vpop.f32.mrf.mxu2  ;;  %v4838_v0 = vrot.slane %v7620_v8, 9 }
 0x760   : > { %v4483_v49 = vsel %vm4230_vm13, %v4372_v3, %v4482_v39  ;;  %v4178_v46 = vadd.f32 %v4177_v17, %v4064_v44  ;;  %3485 = vst.sshfl [vmem:[#allocation1] sm:$0xff pattern:$0x73625140] %v7227_v4 }
 0x762   : > { %v4209_v7 = vadd.f32 %v7453_v2, %v4178_v46 }
 0x763   : > { %v3146_v47 = vpop.permute.xlu1 %3145  ;;  %v3194_v15 = vpop.permute.xlu2 %3193 }
 0x764   : > { %v7732_v58 = vrot.slane %v4209_v7, 3  ;;  %3168 = vst.msk [vmem:[%s5913_s14 + $0x5] sm:$0x1] %vm1379_vm14, %v3146_v47 }
 0x765   : > { %3217 = vst.msk [vmem:[%s5913_s14 + $0x1] sm:$0x1] %vm1430_vm15, %v3194_v15 }
 0x766   : > { %v3372_v26 = vld [vmem:[#allocation1 + $0x21] ss:$4 sm:$0xff]  ;;  %v4329_v63 = vsel %vm4230_vm13, %v7732_v58, %v4328_v45  ;;  %v4297_v39 = vsel %vm4224_vm5, %v7732_v58, %v7692_v30  ;;  %v4313_v8 = vsel %vm4227_vm4, %v7732_v58, %v4312_v22  ;;  %v4345_v52 = vsel %vm4233_vm1, %v7732_v58, %v4344_v10 }
 0x767   : > { %3439 = vrot.lane.b32.xlu1 %v4838_v0, %s8339_s17  ;;  %3387 = vrot.lane.b32.xlu0 %v3372_v26, %s8336_s16  ;;  %3408 = vst.sshfl [vmem:[#allocation1 + $0x20] sm:$0xff pattern:$0x73625140] %v6970_v38  ;;  %v4067_v61 = vpop.f32.mrf.mxu0  ;;  %v7747_v55 = vld [vmem:[#allocation1 + $0x2] ss:$4 sm:$0xff]  ;;  %v4183_v21 = vpop.f32.mrf.mxu2  ;;  %s7963_s16 = scalar_lea.vmem [#allocation2], %s4632_s13 }
 0x768   : > { %v4181_v62 = vadd.f32 %v4180_v34, %v4067_v61  ;;  %3521 = vst.sshfl [vmem:[#allocation1] sm:$0xff pattern:$0x73625140] %v7004_v32  ;;  %s5314_s13 = smov 12  }
 0x76a   : > { %v4210_v18 = vadd.f32 %v7453_v2, %v4181_v62 }
 0x76b   : > { %v3152_v45 = vpop.permute.xlu1 %3151  ;;  %v3150_v6 = vpop.permute.xlu0 %3149 }
 0x76c   : > { %v7755_v13 = vrot.slane %v4210_v18, 3  ;;  %3171 = vst.msk [vmem:[%s5913_s14 + $0x11] sm:$0x1] %vm1379_vm14, %v3152_v45 }
 0x76d   : > { %3170 = vst.msk [vmem:[%s5913_s14 + $0xd] sm:$0x1] %vm1379_vm14, %v3150_v6 }
 0x76e   : > { %v3410_v40 = vld [vmem:[#allocation1 + $0x21] ss:$4 sm:$0xff]  ;;  %v7764_v22 = vsel %vm4242_vm7, %v7755_v13, %v4404_v20  ;;  %v7768_v10 = vsel %vm4239_vm12, %v7755_v13, %v4388_v31  ;;  %v7772_v17 = vsel %vm4236_vm10, %v7755_v13, %v4373_v5  ;;  %v7776_v36 = vsel %vm4224_vm5, %v7755_v13, %v4372_v3 }
 0x76f   : > { %3443 = vrot.lane.b32.xlu0 %v4840_v51, %s8339_s17  ;;  %v4070_v11 = vpop.f32.mrf.mxu0  ;;  %v4839_v20 = vrot.slane %v3410_v40, 9  ;;  %3413 = vst.sshfl [vmem:[#allocation1 + $0x20] sm:$0xff pattern:$0x73625140] %v7101_v53  ;;  %v7780_v44 = vld [vmem:[#allocation1 + $0x2] ss:$4 sm:$0xff]  ;;  %v7784_v31 = vsel %vm4227_vm4, %v7755_v13, %v4451_v50  ;;  %v7788_v5 = vsel %vm4230_vm13, %v7755_v13, %v4467_v9  ;;  %v7792_v3 = vsel %vm4233_vm1, %v7755_v13, %v4483_v49 }
 0x770   : > { %v4184_v46 = vadd.f32 %v4183_v21, %v4070_v11  ;;  %3527 = vst.sshfl [vmem:[#allocation1] sm:$0xff pattern:$0x73625140] %v7038_v27 }
 0x771   : > { %3441 = vrot.lane.b32.xlu2 %v4839_v20, %s8339_s17  ;;  %v3200_v7 = vpop.permute.xlu2 %3199 }
 0x772   : > { %v4211_v47 = vadd.f32 %v7453_v2, %v4184_v46  ;;  %3220 = vst.msk [vmem:[%s5913_s14 + $0xd] sm:$0x1] %vm1430_vm15, %v3200_v7 }
 0x773   : > { %v3156_v50 = vpop.permute.xlu0 %3155 }
 0x774   : > { %v7799_v15 = vrot.slane %v4211_v47, 2  ;;  %3173 = vst.msk [vmem:[%s5913_s14 + $0x19] sm:$0x1] %vm1379_vm14, %v3156_v50  ;;  %v4186_v50 = vpop.f32.mrf.mxu2 }
 0x776   : > { %v3414_v9 = vld [vmem:[#allocation1 + $0x21] ss:$4 sm:$0xff]  ;;  %v7806_v49 = vsel %vm4224_vm5, %v7799_v15, %v7732_v58  ;;  %v7810_v34 = vsel %vm4233_vm1, %v7799_v15, %v4329_v63  ;;  %v7814_v0 = vsel %vm4227_vm4, %v7799_v15, %v4297_v39  ;;  %v7821_v62 = vsel %vm4230_vm13, %v7799_v15, %v4313_v8 }
 0x777   : > { %v4841_v26 = vrot.slane %v3414_v9, 9  ;;  %3417 = vst.sshfl [vmem:[#allocation1 + $0x20] sm:$0xff pattern:$0x73625140] %v7149_v48  ;;  %v7817_v61 = vld [vmem:[#allocation1 + $0x2] ss:$4 sm:$0xff]  ;;  %v7825_v18 = vsel %vm4236_vm10, %v7799_v15, %v4345_v52 }
 0x778   : > { %3531 = vst.sshfl [vmem:[#allocation1] sm:$0xff pattern:$0x73625140] %v7060_v24  ;;  %v4842_v8 = vrot.slane %v7643_v57, 9  ;;  %v4844_v52 = vrot.slane %v7655_v43, 9 }
 0x779   : > { %4348 = vrot.lane.b32.xlu2 %v7471_v23, %s5309_s28  ;;  %3445 = vrot.lane.b32.xlu1 %v4841_v26, %s8339_s17  ;;  %v3206_v63 = vpop.permute.xlu2 %3205 }
 0x77a   : > { %3223 = vst.msk [vmem:[%s5913_s14 + $0x19] sm:$0x1] %vm1430_vm15, %v3206_v63 }
 0x77b   : > { %v3158_v39 = vpop.permute.xlu1 %3157 }
 0x77c   : > { %3174 = vst.msk [vmem:[%s5913_s14 + $0x1d] sm:$0x1] %vm1379_vm14, %v3158_v39 }
 0x77e   : > { %v3418_v45 = vld [vmem:[#allocation1 + $0x21] ss:$4 sm:$0xff] }
 0x77f   : > { %v4843_v6 = vrot.slane %v3418_v45, 9  ;;  %3421 = vst.sshfl [vmem:[#allocation1 + $0x20] sm:$0xff pattern:$0x73625140] %v7161_v19  ;;  %v7838_v51 = vld [vmem:[#allocation1 + $0x2] ss:$4 sm:$0xff] }
 0x780   : > { %3535 = vst.sshfl [vmem:[#allocation1] sm:$0xff pattern:$0x73625140] %v7227_v4 }
 0x781   : > { %3447 = vrot.lane.b32.xlu2 %v4842_v8, %s8339_s17  ;;  %3451 = vrot.lane.b32.xlu1 %v4844_v52, %s8339_s17  ;;  %v3196_v40 = vpop.permute.xlu0 %3195 }
 0x782   : > { %3449 = vrot.lane.b32.xlu0 %v4843_v6, %s8339_s17  ;;  %3218 = vst.msk [vmem:[%s5913_s14 + $0x5] sm:$0x1] %vm1430_vm15, %v3196_v40 }
 0x783   : > { %v3198_v57 = vpop.permute.xlu1 %3197 }
 0x784   : > { %3219 = vst.msk [vmem:[%s5913_s14 + $0x9] sm:$0x1] %vm1430_vm15, %v3198_v57 }
 0x786   : > { %v3422_v43 = vld [vmem:[#allocation1 + $0x21] ss:$4 sm:$0xff] }
 0x787   : > { %v4845_v21 = vrot.slane %v3422_v43, 9  ;;  %3474 = vst.sshfl [vmem:[#allocation1 + $0x20] sm:$0xff pattern:$0x73625140] %v6970_v38  ;;  %v7849_v11 = vld [vmem:[#allocation1 + $0x2] ss:$4 sm:$0xff] }
 0x788   : > { %3587 = vst.sshfl [vmem:[#allocation1] sm:$0xff pattern:$0x73625140] %v7004_v32 }
 0x789   : > { %3453 = vrot.lane.b32.xlu2 %v4845_v21, %s8339_s17  ;;  %v3202_v20 = vpop.permute.xlu0 %3201 }
 0x78a   : > { %3489 = vrot.lane.b32.xlu0 %v7678_v54, %s8337_s18  ;;  %3221 = vst.msk [vmem:[%s5913_s14 + $0x11] sm:$0x1] %vm1430_vm15, %v3202_v20  ;;  %v4326_v54 = vsel %vm4242_vm7, %v7462_v1, %v7471_v23 }
 0x78b   : > { %v3262_v46 = vpop.permute.xlu2 %3261 }
 0x78c   : > { %3284 = vst.msk [vmem:[%s5913_s14 + $0x5] sm:$0x1] %vm1497_vm0, %v3262_v46 }
 0x78e   : > { %v3476_v7 = vld [vmem:[#allocation1 + $0x22] ss:$4 sm:$0xff] }
 0x78f   : > { %3479 = vst.sshfl [vmem:[#allocation1 + $0x20] sm:$0xff pattern:$0x73625140] %v7101_v53  ;;  %3491 = vrot.lane.b32.xlu1 %v3476_v7, %s8337_s18  ;;  %v7861_v47 = vld [vmem:[#allocation1 + $0x3] ss:$4 sm:$0xff] }
 0x790   : > { %v4073_v9 = vpop.f32.mrf.mxu0  ;;  %3593 = vst.sshfl [vmem:[#allocation1] sm:$0xff pattern:$0x73625140] %v7038_v27 }
 0x791   : > { %v3204_v26 = vpop.permute.xlu1 %3203  ;;  %v4187_v63 = vadd.f32 %v4186_v50, %v4073_v9  ;;  %3493 = vrot.lane.b32.xlu2 %v7701_v12, %s8337_s18  ;;  %v4231_v50 = vsel %vm4230_vm13, %v7604_v16, %v7524_v60 }
 0x792   : > { %3222 = vst.msk [vmem:[%s5913_s14 + $0x15] sm:$0x1] %vm1430_vm15, %v3204_v26  ;;  %4332 = vrot.lane.b32.xlu0 %v4326_v54, %s5310_s29  ;;  %v4234_v9 = vsel %vm4233_vm1, %v7692_v30, %v4231_v50  ;;  %v4846_v26 = vrot.slane %v7780_v44, 9 }
 0x793   : > { %v4212_v39 = vadd.f32 %v7453_v2, %v4187_v63  ;;  %v3268_v8 = vpop.permute.xlu2 %3267  ;;  %v4237_v63 = vsel %vm4236_vm10, %v7732_v58, %v4234_v9  ;;  %v4264_v9 = vsel %vm4236_vm10, %v7604_v16, %v7513_v37 }
 0x794   : > { %3287 = vst.msk [vmem:[%s5913_s14 + $0x11] sm:$0x1] %vm1497_vm0, %v3268_v8  ;;  %v4296_v8 = vsel %vm4242_vm7, %v7604_v16, %v7505_v25 }
 0x795   : > { %v7875_v52 = vrot.slane %v4212_v39, 2  ;;  %v4240_v39 = vsel %vm4239_vm12, %v7799_v15, %v4237_v63 }
 0x796   : > { %v3480_v45 = vld [vmem:[#allocation1 + $0x22] ss:$4 sm:$0xff] }
 0x797   : > { %3483 = vst.sshfl [vmem:[#allocation1 + $0x20] sm:$0xff pattern:$0x73625140] %v7149_v48  ;;  %3497 = vrot.lane.b32.xlu1 %v7725_v42, %s8337_s18  ;;  %v7880_v1 = vld [vmem:[#allocation1 + $0x3] ss:$4 sm:$0xff]  ;;  %v7885_v23 = vsel %vm4242_vm7, %v7875_v52, %v7768_v10  ;;  %v7890_v12 = vsel %vm4239_vm12, %v7875_v52, %v7772_v17  ;;  %v7895_v6 = vsel %vm4224_vm5, %v7875_v52, %v7755_v13 }
 0x798   : > { %3597 = vst.sshfl [vmem:[#allocation1] sm:$0xff pattern:$0x73625140] %v7060_v24  ;;  %v7901_v42 = vsel %vm4227_vm4, %v7875_v52, %v7776_v36  ;;  %v7906_v10 = vsel %vm4230_vm13, %v7875_v52, %v7784_v31  ;;  %v7911_v17 = vsel %vm4233_vm1, %v7875_v52, %v7788_v5  ;;  %v7916_v13 = vsel %vm4236_vm10, %v7875_v52, %v7792_v3  ;;  %v4189_v3 = vpop.f32.mrf.mxu2 }
 0x799   : > { %v3260_v40 = vpop.permute.xlu1 %3259  ;;  %v4465_v36 = vsel %vm4242_vm7, %v7526_v35, %v7536_v28  ;;  %v3208_v57 = vpop.permute.xlu0 %3207 }
 0x79a   : > { %3283 = vst.msk [vmem:[%s5913_s14 + $0x1] sm:$0x1] %vm1497_vm0, %v3260_v40  ;;  %4471 = vrot.lane.b32.xlu0 %v4465_v36, %s8335_s9  ;;  %s8338_s9 = smov 52  }
 0x79b   : > { %3224 = vst.msk [vmem:[%s5913_s14 + $0x1d] sm:$0x1] %vm1430_vm15, %v3208_v57  ;;  %v3374_v31 = vpop.permute.xlu2 %3373  ;;  %v4848_v57 = vrot.slane %v7817_v61, 9 }
 0x79c   : > { %3397 = vst.msk [vmem:[%s5913_s14 + $0x3] sm:$0x1] %vm1194_vm11, %v3374_v31 }
 0x79e   : > { %v3484_v5 = vld [vmem:[#allocation1 + $0x22] ss:$4 sm:$0xff] }
 0x79f   : > { %3499 = vrot.lane.b32.xlu2 %v3484_v5, %s8337_s18  ;;  %3487 = vst.sshfl [vmem:[#allocation1 + $0x20] sm:$0xff pattern:$0x73625140] %v7161_v19  ;;  %4316 = vrot.lane.b32.xlu1 %v7501_v56, %s5312_s10  ;;  %v4076_v35 = vpop.f32.mrf.mxu0  ;;  %v7932_v43 = vld [vmem:[#allocation1 + $0x3] ss:$4 sm:$0xff]  ;;  %v4850_v5 = vrot.slane %v7838_v51, 9 }
 0x7a0   : > { %v4190_v21 = vadd.f32 %v4189_v3, %v4076_v35  ;;  %3601 = vst.sshfl [vmem:[#allocation1] sm:$0xff pattern:$0x73625140] %v7227_v4 }
 0x7a1   : > { %v3264_v20 = vpop.permute.xlu0 %3263 }
 0x7a2   : > { %v4213_v46 = vadd.f32 %v7453_v2, %v4190_v21  ;;  %3495 = vrot.lane.b32.xlu0 %v3480_v45, %s8337_s18  ;;  %3285 = vst.msk [vmem:[%s5913_s14 + $0x9] sm:$0x1] %vm1497_vm0, %v3264_v20 }
 0x7a3   : > { %v3274_v7 = vpop.permute.xlu2 %3273 }
 0x7a4   : > { %v7943_v56 = vrot.slane %v4213_v46, 1  ;;  %3290 = vst.msk [vmem:[%s5913_s14 + $0x1d] sm:$0x1] %vm1497_vm0, %v3274_v7  ;;  %v4852_v7 = vrot.slane %v7849_v11, 9 }
 0x7a6   : > { %v3488_v54 = vld [vmem:[#allocation1 + $0x22] ss:$4 sm:$0xff]  ;;  %v4243_v44 = vsel %vm4242_vm7, %v7943_v56, %v4240_v39 }
 0x7a7   : > { %3555 = vrot.lane.b32.xlu2 %v4846_v26, %s5308_s26  ;;  %4455 = vrot.lane.b32.xlu1 %v7567_v14, %s8338_s9  ;;  %3524 = vst.sshfl [vmem:[#allocation1 + $0x20] sm:$0xff pattern:$0x73625140] %v6970_v38  ;;  %v7958_v60 = vld [vmem:[#allocation1 + $0x3] ss:$4 sm:$0xff]  ;;  %s5316_s9 = smov 8  }
 0x7a8   : > { %3637 = vst.sshfl [vmem:[#allocation1] sm:$0xff pattern:$0x73625140] %v7004_v32 }
 0x7a9   : > { %4245 = vst.msk [vmem:[%s7963_s16] sm:$0xff] %vm8431_vm2, %v4243_v44  ;;  %vm8437_vm2 = vmmov %vm8433_vm3 }
 0x7aa   : > { %3501 = vrot.lane.b32.xlu0 %v7747_v55, %s8337_s18 }
 0x7ab   : > { %v3266_v14 = vpop.permute.xlu1 %3265 }
 0x7ac   : > { %3286 = vst.msk [vmem:[%s5913_s14 + $0xd] sm:$0x1] %vm1497_vm0, %v3266_v14 }
 0x7ae   : > { %v3526_v45 = vld [vmem:[#allocation1 + $0x22] ss:$4 sm:$0xff] }
 0x7af   : > { %4300 = vrot.lane.b32.xlu2 %v4296_v8, %s5304_s15  ;;  %3503 = vrot.lane.b32.xlu1 %v3488_v54, %s8337_s18  ;;  %v4847_v32 = vrot.slane %v3526_v45, 9  ;;  %3529 = vst.sshfl [vmem:[#allocation1 + $0x20] sm:$0xff pattern:$0x73625140] %v7101_v53  ;;  %v7977_v40 = vld [vmem:[#allocation1 + $0x3] ss:$4 sm:$0xff] }
 0x7b0   : > { %3643 = vst.sshfl [vmem:[#allocation1] sm:$0xff pattern:$0x73625140] %v7038_v27  ;;  %s8340_s18 = smov 44  }
 0x7b1   : > { %v3380_v55 = vpop.permute.xlu2 %3379 }
 0x7b2   : > { %3557 = vrot.lane.b32.xlu0 %v4847_v32, %s5308_s26  ;;  %3400 = vst.msk [vmem:[%s5913_s14 + $0xf] sm:$0x1] %vm1194_vm11, %v3380_v55 }
 0x7b3   : > { %v3272_v36 = vpop.permute.xlu1 %3271 }
 0x7b4   : > { %3289 = vst.msk [vmem:[%s5913_s14 + $0x19] sm:$0x1] %vm1497_vm0, %v3272_v36  ;;  %v3270_v25 = vpop.permute.xlu0 %3269 }
 0x7b5   : > { %3288 = vst.msk [vmem:[%s5913_s14 + $0x15] sm:$0x1] %vm1497_vm0, %v3270_v25  ;;  %v4079_v25 = vpop.f32.mrf.mxu0 }
 0x7b6   : > { %v3530_v31 = vld [vmem:[#allocation1 + $0x22] ss:$4 sm:$0xff] }
 0x7b7   : > { %4439 = vrot.lane.b32.xlu2 %v7668_v29, %s8339_s17  ;;  %3559 = vrot.lane.b32.xlu1 %v4848_v57, %s5308_s26  ;;  %3533 = vst.sshfl [vmem:[#allocation1 + $0x20] sm:$0xff pattern:$0x73625140] %v7149_v48  ;;  %v7992_v27 = vld [vmem:[#allocation1 + $0x3] ss:$4 sm:$0xff]  ;;  %v4849_v29 = vrot.slane %v3530_v31, 9  ;;  %v4299_v57 = vsel %vm4230_vm13, %v7943_v56, %v7814_v0 }
 0x7b8   : > { %3647 = vst.sshfl [vmem:[#allocation1] sm:$0xff pattern:$0x73625140] %v7060_v24  ;;  %v4280_v24 = vsel %vm4239_vm12, %v7604_v16, %v7509_v33  ;;  %s5317_s17 = smov 40  }
 0x7b9   : > { %v3386_v3 = vpop.permute.xlu2 %3385  ;;  %v4281_v51 = vsel %vm4242_vm7, %v7692_v30, %v4280_v24 }
 0x7ba   : > { %3563 = vrot.lane.b32.xlu0 %v4850_v5, %s5308_s26  ;;  %3403 = vst.msk [vmem:[%s5913_s14 + $0x1b] sm:$0x1] %vm1194_vm11, %v3386_v3 }
 0x7bb   : > { %v3378_v61 = vpop.permute.xlu1 %3377 }
 0x7bc   : > { %3399 = vst.msk [vmem:[%s5913_s14 + $0xb] sm:$0x1] %vm1194_vm11, %v3378_v61 }
 0x7be   : > { %v3534_v35 = vld [vmem:[#allocation1 + $0x22] ss:$4 sm:$0xff] }
 0x7bf   : > { %3561 = vrot.lane.b32.xlu2 %v4849_v29, %s5308_s26  ;;  %3537 = vst.sshfl [vmem:[#allocation1 + $0x20] sm:$0xff pattern:$0x73625140] %v7161_v19  ;;  %v4851_v21 = vrot.slane %v3534_v35, 9  ;;  %v8003_v20 = vld [vmem:[#allocation1 + $0x3] ss:$4 sm:$0xff]  ;;  %v4347_v35 = vsel %vm4239_vm12, %v7943_v56, %v7825_v18 }
 0x7c0   : > { %3651 = vst.sshfl [vmem:[#allocation1] sm:$0xff pattern:$0x73625140] %v7227_v4 }
 0x7c1   : > { %3565 = vrot.lane.b32.xlu1 %v4851_v21, %s5308_s26  ;;  %v3376_v46 = vpop.permute.xlu0 %3375 }
 0x7c2   : > { %4284 = vrot.lane.b32.xlu0 %v4281_v51, %s5314_s13  ;;  %3398 = vst.msk [vmem:[%s5913_s14 + $0x7] sm:$0x1] %vm1194_vm11, %v3376_v46 }
 0x7c6   : > { %v3538_v50 = vld [vmem:[#allocation1 + $0x22] ss:$4 sm:$0xff] }
 0x7c7   : > { %3590 = vst.sshfl [vmem:[#allocation1 + $0x20] sm:$0xff pattern:$0x73625140] %v6970_v38  ;;  %3567 = vrot.lane.b32.xlu2 %v4852_v7, %s5308_s26  ;;  %v4853_v26 = vrot.slane %v3538_v50, 9 }
 0x7c9   : > { %3605 = vrot.lane.b32.xlu1 %v7861_v47, %s5302_s20  ;;  %v3382_v4 = vpop.permute.xlu0 %3381  ;;  %v4265_v47 = vsel %vm4239_vm12, %v7692_v30, %v4264_v9 }
 0x7ca   : > { %4423 = vrot.lane.b32.xlu0 %v7716_v41, %s8340_s18  ;;  %3401 = vst.msk [vmem:[%s5913_s14 + $0x13] sm:$0x1] %vm1194_vm11, %v3382_v4  ;;  %v4266_v41 = vsel %vm4242_vm7, %v7732_v58, %v4265_v47  ;;  %s5319_s18 = smov 36  }
 0x7cb   : > { %v3442_v33 = vpop.permute.xlu2 %3441 }
 0x7cc   : > { %3464 = vst.msk [vmem:[%s5913_s14 + $0x7] sm:$0x1] %vm8432_vm9, %v3442_v33  ;;  %vm8438_vm9 = vcmask 647680  }
 0x7ce   : > { %v3592_v11 = vld [vmem:[#allocation1 + $0x23] ss:$4 sm:$0xff] }
 0x7cf   : > { %3607 = vrot.lane.b32.xlu2 %v3592_v11, %s5302_s20  ;;  %3595 = vst.sshfl [vmem:[#allocation1 + $0x20] sm:$0xff pattern:$0x73625140] %v7101_v53 }
 0x7d1   : > { %v3384_v63 = vpop.permute.xlu1 %3383  ;;  %4268 = vrot.lane.b32.xlu1 %v4266_v41, %s5316_s9  ;;  %v3652_v41 = vld [vmem:[#allocation1 + $0x3] ss:$4 sm:$0xff] }
 0x7d2   : > { %3402 = vst.msk [vmem:[%s5913_s14 + $0x17] sm:$0x1] %vm1194_vm11, %v3384_v63  ;;  %3569 = vrot.lane.b32.xlu0 %v4853_v26, %s5308_s26  ;;  %s8341_s26 = smov 4   ;;  %v4860_v26 = vrot.slane %v3652_v41, 9 }
 0x7d3   : > { %v8039_v37 = vpop.permute.xlu2 %4348 }
 0x7d6   : > { %v3596_v54 = vld [vmem:[#allocation1 + $0x23] ss:$4 sm:$0xff] }
 0x7d7   : > { %3613 = vrot.lane.b32.xlu2 %v7932_v43, %s5302_s20  ;;  %3599 = vst.sshfl [vmem:[#allocation1 + $0x20] sm:$0xff pattern:$0x73625140] %v7149_v48  ;;  %v4248_v43 = vsel %vm4233_vm1, %v7604_v16, %v7517_v59 }
 0x7d9   : > { %v3440_v39 = vpop.permute.xlu1 %3439  ;;  %4407 = vrot.lane.b32.xlu1 %v7764_v22, %s5317_s17  ;;  %v3388_v44 = vpop.permute.xlu0 %3387  ;;  %v4249_v22 = vsel %vm4236_vm10, %v7692_v30, %v4248_v43 }
 0x7da   : > { %3463 = vst.msk [vmem:[%s5913_s14 + $0x3] sm:$0x1] %vm8433_vm3, %v3440_v39  ;;  %3609 = vrot.lane.b32.xlu0 %v7880_v1, %s5302_s20  ;;  %v4250_v8 = vsel %vm4239_vm12, %v7732_v58, %v4249_v22  ;;  %v4854_v58 = vrot.slane %v7977_v40, 9 }
 0x7db   : > { %3404 = vst.msk [vmem:[%s5913_s14 + $0x1f] sm:$0x1] %vm1194_vm11, %v3388_v44  ;;  %v3448_v14 = vpop.permute.xlu2 %3447  ;;  %v4251_v45 = vsel %vm4242_vm7, %v7799_v15, %v4250_v8  ;;  %vm8435_vm11 = vmmov %vm8433_vm3 }
 0x7dc   : > { %3467 = vst.msk [vmem:[%s5913_s14 + $0x13] sm:$0x1] %vm8434_vm6, %v3448_v14  ;;  %vm8439_vm3 = vmmov %vm8437_vm2 }
 0x7dd   : > { %vm8440_vm6 = vmmov %vm8437_vm2 }
 0x7de   : > { %v3600_v1 = vld [vmem:[#allocation1 + $0x23] ss:$4 sm:$0xff] }
 0x7df   : > { %4252 = vrot.lane.b32.xlu2 %v4251_v45, %s8341_s26  ;;  %3603 = vst.sshfl [vmem:[#allocation1 + $0x20] sm:$0xff pattern:$0x73625140] %v7161_v19 }
 0x7e1   : > { %3611 = vrot.lane.b32.xlu1 %v3596_v54, %s5302_s20  ;;  %v3444_v59 = vpop.permute.xlu0 %3443 }
 0x7e2   : > { %3615 = vrot.lane.b32.xlu0 %v3600_v1, %s5302_s20  ;;  %3465 = vst.msk [vmem:[%s5913_s14 + $0xb] sm:$0x1] %vm8435_vm11, %v3444_v59  ;;  %vm8441_vm11 = vmmov %vm8438_vm9 }
 0x7e3   : > { %v3454_v16 = vpop.permute.xlu2 %3453 }
 0x7e4   : > { %3470 = vst.msk [vmem:[%s5913_s14 + $0x1f] sm:$0x1] %vm8436_vm8, %v3454_v16  ;;  %vm8442_vm8 = vmmov %vm8438_vm9 }
 0x7e6   : > { %v3604_v30 = vld [vmem:[#allocation1 + $0x23] ss:$4 sm:$0xff] }
 0x7e7   : > { %4391 = vrot.lane.b32.xlu2 %v7885_v23, %s5319_s18  ;;  %3640 = vst.sshfl [vmem:[#allocation1 + $0x20] sm:$0xff pattern:$0x73625140] %v6970_v38  ;;  %v4283_v38 = vsel %vm4227_vm4, %v7943_v56, %v7806_v49  ;;  %v4331_v49 = vsel %vm4236_vm10, %v7943_v56, %v7810_v34  ;;  %v4315_v34 = vsel %vm4233_vm1, %v7943_v56, %v7821_v62 }
 0x7e9   : > { %3617 = vrot.lane.b32.xlu1 %v7958_v60, %s5302_s20 }
 0x7ea   : > { %3671 = vrot.lane.b32.xlu0 %v4854_v58, %s5301_s19 }
 0x7eb   : > { %v3446_v32 = vpop.permute.xlu1 %3445  ;;  %v3494_v55 = vpop.permute.xlu2 %3493 }
 0x7ec   : > { %3466 = vst.msk [vmem:[%s5913_s14 + $0xf] sm:$0x1] %vm8437_vm2, %v3446_v32  ;;  %vm8443_vm2 = vmmov %vm8442_vm8 }
 0x7ed   : > { %3515 = vst.msk [vmem:[%s5913_s14 + $0xb] sm:$0x1] %vm8438_vm9, %v3494_v55  ;;  %vm8445_vm9 = vmmov %vm8443_vm2 }
 0x7ee   : > { %v3642_v36 = vld [vmem:[#allocation1 + $0x23] ss:$4 sm:$0xff] }
 0x7ef   : > { %3619 = vrot.lane.b32.xlu2 %v3604_v30, %s5302_s20  ;;  %3645 = vst.sshfl [vmem:[#allocation1 + $0x20] sm:$0xff pattern:$0x73625140] %v7101_v53  ;;  %v4267_v53 = vsel %vm4224_vm5, %v7943_v56, %v7799_v15  ;;  %v4192_v15 = vpop.f32.mrf.mxu2  ;;  %v4855_v0 = vrot.slane %v3642_v36, 9  ;;  %s8444_s20 = smov 32  }
 0x7f1   : > { %4286 = vrot.lane.b32.xlu1 %v4283_v38, %s5314_s13 }
 0x7f2   : > { %4254 = vrot.lane.b32.xlu0 %v7943_v56, %s8341_s26 }
 0x7f3   : > { %v3452_v23 = vpop.permute.xlu1 %3451 }
 0x7f4   : > { %3469 = vst.msk [vmem:[%s5913_s14 + $0x1b] sm:$0x1] %vm8439_vm3, %v3452_v23  ;;  %v3450_v60 = vpop.permute.xlu0 %3449  ;;  %vm4322_vm3 = vcmask 195749  }
 0x7f5   : > { %3468 = vst.msk [vmem:[%s5913_s14 + $0x17] sm:$0x1] %vm8440_vm6, %v3450_v60  ;;  %vm4338_vm6 = vcmask 228550  }
 0x7f6   : > { %v3646_v40 = vld [vmem:[#allocation1 + $0x23] ss:$4 sm:$0xff] }
 0x7f7   : > { %4270 = vrot.lane.b32.xlu2 %v4267_v53, %s5316_s9  ;;  %3649 = vst.sshfl [vmem:[#allocation1 + $0x20] sm:$0xff pattern:$0x73625140] %v7149_v48  ;;  %v4193_v48 = vadd.f32 %v4192_v15, %v4079_v25  ;;  %v4857_v33 = vrot.slane %v3646_v40, 9 }
 0x7f9   : > { %4334 = vrot.lane.b32.xlu1 %v4331_v49, %s5310_s29  ;;  %v3500_v31 = vpop.permute.xlu2 %3499  ;;  %v4214_v61 = vadd.f32 %v7453_v2, %v4193_v48  ;;  %s8452_s29 = smov 56  }
 0x7fa   : > { %4302 = vrot.lane.b32.xlu0 %v4299_v57, %s5304_s15  ;;  %3518 = vst.msk [vmem:[%s5913_s14 + $0x17] sm:$0x1] %vm8441_vm11, %v3500_v31  ;;  %s8446_s15 = smov 44   ;;  %vm4354_vm11 = vcmask 261351  }
 0x7fb   : > { %v4378_v62 = vrot.slane %v4214_v61, 1 }
 0x7fc   : > { %v3490_v5 = vpop.permute.xlu0 %3489 }
 0x7fd   : > { %3513 = vst.msk [vmem:[%s5913_s14 + $0x3] sm:$0x1] %vm8442_vm8, %v3490_v5  ;;  %v4379_v2 = vsel %vm4242_vm7, %v4378_v62, %v7890_v12  ;;  %v4422_v12 = vsel %vm4227_vm4, %v4378_v62, %v7895_v6  ;;  %v4438_v7 = vsel %vm4230_vm13, %v4378_v62, %v7901_v42  ;;  %v4858_v6 = vrot.slane %v8003_v20, 9 }
 0x7fe   : > { %v3650_v3 = vld [vmem:[#allocation1 + $0x23] ss:$4 sm:$0xff]  ;;  %v4470_v44 = vsel %vm4236_vm10, %v4378_v62, %v7911_v17  ;;  %v4486_v43 = vsel %vm4239_vm12, %v4378_v62, %v7916_v13  ;;  %vm4258_vm12 = vcmask 64545   ;;  %vm4274_vm10 = vcmask 97346  }
 0x7ff   : > { %4318 = vrot.lane.b32.xlu2 %v4315_v34, %s5312_s10  ;;  %3653 = vst.sshfl [vmem:[#allocation1 + $0x20] sm:$0xff pattern:$0x73625140] %v7161_v19  ;;  %v4856_v19 = vrot.slane %v7992_v27, 9  ;;  %v4406_v27 = vsel %vm4224_vm5, %v4378_v62, %v7875_v52  ;;  %vm8448_vm5 = vmmov %vm8443_vm2  ;;  %v4454_v52 = vsel %vm4233_vm1, %v4378_v62, %v7906_v10  ;;  %v4859_v10 = vrot.slane %v3650_v3, 9 }
 0x800   : > { %vm8450_vm1 = vmmov %vm8443_vm2  ;;  %vm4290_vm4 = vcmask 130147   ;;  %vm4306_vm7 = vcmask 162948   ;;  %vm4276_vm8 = vcmask 91200  }
 0x801   : > { %3673 = vrot.lane.b32.xlu1 %v4855_v0, %s5301_s19  ;;  %v3492_v29 = vpop.permute.xlu1 %3491  ;;  %v3556_v21 = vpop.permute.xlu2 %3555  ;;  %vm8451_vm13 = vmmov %vm8450_vm1 }
 0x802   : > { %3514 = vst.msk [vmem:[%s5913_s14 + $0x7] sm:$0x1] %vm8443_vm2, %v3492_v29  ;;  %4350 = vrot.lane.b32.xlu0 %v4347_v35, %s5309_s28  ;;  %s5320_s28 = smov 60   ;;  %vm4292_vm2 = vcmask 125024  }
 0x803   : > { %3579 = vst.msk [vmem:[%s5913_s14 + $0x3] sm:$0x1] %vm1379_vm14, %v3556_v21 }
 0x804   : > { %v8126_v24 = vpop.permute.xlu0 %4332 }
 0x806   : > { %v3654_v47 = vld [vmem:[#allocation1 + $0x23] ss:$4 sm:$0xff] }
 0x807   : > { %3675 = vrot.lane.b32.xlu2 %v4856_v19, %s5301_s19  ;;  %v4861_v20 = vrot.slane %v3654_v47, 9 }
 0x809   : > { %4380 = vrot.lane.b32.xlu1 %v4379_v2, %s8444_s20  ;;  %v3498_v18 = vpop.permute.xlu1 %3497  ;;  %v8133_v56 = vpop.permute.xlu2 %4300  ;;  %s4530_s20 = sshll.u32 %s5913_s14, 4  ;;  %s4531_s20 = int_to_ptr.vmem [resolvable:$true] %s4530_s20 }
 0x80a   : > { %3517 = vst.msk [vmem:[%s5913_s14 + $0x13] sm:$0x1] %vm8445_vm9, %v3498_v18  ;;  %4393 = vrot.lane.b32.xlu0 %v4378_v62, %s5319_s18  ;;  %s8447_s18 = smov 48   ;;  %vm4324_vm9 = vcmask 192672  }
 0x80c   : > { %v8138_v51 = vpop.permute.xlu0 %4471 }
 0x80f   : > { %4409 = vrot.lane.b32.xlu2 %v4406_v27, %s5317_s17  ;;  %s8449_s17 = smov 52  }
 0x811   : > { %4425 = vrot.lane.b32.xlu1 %v4422_v12, %s8446_s15  ;;  %v8146_v46 = vpop.permute.xlu1 %4316  ;;  %v8150_v50 = vpop.permute.xlu2 %4439 }
 0x812   : > { %4441 = vrot.lane.b32.xlu0 %v4438_v7, %s8447_s18 }
 0x814   : > { %v3496_v4 = vpop.permute.xlu0 %3495 }
 0x815   : > { %3516 = vst.msk [vmem:[%s5913_s14 + $0xf] sm:$0x1] %vm8448_vm5, %v3496_v4  ;;  %vm4340_vm5 = vcmask 226496  }
 0x817   : > { %4457 = vrot.lane.b32.xlu2 %v4454_v52, %s8449_s17  ;;  %s4513_s17 = scalar_lea.hbm %s8321_s5, %s5408_s11 }
 0x819   : > { %3679 = vrot.lane.b32.xlu1 %v4858_v6, %s5301_s19  ;;  %v8160_v42 = vpop.permute.xlu1 %4455  ;;  %v3562_v11 = vpop.permute.xlu2 %3561 }
 0x81a   : > { %3677 = vrot.lane.b32.xlu0 %v4857_v33, %s5301_s19  ;;  %3582 = vst.msk [vmem:[%s5913_s14 + $0xf] sm:$0x1] %vm1379_vm14, %v3562_v11 }
 0x81c   : > { %v3502_v9 = vpop.permute.xlu0 %3501 }
 0x81d   : > { %3519 = vst.msk [vmem:[%s5913_s14 + $0x1b] sm:$0x1] %vm8450_vm1, %v3502_v9  ;;  %vm4356_vm1 = vcmask 260320  }
 0x81f   : > { %3681 = vrot.lane.b32.xlu2 %v4859_v10, %s5301_s19 }
 0x821   : > { %3685 = vrot.lane.b32.xlu1 %v4861_v20, %s5301_s19  ;;  %v3504_v63 = vpop.permute.xlu1 %3503  ;;  %v3568_v54 = vpop.permute.xlu2 %3567 }
 0x822   : > { %3520 = vst.msk [vmem:[%s5913_s14 + $0x1f] sm:$0x1] %vm8451_vm13, %v3504_v63  ;;  %3683 = vrot.lane.b32.xlu0 %v4860_v26, %s5301_s19  ;;  %vm4383_vm13 = vcmask 294144   ;;  %s4921_s19 = sshll.u32 %s5377_s25, 5 }
 0x823   : > { %3585 = vst.msk [vmem:[%s5913_s14 + $0x1b] sm:$0x1] %vm1379_vm14, %v3568_v54  ;;  %s4529_s13 = scalar_lea.hbm %s8322_s6, %s4921_s19 }
 0x824   : > { %v3558_v39 = vpop.permute.xlu0 %3557  ;;  %s4532_s15 = sshll.u32 %s4529_s13, 4  ;;  %s5223_s13 = scalar_lea.hbm %s8322_s6, 128  ;;  %s4533_s15 = int_to_ptr.hbm [resolvable:$true] %s4532_s15 }
 0x825   : > { %3580 = vst.msk [vmem:[%s5913_s14 + $0x7] sm:$0x1] %vm1379_vm14, %v3558_v39 }
 0x827   : > { %4487 = vrot.lane.b32.xlu2 %v7536_v28, %s5320_s28 }
 0x829   : > { %4473 = vrot.lane.b32.xlu1 %v4470_v44, %s8452_s29  ;;  %v3560_v14 = vpop.permute.xlu1 %3559  ;;  %v3608_v22 = vpop.permute.xlu2 %3607  ;;  %s5217_s29 = sshra.s32 %s4533_s15, 4  ;;  %s5218_s29 = int_to_ptr.hbm [resolvable:$true] %s5217_s29 }
 0x82a   : > { %3581 = vst.msk [vmem:[%s5913_s14 + $0xb] sm:$0x1] %vm1379_vm14, %v3560_v14  ;;  %4489 = vrot.lane.b32.xlu0 %v4486_v43, %s5320_s28  ;;  %s4503_s28 = scalar_lea.sflag [#allocation5], %s5902_s12  ;;  %s5219_s9 = scalar_lea.hbm %s5218_s29, 32 }
 0x82b   : > { %3630 = vst.msk [vmem:[%s5913_s14 + $0x7] sm:$0x1] %vm1430_vm15, %v3608_v22  ;;  %p5220_p11 = scmp.ne.s32.totalorder %s5218_s29, %s5219_s9  ;;  %p5224_p0 = scmp.lt.s32.totalorder %s5218_s29, %s8322_s6 }
 0x82c   : > { %v3564_v8 = vpop.permute.xlu0 %3563  ;;  %p5225_p1 = scmp.lt.s32.totalorder %s5223_s13, %s5219_s9 }
 0x82d   : > { %3583 = vst.msk [vmem:[%s5913_s14 + $0x13] sm:$0x1] %vm1379_vm14, %v3564_v8  ;;  %p5221_p12 = pnand %p5220_p11, %p5394_p5 }
 0x82e   : > { %p5226_p2 = por %p5225_p1, %p5224_p0 }
 0x82f   : > { %p5222_p13 = pneg %p5221_p12 }
 0x831   : > { %v3614_v28 = vpop.permute.xlu2 %3613  ;;  %p5227_p3 = pnand %p5226_p2, %p5222_p13 }
 0x832   : > { %3633 = vst.msk [vmem:[%s5913_s14 + $0x13] sm:$0x1] %vm1430_vm15, %v3614_v28 }
 0x833   : > { %v3566_v17 = vpop.permute.xlu1 %3565 }
 0x834   : > { %3584 = vst.msk [vmem:[%s5913_s14 + $0x17] sm:$0x1] %vm1379_vm14, %v3566_v17  ;;  %v4285_v45 = vpop.permute.xlu0 %4284 }
 0x839   : > { %v4253_v13 = vpop.permute.xlu2 %4252 }
 0x83a   : > { %4259 = vst.msk [vmem:[%s7963_s16 - $0x1] sm:$0xfe] %vm4258_vm12, %v4253_v13  ;;  %vm4397_vm12 = vcmask 326945  }
 0x83b   : > { %v3606_v1 = vpop.permute.xlu1 %3605 }
 0x83c   : > { %3629 = vst.msk [vmem:[%s5913_s14 + $0x3] sm:$0x1] %vm1430_vm15, %v3606_v1  ;;  %v8195_v59 = vpop.permute.xlu0 %4423 }
 0x841   : > { %v8197_v16 = vpop.permute.xlu2 %4391 }
 0x843   : > { %v4269_v30 = vpop.permute.xlu1 %4268 }
 0x844   : > { %4275 = vst.msk [vmem:[%s7963_s16 - $0x2] sm:$0xfc] %vm4274_vm10, %v4269_v30  ;;  %v3570_v58 = vpop.permute.xlu0 %3569  ;;  %vm4413_vm10 = vcmask 359746  }
 0x845   : > { %4291 = vst.msk [vmem:[%s7963_s16 - $0x3] sm:$0xf8] %vm4290_vm4, %v4285_v45  ;;  %vm4429_vm4 = vcmask 392547  }
 0x846   : > { %4307 = vst.msk [vmem:[%s7963_s16 - $0x4] sm:$0xf0] %vm4306_vm7, %v8133_v56  ;;  %vm4399_vm7 = vcmask 319776  }
 0x847   : > { %4323 = vst.msk [vmem:[%s7963_s16 - $0x5] sm:$0xe0] %vm4322_vm3, %v8146_v46  ;;  %vm4415_vm3 = vcmask 353600  }
 0x848   : > { %3586 = vst.msk [vmem:[%s5913_s14 + $0x1f] sm:$0x1] %vm1379_vm14, %v3570_v58  ;;  %vm4260_vm14 = vcmask 57376  }
 0x849   : > { %v3620_v32 = vpop.permute.xlu2 %3619  ;;  %4339 = vst.msk [vmem:[%s7963_s16 - $0x6] sm:$0xc0] %vm4338_vm6, %v8126_v24  ;;  %vm4445_vm6 = vcmask 425348  }
 0x84a   : > { %3636 = vst.msk [vmem:[%s5913_s14 + $0x1f] sm:$0x1] %vm1430_vm15, %v3620_v32 }
 0x84b   : > { %v4408_v55 = vpop.permute.xlu1 %4407  ;;  %4355 = vst.msk [vmem:[%s7963_s16 - $0x7] sm:$0x80] %vm4354_vm11, %v8039_v37  ;;  %vm4461_vm11 = vcmask 458149  }
 0x84c   : > { %v3610_v36 = vpop.permute.xlu0 %3609 }
 0x84d   : > { %3631 = vst.msk [vmem:[%s5913_s14 + $0xb] sm:$0x1] %vm1430_vm15, %v3610_v36 }
 0x851   : > { %v4271_v38 = vpop.permute.xlu2 %4270 }
 0x853   : > { %v3612_v23 = vpop.permute.xlu1 %3611 }
 0x854   : > { %3632 = vst.msk [vmem:[%s5913_s14 + $0xf] sm:$0x1] %vm1430_vm15, %v3612_v23  ;;  %v3616_v60 = vpop.permute.xlu0 %3615 }
 0x855   : > { %3634 = vst.msk [vmem:[%s5913_s14 + $0x17] sm:$0x1] %vm1430_vm15, %v3616_v60 }
 0x859   : > { %v4319_v53 = vpop.permute.xlu2 %4318 }
 0x85b   : > { %v3618_v40 = vpop.permute.xlu1 %3617 }
 0x85c   : > { %3635 = vst.msk [vmem:[%s5913_s14 + $0x1b] sm:$0x1] %vm1430_vm15, %v3618_v40  ;;  %v3672_v49 = vpop.permute.xlu0 %3671  ;;  %vm4308_vm15 = vcmask 158848  }
 0x85d   : > { %3695 = vst.msk [vmem:[%s5913_s14 + $0x3] sm:$0x1] %vm1497_vm0, %v3672_v49 }
 0x861   : > { %v3676_v37 = vpop.permute.xlu2 %3675 }
 0x862   : > { %3697 = vst.msk [vmem:[%s5913_s14 + $0xb] sm:$0x1] %vm1497_vm0, %v3676_v37 }
 0x863   : > { %v4287_v25 = vpop.permute.xlu1 %4286 }
 0x864   : > { %v4255_v57 = vpop.permute.xlu0 %4254 }
 0x865   : > { %4261 = vst.msk [vmem:[%s7963_s16 + $0x7] sm:$0x1] %vm4260_vm14, %v4255_v57  ;;  %vm4477_vm14 = vcmask 490950  }
 0x866   : > { %4277 = vst.msk [vmem:[%s7963_s16 + $0x6] sm:$0x3] %vm4276_vm8, %v4271_v38  ;;  %vm4493_vm8 = vcmask 523751  }
 0x867   : > { %4293 = vst.msk [vmem:[%s7963_s16 + $0x5] sm:$0x7] %vm4292_vm2, %v4287_v25  ;;  %vm4431_vm2 = vcmask 387424  }
 0x869   : > { %v4410_v31 = vpop.permute.xlu2 %4409 }
 0x86b   : > { %v4335_v15 = vpop.permute.xlu1 %4334 }
 0x86c   : > { %v4303_v48 = vpop.permute.xlu0 %4302 }
 0x86d   : > { %4309 = vst.msk [vmem:[%s7963_s16 + $0x4] sm:$0xf] %vm4308_vm15, %v4303_v48  ;;  %vm4447_vm15 = vcmask 421248  }
 0x86e   : > { %4325 = vst.msk [vmem:[%s7963_s16 + $0x3] sm:$0x1f] %vm4324_vm9, %v4319_v53  ;;  %vm4463_vm9 = vcmask 455072  }
 0x86f   : > { %4341 = vst.msk [vmem:[%s7963_s16 + $0x2] sm:$0x3f] %vm4340_vm5, %v4335_v15 }
 0x871   : > { %v4458_v5 = vpop.permute.xlu2 %4457 }
 0x873   : > { %v3674_v34 = vpop.permute.xlu1 %3673 }
 0x874   : > { %3696 = vst.msk [vmem:[%s5913_s14 + $0x7] sm:$0x1] %vm1497_vm0, %v3674_v34  ;;  %v4351_v3 = vpop.permute.xlu0 %4350 }
 0x875   : > { %4357 = vst.msk [vmem:[%s7963_s16 + $0x1] sm:$0x7f] %vm4356_vm1, %v4351_v3 }
 0x879   : > { %v3682_v0 = vpop.permute.xlu2 %3681 }
 0x87a   : > { %3700 = vst.msk [vmem:[%s5913_s14 + $0x17] sm:$0x1] %vm1497_vm0, %v3682_v0 }
 0x87b   : > { %v4381_v61 = vpop.permute.xlu1 %4380 }
 0x87c   : > { %4384 = vst.msk [vmem:[%s7963_s16] sm:$0xff] %vm4383_vm13, %v4381_v61  ;;  %v4394_v29 = vpop.permute.xlu0 %4393 }
 0x87d   : > { %4398 = vst.msk [vmem:[%s7963_s16 - $0x1] sm:$0xfe] %vm4397_vm12, %v8197_v16 }
 0x87e   : > { %4414 = vst.msk [vmem:[%s7963_s16 - $0x2] sm:$0xfc] %vm4413_vm10, %v4408_v55 }
 0x87f   : > { %4430 = vst.msk [vmem:[%s7963_s16 - $0x3] sm:$0xf8] %vm4429_vm4, %v8195_v59 }
 0x880   : > { %4400 = vst.msk [vmem:[%s7963_s16 + $0x7] sm:$0x1] %vm4399_vm7, %v4394_v29 }
 0x881   : > { %4416 = vst.msk [vmem:[%s7963_s16 + $0x6] sm:$0x3] %vm4415_vm3, %v4410_v31  ;;  %v4488_v35 = vpop.permute.xlu2 %4487 }
 0x882   : > { %4446 = vst.msk [vmem:[%s7963_s16 - $0x4] sm:$0xf0] %vm4445_vm6, %v8150_v50 }
 0x883   : > { %4462 = vst.msk [vmem:[%s7963_s16 - $0x5] sm:$0xe0] %vm4461_vm11, %v8160_v42  ;;  %v4426_v21 = vpop.permute.xlu1 %4425 }
 0x884   : > { %4478 = vst.msk [vmem:[%s7963_s16 - $0x6] sm:$0xc0] %vm4477_vm14, %v8138_v51  ;;  %v4442_v62 = vpop.permute.xlu0 %4441 }
 0x885   : > { %4494 = vst.msk [vmem:[%s7963_s16 - $0x7] sm:$0x80] %vm4493_vm8, %v4488_v35 }
 0x886   : > { %4432 = vst.msk [vmem:[%s7963_s16 + $0x5] sm:$0x7] %vm4431_vm2, %v4426_v21 }
 0x887   : > { %4448 = vst.msk [vmem:[%s7963_s16 + $0x4] sm:$0xf] %vm4447_vm15, %v4442_v62 }
 0x888   : > { %4464 = vst.msk [vmem:[%s7963_s16 + $0x3] sm:$0x1f] %vm4463_vm9, %v4458_v5 }
 0x88b   : > { %v3680_v24 = vpop.permute.xlu1 %3679 }
 0x88c   : > { %3699 = vst.msk [vmem:[%s5913_s14 + $0x13] sm:$0x1] %vm1497_vm0, %v3680_v24  ;;  %v3678_v19 = vpop.permute.xlu0 %3677 }
 0x88d   : > { %3698 = vst.msk [vmem:[%s5913_s14 + $0xf] sm:$0x1] %vm1497_vm0, %v3678_v19 }
 0x893   : > { %v3686_v2 = vpop.permute.xlu1 %3685 }
 0x894   : > { %3702 = vst.msk [vmem:[%s5913_s14 + $0x1f] sm:$0x1] %vm1497_vm0, %v3686_v2  ;;  %v3684_v18 = vpop.permute.xlu0 %3683 }
 0x895   : > { %3701 = vst.msk [vmem:[%s5913_s14 + $0x1b] sm:$0x1] %vm1497_vm0, %v3684_v18 }
 0x896   : > { %5230 = shalt.err (!%p5227_p3)
}
 0x897   : > { %s8453_s11 = smov 4   ;;  %s8454_s14 = smov 64   ;;  %vm4479_vm0 = vcmask 488896   ;;  %vm4495_vm5 = vcmask 522720  }
 0x898   : > { %4927 = dma.vmem_to_hbm [thread:$0]  (%p5394_p5), %s4531_s20, 512, %s4533_s15, %s4503_s28, %s8454_s14, %s8454_s14, %s8453_s11  }
 0x899   : > { %s4515_s25 = sshll.u32 %s7963_s16, 4  ;;  %s4517_s18 = sshll.u32 %s4513_s17, 4  ;;  %s4516_s25 = int_to_ptr.vmem [resolvable:$true] %s4515_s25  ;;  %s4518_s18 = int_to_ptr.hbm [resolvable:$true] %s4517_s18 }
 0x89a   : > { %s4498_s0 = scalar_lea.sflag [#allocation3], %s5902_s12  ;;  %s5245_s26 = sshra.s32 %s4518_s18, 4  ;;  %s5246_s26 = int_to_ptr.hbm [resolvable:$true] %s5245_s26 }
 0x89b   : > { %v4474_v56 = vpop.permute.xlu1 %4473  ;;  %s5247_s29 = scalar_lea.hbm %s5246_s26, 8  ;;  %s5251_s17 = scalar_lea.hbm %s8321_s5, 32 }
 0x89c   : > { %4480 = vst.msk [vmem:[%s7963_s16 + $0x2] sm:$0x3f] %vm4479_vm0, %v4474_v56  ;;  %v4490_v51 = vpop.permute.xlu0 %4489  ;;  %p5248_p4 = scmp.ne.s32.totalorder %s5246_s26, %s5247_s29  ;;  %p5252_p9 = scmp.lt.s32.totalorder %s5246_s26, %s8321_s5 }
 0x89d   : > { %4496 = vst.msk [vmem:[%s7963_s16 + $0x1] sm:$0x7f] %vm4495_vm5, %v4490_v51  ;;  %p5253_p10 = scmp.lt.s32.totalorder %s5251_s17, %s5247_s29 }
 0x89e   : > { %p5249_p7 = pnand %p5248_p4, %p5394_p5 }
 0x89f   : > { %p5254_p11 = por %p5253_p10, %p5252_p9 }
 0x8a0   : > { %p5250_p8 = pneg %p5249_p7 }
 0x8a2   : > { %p5255_p12 = pnand %p5254_p11, %p5250_p8 }
 0x8a4   : > { %5258 = shalt.err (!%p5255_p12)
}
 0x8a5   : > { %4926 = dma.vmem_to_hbm [thread:$0]  (%p5394_p5), %s4516_s25, 128, %s4518_s18, %s4498_s0  }
 0x8a6 PF: > { %p4937_p13 = scmp.ge.s32.totalorder %s5297_s24, 2  ;;  %s4547_s12 = sand.u32 1, %s5285_s21  }
 0x8a7   : > { %s4548_s16 = scalar_lea.sflag [#allocation3], %s4547_s12 }
 0x8a8   : > { %p4931_p0 = pnand %p4937_p13, %p5398_p6 }
 0x8aa   : > { %p4932_p1 = pneg %p4931_p0 }
 0x8ac   : > { %5276 = dma.done.wait (%p4932_p1), %s4548_s16, 128  }
 0x8ad   : > { %5278 = vsyncadd (%p4932_p1), %s4548_s16, 4294967168  ;;  %s4558_s19 = scalar_lea.sflag [#allocation5], %s4547_s12 }
 0x8ae   : > { %5280 = dma.done.wait (%p4932_p1), %s4558_s19, 512  }
 0x8af   : > { %5282 = vsyncadd (%p4932_p1), %s4558_s19, 4294966784  ;;  %p20_p5 = scmp.ge.s32.totalorder %s5381_s27, 6   ;;  %s8455_s21 = smov %s5289_s22 }
 0x8b0   : > { %s8456_s22 = smov %s5293_s23  ;;  %s8457_s23 = smov %s5392_s30 }
 0x8b1   : > { %s8458_s24 = smov %s5381_s27  ;;  %22 = sbr.rel (!%p20_p5) target bundleno = 7 (0x7), region = 141 }
 0x8b6   :  { %4564 = vsyncpa [#allocation3], 1 }
 0x8b7   :  { %4566 = vsyncpa [#allocation3 + $0x1], 1 }
 0x8b8   :  { %4567 = vsyncpa [#allocation5], 1 }
 0x8b9   :  { %4569 = vsyncpa [#allocation5 + $0x1], 1 }

</bundles_post_ra>
